<compile_context>
chip_gen: v6e
topology: v6e:2x2x1
jax: 0.10.0
libtpu: 0.0.40
codegen_flags: <defaults>
</compile_context>

<pallas_src>
import functools

import jax
import jax.numpy as jnp
from jax.experimental import pallas as pl
from jax.experimental.pallas import tpu as pltpu


# ----------------------------------------------------------------------------
# Pallas kernel
# ----------------------------------------------------------------------------
def _lstm_cell_fused(comb, c, w, b, H):
    """One K-fused LSTM cell step.

    comb: (1, K) = [h_prev | layer_input (| extra)], c: (1, H),
    w: (K, 4H) stacked [W_hh.T ; W_ih.T (zero padded) (; folded extra rows)],
    b: (1, 4H).  Gate order i, f, g, o (PyTorch convention).
    """
    gates = jnp.dot(comb, w, preferred_element_type=jnp.float32) + b  # (1, 4H)
    sig = jax.nn.sigmoid(gates)        # full-width EUP
    th = jnp.tanh(gates)               # full-width EUP
    i = sig[:, 0 * H:1 * H]
    f = sig[:, 1 * H:2 * H]
    g = th[:, 2 * H:3 * H]
    o = sig[:, 3 * H:4 * H]
    c_new = f * c + i * g
    h_new = o * jnp.tanh(c_new)
    return h_new, c_new


def seq2seq_kernel(x_ref, py_ref, feat_ref,
                   ew_ref, eb_ref, dw_ref, db_ref,
                   w0ext_ref, b0ext_ref, wout_ref, bout_ref,
                   out_ref,
                   *, seq_len, out_len, H, DIN, n_layers):
    def pad_din(v):  # (1, H) -> (1, DIN); no-op when DIN == H (current config)
        if DIN > H:
            return jnp.concatenate(
                [v, jnp.zeros((1, DIN - H), v.dtype)], axis=1)
        return v

    # ---------------- Encoder: fully unrolled 3-layer LSTM ------------------
    # Loop-invariant weight/bias loads hoisted out of the (unrolled) time loop.
    ew = [ew_ref[l] for l in range(n_layers)]            # (H+DIN, 4H) each
    eb = [eb_ref[l:l + 1, :] for l in range(n_layers)]   # (1, 4H) each

    h = [jnp.zeros((1, H), jnp.float32) for _ in range(n_layers)]
    c = [jnp.zeros((1, H), jnp.float32) for _ in range(n_layers)]

    for t in range(seq_len):
        inp = x_ref[t:t + 1, :]                           # static (1, DIN) slice
        for l in range(n_layers):
            # [h | inp]: recurrence-critical h needs no lane shift.
            comb = jnp.concatenate([h[l], inp], axis=1)   # (1, H+DIN)
            h[l], c[l] = _lstm_cell_fused(comb, c[l], ew[l], eb[l], H)
            inp = pad_din(h[l])

    # ---------------- Decoder: fully unrolled autoregressive loop -----------
    dw = [dw_ref[l] for l in range(n_layers)]
    db = [db_ref[l:l + 1, :] for l in range(n_layers)]
    w0ext = w0ext_ref[...]        # (H+DIN+H, 4H): head folded into layer 0
    b0ext = b0ext_ref[...]        # (1, 4H)
    w0 = wout_ref[...]            # (1, H)  head row 0 (output accumulation only)
    b0 = bout_ref[...]            # (1, 1)

    out_iota = jax.lax.broadcasted_iota(jnp.int32, (1, out_len), 1)
    acc = jnp.zeros((1, out_len), jnp.float32)

    h_top = h[n_layers - 1]
    for t in range(out_len):
        if t == 0:
            # Step 0 uses the externally supplied prev_y decoder input.
            comb0 = jnp.concatenate([h[0], py_ref[...]], axis=1)  # (1, H+DIN)
            h[0], c[0] = _lstm_cell_fused(comb0, c[0], dw[0], db[0], H)
        else:
            # Steps >= 1: the y_{t-1} = w0.h_top + b_out contribution is folded
            # into w0ext/b0ext, so layer 0 consumes h_top directly — no lane
            # reduce + select on the recurrence-critical edge.
            feat_row = feat_ref[t:t + 1, :]               # (1, DIN), lane 0 = 0
            comb0 = jnp.concatenate([h[0], feat_row, h_top], axis=1)
            h[0], c[0] = _lstm_cell_fused(comb0, c[0], w0ext, b0ext, H)
        inp = pad_din(h[0])
        for l in range(1, n_layers):
            comb = jnp.concatenate([h[l], inp], axis=1)   # (1, H+DIN)
            h[l], c[l] = _lstm_cell_fused(comb, c[l], dw[l], db[l], H)
            inp = pad_din(h[l])
        h_top = h[n_layers - 1]
        # Output head (off the recurrence chain): y_t = w0 . h_top + b_out[0].
        y_t = jnp.sum(h_top * w0, axis=1, keepdims=True) + b0     # (1, 1)
        acc = jnp.where(out_iota == t, y_t, acc)

    out_ref[...] = acc             # single lane-dense (1, out_len) store


# ----------------------------------------------------------------------------
# Parameter construction (deterministic, PyTorch-default-style uniform init)
# ----------------------------------------------------------------------------
def _uniform(key, shape, scale):
    return jax.random.uniform(key, shape, jnp.float32, -scale, scale)


def build_lstm_weights(key, in0, H, n_layers, DIN):
    """Returns K-fused/stacked (W, b) for the kernel plus raw PyTorch params.

    W[l] is (H+DIN, 4H): rows [0:H) = W_hh.T, rows [H:H+in_l) = W_ih.T
    (zero padded to DIN rows).  b[l] = b_ih + b_hh.
    """
    scale = 1.0 / float(H) ** 0.5
    KC = H + DIN
    W = jnp.zeros((n_layers, KC, 4 * H), jnp.float32)
    b = jnp.zeros((n_layers, 4 * H), jnp.float32)
    raw = []
    for l in range(n_layers):
        in_l = in0 if l == 0 else H
        key, k1, k2, k3, k4 = jax.random.split(key, 5)
        w_ih = _uniform(k1, (4 * H, in_l), scale)   # PyTorch layout
        w_hh = _uniform(k2, (4 * H, H), scale)
        b_ih = _uniform(k3, (4 * H,), scale)
        b_hh = _uniform(k4, (4 * H,), scale)
        raw.append((w_ih, w_hh, b_ih, b_hh))
        W = W.at[l, :H, :].set(w_hh.T)
        W = W.at[l, H:H + in_l, :].set(w_ih.T)
        b = b.at[l, :].set(b_ih + b_hh)
    return (W, b), raw


# ----------------------------------------------------------------------------
# Pure-JAX reference (mirrors the PyTorch forward exactly)
# ----------------------------------------------------------------------------
def ref_forward(x, prev_y, features, enc_raw, dec_raw, w_out, b_out,
                H, out_len):
    n_layers = len(enc_raw)
    n_exo = features.shape[1]

    def step(inp, h, c, p):
        w_ih, w_hh, b_ih, b_hh = p
        gates = inp @ w_ih.T + b_ih + h @ w_hh.T + b_hh
        i = jax.nn.sigmoid(gates[:, :H])
        f = jax.nn.sigmoid(gates[:, H:2 * H])
        g = jnp.tanh(gates[:, 2 * H:3 * H])
        o = jax.nn.sigmoid(gates[:, 3 * H:])
        c = f * c + i * g
        h = o * jnp.tanh(c)
        return h, c

    h = [jnp.zeros((1, H), jnp.float32) for _ in range(n_layers)]
    c = [jnp.zeros((1, H), jnp.float32) for _ in range(n_layers)]
    for t in range(x.shape[0]):
        inp = x[t:t + 1, :]
        for l in range(n_layers):
            h[l], c[l] = step(inp, h[l], c[l], enc_raw[l])
            inp = h[l]

    dec_in = prev_y.reshape(1, -1)
    outs = []
    for t in range(out_len):
        inp = dec_in
        for l in range(n_layers):
            h[l], c[l] = step(inp, h[l], c[l], dec_raw[l])
            inp = h[l]
        y = h[-1] @ w_out.T + b_out
        px = y[:, 0:1]
        outs.append(px.reshape(1))
        if t + 1 < out_len:
            dec_in = jnp.concatenate(
                [px, features[t + 1].reshape(1, n_exo)], axis=1)
    return jnp.stack(outs)


# ----------------------------------------------------------------------------
# Wrapper
# ----------------------------------------------------------------------------
def seq2seq_forward(x, prev_y, features,
                    enc_w, dec_w, w_out, b_out,
                    *, H, F, out_len, n_layers=3):
    seq_len = x.shape[0]
    DIN = max(F, H)
    n_exo = features.shape[1]

    x_pad = jnp.zeros((seq_len, DIN), jnp.float32).at[:, :F].set(x)
    py_pad = jnp.zeros((1, DIN), jnp.float32).at[:, :F].set(
        prev_y.reshape(1, F))
    feat_pad = jnp.zeros((out_len, DIN), jnp.float32).at[:, 1:1 + n_exo].set(
        features)

    eW, eb = enc_w
    dW, db = dec_w
    w0 = w_out[0:1, :]                 # (1, H) — only output column 0 is used
    b0 = b_out[0].reshape(1, 1)

    # Fold the output head (prediction column) into the decoder layer-0 weight:
    #   next-step target lane y = w_out[0].h_top + b_out[0] contributes
    #   y * W_ih[:, 0] to layer-0 gates  ->  h_top @ outer(w_out[0], W_ih[:,0]).
    dW0 = dW[0]                                     # (H+DIN, 4H)
    r0 = dW0[H, :]                                  # = W_ih[:, 0]  (4H,)
    M0 = jnp.outer(w_out[0, :], r0)                 # (H, 4H)
    w0ext = jnp.concatenate([dW0, M0], axis=0)      # (H+DIN+H, 4H)
    b0ext = (db[0] + b_out[0] * r0).reshape(1, -1)  # (1, 4H)

    kernel = functools.partial(seq2seq_kernel, seq_len=seq_len,
                               out_len=out_len, H=H, DIN=DIN,
                               n_layers=n_layers)
    n_in = 11
    out_row = pl.pallas_call(
        kernel,
        out_shape=jax.ShapeDtypeStruct((1, out_len), jnp.float32),
        in_specs=[pl.BlockSpec(memory_space=pltpu.MemorySpace.VMEM)] * n_in,
        out_specs=pl.BlockSpec(memory_space=pltpu.MemorySpace.VMEM),
    )(x_pad, py_pad, feat_pad, eW, eb, dW, db, w0ext, b0ext, w0, b0)
    # Module returns a (output_length, 1) stack of scalar predictions.
    return out_row.reshape(out_len, 1)


if __name__ == "__main__":
    SEQ_LEN = 8
    N_FEATURES = 18      # 1 target + 17 exogenous (17 is hard-coded in forward)
    EMBED = 32           # embedding_dim / hidden_dim
    OUT_LEN = 6          # output_length (default 28 in module; small here)
    N_LAYERS = 3

    # --- deterministic inputs -------------------------------------------------
    key = jax.random.PRNGKey(0)
    kx, kpy, kf = jax.random.split(key, 3)
    x = jax.random.normal(kx, (SEQ_LEN, N_FEATURES), jnp.float32)
    prev_y = jax.random.normal(kpy, (1, 1, N_FEATURES), jnp.float32)
    features = jax.random.normal(kf, (OUT_LEN, 17), jnp.float32)

    # --- deterministic parameters --------------------------------------------
    DIN = max(N_FEATURES, EMBED)
    pkey = jax.random.PRNGKey(42)
    k_enc, k_dec, k_lin = jax.random.split(pkey, 3)
    enc_w, enc_raw = build_lstm_weights(k_enc, N_FEATURES, EMBED, N_LAYERS, DIN)
    dec_w, dec_raw = build_lstm_weights(k_dec, N_FEATURES, EMBED, N_LAYERS, DIN)
    lin_scale = 1.0 / float(EMBED) ** 0.5
    k_lw, k_lb = jax.random.split(k_lin)
    w_out = _uniform(k_lw, (N_FEATURES, EMBED), lin_scale)  # PyTorch Linear layout
    b_out = _uniform(k_lb, (N_FEATURES,), lin_scale)

    # --- run kernel -----------------------------------------------------------
    out = seq2seq_forward(x, prev_y, features, enc_w, dec_w, w_out, b_out,
                          H=EMBED, F=N_FEATURES, out_len=OUT_LEN,
                          n_layers=N_LAYERS)
    out = jax.block_until_ready(out)

    # --- check against pure-JAX reference ------------------------------------
    ref = ref_forward(x, prev_y, features, enc_raw, dec_raw, w_out, b_out,
                      EMBED, OUT_LEN)
    assert out.shape == (OUT_LEN, 1), out.shape
    assert jnp.allclose(out, ref, rtol=1e-4, atol=1e-4), (out, ref)
    print("KERNEL_OK")
</pallas_src>

<mosaic_0001>
module attributes {stable_mosaic.version = 11 : i64} {
  func.func @seq2seq_kernel(%arg0: memref<8x32xf32, #tpu.memory_space<vmem>>, %arg1: memref<1x32xf32, #tpu.memory_space<vmem>>, %arg2: memref<6x32xf32, #tpu.memory_space<vmem>>, %arg3: memref<3x64x128xf32, #tpu.memory_space<vmem>>, %arg4: memref<3x128xf32, #tpu.memory_space<vmem>>, %arg5: memref<3x64x128xf32, #tpu.memory_space<vmem>>, %arg6: memref<3x128xf32, #tpu.memory_space<vmem>>, %arg7: memref<96x128xf32, #tpu.memory_space<vmem>>, %arg8: memref<1x128xf32, #tpu.memory_space<vmem>>, %arg9: memref<1x32xf32, #tpu.memory_space<vmem>>, %arg10: memref<1x1xf32, #tpu.memory_space<vmem>>, %arg11: memref<1x6xf32, #tpu.memory_space<vmem>>) attributes {dimension_semantics = [], scalar_prefetch = 0 : i64, scratch_operands = 0 : i64, tpu.core_type = #tpu.core_type<tc>} {
    %c0 = arith.constant 0 : index
    %c0_0 = arith.constant 0 : index
    %c0_1 = arith.constant 0 : index
    %0 = vector.load %arg3[%c0, %c0_0, %c0_1] : memref<3x64x128xf32, #tpu.memory_space<vmem>>, vector<1x64x128xf32>
    %1 = vector.shape_cast %0 : vector<1x64x128xf32> to vector<64x128xf32>
    %c1 = arith.constant 1 : index
    %c0_2 = arith.constant 0 : index
    %c0_3 = arith.constant 0 : index
    %2 = vector.load %arg3[%c1, %c0_2, %c0_3] : memref<3x64x128xf32, #tpu.memory_space<vmem>>, vector<1x64x128xf32>
    %3 = vector.shape_cast %2 : vector<1x64x128xf32> to vector<64x128xf32>
    %c2 = arith.constant 2 : index
    %c0_4 = arith.constant 0 : index
    %c0_5 = arith.constant 0 : index
    %4 = vector.load %arg3[%c2, %c0_4, %c0_5] : memref<3x64x128xf32, #tpu.memory_space<vmem>>, vector<1x64x128xf32>
    %5 = vector.shape_cast %4 : vector<1x64x128xf32> to vector<64x128xf32>
    %c0_6 = arith.constant 0 : index
    %c0_7 = arith.constant 0 : index
    %6 = vector.load %arg4[%c0_6, %c0_7] : memref<3x128xf32, #tpu.memory_space<vmem>>, vector<1x128xf32>
    %c1_8 = arith.constant 1 : index
    %c0_9 = arith.constant 0 : index
    %7 = vector.load %arg4[%c1_8, %c0_9] : memref<3x128xf32, #tpu.memory_space<vmem>>, vector<1x128xf32>
    %c2_10 = arith.constant 2 : index
    %c0_11 = arith.constant 0 : index
    %8 = vector.load %arg4[%c2_10, %c0_11] : memref<3x128xf32, #tpu.memory_space<vmem>>, vector<1x128xf32>
    %cst = arith.constant 0.000000e+00 : f32
    %9 = vector.broadcast %cst : f32 to vector<1x32xf32>
    %cst_12 = arith.constant 0.000000e+00 : f32
    %10 = vector.broadcast %cst_12 : f32 to vector<1x32xf32>
    %cst_13 = arith.constant 0.000000e+00 : f32
    %11 = vector.broadcast %cst_13 : f32 to vector<1x32xf32>
    %cst_14 = arith.constant 0.000000e+00 : f32
    %12 = vector.broadcast %cst_14 : f32 to vector<1x32xf32>
    %cst_15 = arith.constant 0.000000e+00 : f32
    %13 = vector.broadcast %cst_15 : f32 to vector<1x32xf32>
    %cst_16 = arith.constant 0.000000e+00 : f32
    %14 = vector.broadcast %cst_16 : f32 to vector<1x32xf32>
    %c0_17 = arith.constant 0 : index
    %c0_18 = arith.constant 0 : index
    %15 = vector.load %arg0[%c0_17, %c0_18] : memref<8x32xf32, #tpu.memory_space<vmem>>, vector<1x32xf32>
    %16 = tpu.concatenate %9, %15 in 1 : vector<1x32xf32>, vector<1x32xf32> -> vector<1x64xf32>
    %cst_19 = arith.constant dense<0.000000e+00> : vector<1x128xf32>
    %17 = tpu.matmul %16, %1, %cst_19 {dimension_numbers = #tpu.dot_dimension_numbers<[1], [0], [0], [1], [0, 0, 1, 1], [], []>} : vector<1x64xf32>, vector<64x128xf32>, vector<1x128xf32> -> vector<1x128xf32>
    %18 = arith.addf %17, %6 : vector<1x128xf32>
    %19 = arith.negf %18 : vector<1x128xf32>
    %20 = math.exp %19 : vector<1x128xf32>
    %cst_20 = arith.constant 1.000000e+00 : f32
    %21 = vector.broadcast %cst_20 : f32 to vector<1x128xf32>
    %22 = arith.addf %21, %20 : vector<1x128xf32>
    %23 = arith.divf %21, %22 : vector<1x128xf32>
    %24 = math.tanh %18 : vector<1x128xf32>
    %25 = vector.extract_strided_slice %23 {offsets = [0, 0], sizes = [1, 32], strides = [1, 1]} : vector<1x128xf32> to vector<1x32xf32>
    %26 = vector.extract_strided_slice %23 {offsets = [0, 32], sizes = [1, 32], strides = [1, 1]} : vector<1x128xf32> to vector<1x32xf32>
    %27 = vector.extract_strided_slice %24 {offsets = [0, 64], sizes = [1, 32], strides = [1, 1]} : vector<1x128xf32> to vector<1x32xf32>
    %28 = vector.extract_strided_slice %23 {offsets = [0, 96], sizes = [1, 32], strides = [1, 1]} : vector<1x128xf32> to vector<1x32xf32>
    %29 = arith.mulf %26, %12 : vector<1x32xf32>
    %30 = arith.mulf %25, %27 : vector<1x32xf32>
    %31 = arith.addf %29, %30 : vector<1x32xf32>
    %32 = math.tanh %31 : vector<1x32xf32>
    %33 = arith.mulf %28, %32 : vector<1x32xf32>
    %34 = tpu.concatenate %10, %33 in 1 : vector<1x32xf32>, vector<1x32xf32> -> vector<1x64xf32>
    %cst_21 = arith.constant dense<0.000000e+00> : vector<1x128xf32>
    %35 = tpu.matmul %34, %3, %cst_21 {dimension_numbers = #tpu.dot_dimension_numbers<[1], [0], [0], [1], [0, 0, 1, 1], [], []>} : vector<1x64xf32>, vector<64x128xf32>, vector<1x128xf32> -> vector<1x128xf32>
    %36 = arith.addf %35, %7 : vector<1x128xf32>
    %37 = arith.negf %36 : vector<1x128xf32>
    %38 = math.exp %37 : vector<1x128xf32>
    %cst_22 = arith.constant 1.000000e+00 : f32
    %39 = vector.broadcast %cst_22 : f32 to vector<1x128xf32>
    %40 = arith.addf %39, %38 : vector<1x128xf32>
    %41 = arith.divf %39, %40 : vector<1x128xf32>
    %42 = math.tanh %36 : vector<1x128xf32>
    %43 = vector.extract_strided_slice %41 {offsets = [0, 0], sizes = [1, 32], strides = [1, 1]} : vector<1x128xf32> to vector<1x32xf32>
    %44 = vector.extract_strided_slice %41 {offsets = [0, 32], sizes = [1, 32], strides = [1, 1]} : vector<1x128xf32> to vector<1x32xf32>
    %45 = vector.extract_strided_slice %42 {offsets = [0, 64], sizes = [1, 32], strides = [1, 1]} : vector<1x128xf32> to vector<1x32xf32>
    %46 = vector.extract_strided_slice %41 {offsets = [0, 96], sizes = [1, 32], strides = [1, 1]} : vector<1x128xf32> to vector<1x32xf32>
    %47 = arith.mulf %44, %13 : vector<1x32xf32>
    %48 = arith.mulf %43, %45 : vector<1x32xf32>
    %49 = arith.addf %47, %48 : vector<1x32xf32>
    %50 = math.tanh %49 : vector<1x32xf32>
    %51 = arith.mulf %46, %50 : vector<1x32xf32>
    %52 = tpu.concatenate %11, %51 in 1 : vector<1x32xf32>, vector<1x32xf32> -> vector<1x64xf32>
    %cst_23 = arith.constant dense<0.000000e+00> : vector<1x128xf32>
    %53 = tpu.matmul %52, %5, %cst_23 {dimension_numbers = #tpu.dot_dimension_numbers<[1], [0], [0], [1], [0, 0, 1, 1], [], []>} : vector<1x64xf32>, vector<64x128xf32>, vector<1x128xf32> -> vector<1x128xf32>
    %54 = arith.addf %53, %8 : vector<1x128xf32>
    %55 = arith.negf %54 : vector<1x128xf32>
    %56 = math.exp %55 : vector<1x128xf32>
    %cst_24 = arith.constant 1.000000e+00 : f32
    %57 = vector.broadcast %cst_24 : f32 to vector<1x128xf32>
    %58 = arith.addf %57, %56 : vector<1x128xf32>
    %59 = arith.divf %57, %58 : vector<1x128xf32>
    %60 = math.tanh %54 : vector<1x128xf32>
    %61 = vector.extract_strided_slice %59 {offsets = [0, 0], sizes = [1, 32], strides = [1, 1]} : vector<1x128xf32> to vector<1x32xf32>
    %62 = vector.extract_strided_slice %59 {offsets = [0, 32], sizes = [1, 32], strides = [1, 1]} : vector<1x128xf32> to vector<1x32xf32>
    %63 = vector.extract_strided_slice %60 {offsets = [0, 64], sizes = [1, 32], strides = [1, 1]} : vector<1x128xf32> to vector<1x32xf32>
    %64 = vector.extract_strided_slice %59 {offsets = [0, 96], sizes = [1, 32], strides = [1, 1]} : vector<1x128xf32> to vector<1x32xf32>
    %65 = arith.mulf %62, %14 : vector<1x32xf32>
    %66 = arith.mulf %61, %63 : vector<1x32xf32>
    %67 = arith.addf %65, %66 : vector<1x32xf32>
    %68 = math.tanh %67 : vector<1x32xf32>
    %69 = arith.mulf %64, %68 : vector<1x32xf32>
    %c1_25 = arith.constant 1 : index
    %c0_26 = arith.constant 0 : index
    %70 = vector.load %arg0[%c1_25, %c0_26] : memref<8x32xf32, #tpu.memory_space<vmem>>, vector<1x32xf32>
    %71 = tpu.concatenate %33, %70 in 1 : vector<1x32xf32>, vector<1x32xf32> -> vector<1x64xf32>
    %cst_27 = arith.constant dense<0.000000e+00> : vector<1x128xf32>
    %72 = tpu.matmul %71, %1, %cst_27 {dimension_numbers = #tpu.dot_dimension_numbers<[1], [0], [0], [1], [0, 0, 1, 1], [], []>} : vector<1x64xf32>, vector<64x128xf32>, vector<1x128xf32> -> vector<1x128xf32>
    %73 = arith.addf %72, %6 : vector<1x128xf32>
    %74 = arith.negf %73 : vector<1x128xf32>
    %75 = math.exp %74 : vector<1x128xf32>
    %cst_28 = arith.constant 1.000000e+00 : f32
    %76 = vector.broadcast %cst_28 : f32 to vector<1x128xf32>
    %77 = arith.addf %76, %75 : vector<1x128xf32>
    %78 = arith.divf %76, %77 : vector<1x128xf32>
    %79 = math.tanh %73 : vector<1x128xf32>
    %80 = vector.extract_strided_slice %78 {offsets = [0, 0], sizes = [1, 32], strides = [1, 1]} : vector<1x128xf32> to vector<1x32xf32>
    %81 = vector.extract_strided_slice %78 {offsets = [0, 32], sizes = [1, 32], strides = [1, 1]} : vector<1x128xf32> to vector<1x32xf32>
    %82 = vector.extract_strided_slice %79 {offsets = [0, 64], sizes = [1, 32], strides = [1, 1]} : vector<1x128xf32> to vector<1x32xf32>
    %83 = vector.extract_strided_slice %78 {offsets = [0, 96], sizes = [1, 32], strides = [1, 1]} : vector<1x128xf32> to vector<1x32xf32>
    %84 = arith.mulf %81, %31 : vector<1x32xf32>
    %85 = arith.mulf %80, %82 : vector<1x32xf32>
    %86 = arith.addf %84, %85 : vector<1x32xf32>
    %87 = math.tanh %86 : vector<1x32xf32>
    %88 = arith.mulf %83, %87 : vector<1x32xf32>
    %89 = tpu.concatenate %51, %88 in 1 : vector<1x32xf32>, vector<1x32xf32> -> vector<1x64xf32>
    %cst_29 = arith.constant dense<0.000000e+00> : vector<1x128xf32>
    %90 = tpu.matmul %89, %3, %cst_29 {dimension_numbers = #tpu.dot_dimension_numbers<[1], [0], [0], [1], [0, 0, 1, 1], [], []>} : vector<1x64xf32>, vector<64x128xf32>, vector<1x128xf32> -> vector<1x128xf32>
    %91 = arith.addf %90, %7 : vector<1x128xf32>
    %92 = arith.negf %91 : vector<1x128xf32>
    %93 = math.exp %92 : vector<1x128xf32>
    %cst_30 = arith.constant 1.000000e+00 : f32
    %94 = vector.broadcast %cst_30 : f32 to vector<1x128xf32>
    %95 = arith.addf %94, %93 : vector<1x128xf32>
    %96 = arith.divf %94, %95 : vector<1x128xf32>
    %97 = math.tanh %91 : vector<1x128xf32>
    %98 = vector.extract_strided_slice %96 {offsets = [0, 0], sizes = [1, 32], strides = [1, 1]} : vector<1x128xf32> to vector<1x32xf32>
    %99 = vector.extract_strided_slice %96 {offsets = [0, 32], sizes = [1, 32], strides = [1, 1]} : vector<1x128xf32> to vector<1x32xf32>
    %100 = vector.extract_strided_slice %97 {offsets = [0, 64], sizes = [1, 32], strides = [1, 1]} : vector<1x128xf32> to vector<1x32xf32>
    %101 = vector.extract_strided_slice %96 {offsets = [0, 96], sizes = [1, 32], strides = [1, 1]} : vector<1x128xf32> to vector<1x32xf32>
    %102 = arith.mulf %99, %49 : vector<1x32xf32>
    %103 = arith.mulf %98, %100 : vector<1x32xf32>
    %104 = arith.addf %102, %103 : vector<1x32xf32>
    %105 = math.tanh %104 : vector<1x32xf32>
    %106 = arith.mulf %101, %105 : vector<1x32xf32>
    %107 = tpu.concatenate %69, %106 in 1 : vector<1x32xf32>, vector<1x32xf32> -> vector<1x64xf32>
    %cst_31 = arith.constant dense<0.000000e+00> : vector<1x128xf32>
    %108 = tpu.matmul %107, %5, %cst_31 {dimension_numbers = #tpu.dot_dimension_numbers<[1], [0], [0], [1], [0, 0, 1, 1], [], []>} : vector<1x64xf32>, vector<64x128xf32>, vector<1x128xf32> -> vector<1x128xf32>
    %109 = arith.addf %108, %8 : vector<1x128xf32>
    %110 = arith.negf %109 : vector<1x128xf32>
    %111 = math.exp %110 : vector<1x128xf32>
    %cst_32 = arith.constant 1.000000e+00 : f32
    %112 = vector.broadcast %cst_32 : f32 to vector<1x128xf32>
    %113 = arith.addf %112, %111 : vector<1x128xf32>
    %114 = arith.divf %112, %113 : vector<1x128xf32>
    %115 = math.tanh %109 : vector<1x128xf32>
    %116 = vector.extract_strided_slice %114 {offsets = [0, 0], sizes = [1, 32], strides = [1, 1]} : vector<1x128xf32> to vector<1x32xf32>
    %117 = vector.extract_strided_slice %114 {offsets = [0, 32], sizes = [1, 32], strides = [1, 1]} : vector<1x128xf32> to vector<1x32xf32>
    %118 = vector.extract_strided_slice %115 {offsets = [0, 64], sizes = [1, 32], strides = [1, 1]} : vector<1x128xf32> to vector<1x32xf32>
    %119 = vector.extract_strided_slice %114 {offsets = [0, 96], sizes = [1, 32], strides = [1, 1]} : vector<1x128xf32> to vector<1x32xf32>
    %120 = arith.mulf %117, %67 : vector<1x32xf32>
    %121 = arith.mulf %116, %118 : vector<1x32xf32>
    %122 = arith.addf %120, %121 : vector<1x32xf32>
    %123 = math.tanh %122 : vector<1x32xf32>
    %124 = arith.mulf %119, %123 : vector<1x32xf32>
    %c2_33 = arith.constant 2 : index
    %c0_34 = arith.constant 0 : index
    %125 = vector.load %arg0[%c2_33, %c0_34] : memref<8x32xf32, #tpu.memory_space<vmem>>, vector<1x32xf32>
    %126 = tpu.concatenate %88, %125 in 1 : vector<1x32xf32>, vector<1x32xf32> -> vector<1x64xf32>
    %cst_35 = arith.constant dense<0.000000e+00> : vector<1x128xf32>
    %127 = tpu.matmul %126, %1, %cst_35 {dimension_numbers = #tpu.dot_dimension_numbers<[1], [0], [0], [1], [0, 0, 1, 1], [], []>} : vector<1x64xf32>, vector<64x128xf32>, vector<1x128xf32> -> vector<1x128xf32>
    %128 = arith.addf %127, %6 : vector<1x128xf32>
    %129 = arith.negf %128 : vector<1x128xf32>
    %130 = math.exp %129 : vector<1x128xf32>
    %cst_36 = arith.constant 1.000000e+00 : f32
    %131 = vector.broadcast %cst_36 : f32 to vector<1x128xf32>
    %132 = arith.addf %131, %130 : vector<1x128xf32>
    %133 = arith.divf %131, %132 : vector<1x128xf32>
    %134 = math.tanh %128 : vector<1x128xf32>
    %135 = vector.extract_strided_slice %133 {offsets = [0, 0], sizes = [1, 32], strides = [1, 1]} : vector<1x128xf32> to vector<1x32xf32>
    %136 = vector.extract_strided_slice %133 {offsets = [0, 32], sizes = [1, 32], strides = [1, 1]} : vector<1x128xf32> to vector<1x32xf32>
    %137 = vector.extract_strided_slice %134 {offsets = [0, 64], sizes = [1, 32], strides = [1, 1]} : vector<1x128xf32> to vector<1x32xf32>
    %138 = vector.extract_strided_slice %133 {offsets = [0, 96], sizes = [1, 32], strides = [1, 1]} : vector<1x128xf32> to vector<1x32xf32>
    %139 = arith.mulf %136, %86 : vector<1x32xf32>
    %140 = arith.mulf %135, %137 : vector<1x32xf32>
    %141 = arith.addf %139, %140 : vector<1x32xf32>
    %142 = math.tanh %141 : vector<1x32xf32>
    %143 = arith.mulf %138, %142 : vector<1x32xf32>
    %144 = tpu.concatenate %106, %143 in 1 : vector<1x32xf32>, vector<1x32xf32> -> vector<1x64xf32>
    %cst_37 = arith.constant dense<0.000000e+00> : vector<1x128xf32>
    %145 = tpu.matmul %144, %3, %cst_37 {dimension_numbers = #tpu.dot_dimension_numbers<[1], [0], [0], [1], [0, 0, 1, 1], [], []>} : vector<1x64xf32>, vector<64x128xf32>, vector<1x128xf32> -> vector<1x128xf32>
    %146 = arith.addf %145, %7 : vector<1x128xf32>
    %147 = arith.negf %146 : vector<1x128xf32>
    %148 = math.exp %147 : vector<1x128xf32>
    %cst_38 = arith.constant 1.000000e+00 : f32
    %149 = vector.broadcast %cst_38 : f32 to vector<1x128xf32>
    %150 = arith.addf %149, %148 : vector<1x128xf32>
    %151 = arith.divf %149, %150 : vector<1x128xf32>
    %152 = math.tanh %146 : vector<1x128xf32>
    %153 = vector.extract_strided_slice %151 {offsets = [0, 0], sizes = [1, 32], strides = [1, 1]} : vector<1x128xf32> to vector<1x32xf32>
    %154 = vector.extract_strided_slice %151 {offsets = [0, 32], sizes = [1, 32], strides = [1, 1]} : vector<1x128xf32> to vector<1x32xf32>
    %155 = vector.extract_strided_slice %152 {offsets = [0, 64], sizes = [1, 32], strides = [1, 1]} : vector<1x128xf32> to vector<1x32xf32>
    %156 = vector.extract_strided_slice %151 {offsets = [0, 96], sizes = [1, 32], strides = [1, 1]} : vector<1x128xf32> to vector<1x32xf32>
    %157 = arith.mulf %154, %104 : vector<1x32xf32>
    %158 = arith.mulf %153, %155 : vector<1x32xf32>
    %159 = arith.addf %157, %158 : vector<1x32xf32>
    %160 = math.tanh %159 : vector<1x32xf32>
    %161 = arith.mulf %156, %160 : vector<1x32xf32>
    %162 = tpu.concatenate %124, %161 in 1 : vector<1x32xf32>, vector<1x32xf32> -> vector<1x64xf32>
    %cst_39 = arith.constant dense<0.000000e+00> : vector<1x128xf32>
    %163 = tpu.matmul %162, %5, %cst_39 {dimension_numbers = #tpu.dot_dimension_numbers<[1], [0], [0], [1], [0, 0, 1, 1], [], []>} : vector<1x64xf32>, vector<64x128xf32>, vector<1x128xf32> -> vector<1x128xf32>
    %164 = arith.addf %163, %8 : vector<1x128xf32>
    %165 = arith.negf %164 : vector<1x128xf32>
    %166 = math.exp %165 : vector<1x128xf32>
    %cst_40 = arith.constant 1.000000e+00 : f32
    %167 = vector.broadcast %cst_40 : f32 to vector<1x128xf32>
    %168 = arith.addf %167, %166 : vector<1x128xf32>
    %169 = arith.divf %167, %168 : vector<1x128xf32>
    %170 = math.tanh %164 : vector<1x128xf32>
    %171 = vector.extract_strided_slice %169 {offsets = [0, 0], sizes = [1, 32], strides = [1, 1]} : vector<1x128xf32> to vector<1x32xf32>
    %172 = vector.extract_strided_slice %169 {offsets = [0, 32], sizes = [1, 32], strides = [1, 1]} : vector<1x128xf32> to vector<1x32xf32>
    %173 = vector.extract_strided_slice %170 {offsets = [0, 64], sizes = [1, 32], strides = [1, 1]} : vector<1x128xf32> to vector<1x32xf32>
    %174 = vector.extract_strided_slice %169 {offsets = [0, 96], sizes = [1, 32], strides = [1, 1]} : vector<1x128xf32> to vector<1x32xf32>
    %175 = arith.mulf %172, %122 : vector<1x32xf32>
    %176 = arith.mulf %171, %173 : vector<1x32xf32>
    %177 = arith.addf %175, %176 : vector<1x32xf32>
    %178 = math.tanh %177 : vector<1x32xf32>
    %179 = arith.mulf %174, %178 : vector<1x32xf32>
    %c3 = arith.constant 3 : index
    %c0_41 = arith.constant 0 : index
    %180 = vector.load %arg0[%c3, %c0_41] : memref<8x32xf32, #tpu.memory_space<vmem>>, vector<1x32xf32>
    %181 = tpu.concatenate %143, %180 in 1 : vector<1x32xf32>, vector<1x32xf32> -> vector<1x64xf32>
    %cst_42 = arith.constant dense<0.000000e+00> : vector<1x128xf32>
    %182 = tpu.matmul %181, %1, %cst_42 {dimension_numbers = #tpu.dot_dimension_numbers<[1], [0], [0], [1], [0, 0, 1, 1], [], []>} : vector<1x64xf32>, vector<64x128xf32>, vector<1x128xf32> -> vector<1x128xf32>
    %183 = arith.addf %182, %6 : vector<1x128xf32>
    %184 = arith.negf %183 : vector<1x128xf32>
    %185 = math.exp %184 : vector<1x128xf32>
    %cst_43 = arith.constant 1.000000e+00 : f32
    %186 = vector.broadcast %cst_43 : f32 to vector<1x128xf32>
    %187 = arith.addf %186, %185 : vector<1x128xf32>
    %188 = arith.divf %186, %187 : vector<1x128xf32>
    %189 = math.tanh %183 : vector<1x128xf32>
    %190 = vector.extract_strided_slice %188 {offsets = [0, 0], sizes = [1, 32], strides = [1, 1]} : vector<1x128xf32> to vector<1x32xf32>
    %191 = vector.extract_strided_slice %188 {offsets = [0, 32], sizes = [1, 32], strides = [1, 1]} : vector<1x128xf32> to vector<1x32xf32>
    %192 = vector.extract_strided_slice %189 {offsets = [0, 64], sizes = [1, 32], strides = [1, 1]} : vector<1x128xf32> to vector<1x32xf32>
    %193 = vector.extract_strided_slice %188 {offsets = [0, 96], sizes = [1, 32], strides = [1, 1]} : vector<1x128xf32> to vector<1x32xf32>
    %194 = arith.mulf %191, %141 : vector<1x32xf32>
    %195 = arith.mulf %190, %192 : vector<1x32xf32>
    %196 = arith.addf %194, %195 : vector<1x32xf32>
    %197 = math.tanh %196 : vector<1x32xf32>
    %198 = arith.mulf %193, %197 : vector<1x32xf32>
    %199 = tpu.concatenate %161, %198 in 1 : vector<1x32xf32>, vector<1x32xf32> -> vector<1x64xf32>
    %cst_44 = arith.constant dense<0.000000e+00> : vector<1x128xf32>
    %200 = tpu.matmul %199, %3, %cst_44 {dimension_numbers = #tpu.dot_dimension_numbers<[1], [0], [0], [1], [0, 0, 1, 1], [], []>} : vector<1x64xf32>, vector<64x128xf32>, vector<1x128xf32> -> vector<1x128xf32>
    %201 = arith.addf %200, %7 : vector<1x128xf32>
    %202 = arith.negf %201 : vector<1x128xf32>
    %203 = math.exp %202 : vector<1x128xf32>
    %cst_45 = arith.constant 1.000000e+00 : f32
    %204 = vector.broadcast %cst_45 : f32 to vector<1x128xf32>
    %205 = arith.addf %204, %203 : vector<1x128xf32>
    %206 = arith.divf %204, %205 : vector<1x128xf32>
    %207 = math.tanh %201 : vector<1x128xf32>
    %208 = vector.extract_strided_slice %206 {offsets = [0, 0], sizes = [1, 32], strides = [1, 1]} : vector<1x128xf32> to vector<1x32xf32>
    %209 = vector.extract_strided_slice %206 {offsets = [0, 32], sizes = [1, 32], strides = [1, 1]} : vector<1x128xf32> to vector<1x32xf32>
    %210 = vector.extract_strided_slice %207 {offsets = [0, 64], sizes = [1, 32], strides = [1, 1]} : vector<1x128xf32> to vector<1x32xf32>
    %211 = vector.extract_strided_slice %206 {offsets = [0, 96], sizes = [1, 32], strides = [1, 1]} : vector<1x128xf32> to vector<1x32xf32>
    %212 = arith.mulf %209, %159 : vector<1x32xf32>
    %213 = arith.mulf %208, %210 : vector<1x32xf32>
    %214 = arith.addf %212, %213 : vector<1x32xf32>
    %215 = math.tanh %214 : vector<1x32xf32>
    %216 = arith.mulf %211, %215 : vector<1x32xf32>
    %217 = tpu.concatenate %179, %216 in 1 : vector<1x32xf32>, vector<1x32xf32> -> vector<1x64xf32>
    %cst_46 = arith.constant dense<0.000000e+00> : vector<1x128xf32>
    %218 = tpu.matmul %217, %5, %cst_46 {dimension_numbers = #tpu.dot_dimension_numbers<[1], [0], [0], [1], [0, 0, 1, 1], [], []>} : vector<1x64xf32>, vector<64x128xf32>, vector<1x128xf32> -> vector<1x128xf32>
    %219 = arith.addf %218, %8 : vector<1x128xf32>
    %220 = arith.negf %219 : vector<1x128xf32>
    %221 = math.exp %220 : vector<1x128xf32>
    %cst_47 = arith.constant 1.000000e+00 : f32
    %222 = vector.broadcast %cst_47 : f32 to vector<1x128xf32>
    %223 = arith.addf %222, %221 : vector<1x128xf32>
    %224 = arith.divf %222, %223 : vector<1x128xf32>
    %225 = math.tanh %219 : vector<1x128xf32>
    %226 = vector.extract_strided_slice %224 {offsets = [0, 0], sizes = [1, 32], strides = [1, 1]} : vector<1x128xf32> to vector<1x32xf32>
    %227 = vector.extract_strided_slice %224 {offsets = [0, 32], sizes = [1, 32], strides = [1, 1]} : vector<1x128xf32> to vector<1x32xf32>
    %228 = vector.extract_strided_slice %225 {offsets = [0, 64], sizes = [1, 32], strides = [1, 1]} : vector<1x128xf32> to vector<1x32xf32>
    %229 = vector.extract_strided_slice %224 {offsets = [0, 96], sizes = [1, 32], strides = [1, 1]} : vector<1x128xf32> to vector<1x32xf32>
    %230 = arith.mulf %227, %177 : vector<1x32xf32>
    %231 = arith.mulf %226, %228 : vector<1x32xf32>
    %232 = arith.addf %230, %231 : vector<1x32xf32>
    %233 = math.tanh %232 : vector<1x32xf32>
    %234 = arith.mulf %229, %233 : vector<1x32xf32>
    %c4 = arith.constant 4 : index
    %c0_48 = arith.constant 0 : index
    %235 = vector.load %arg0[%c4, %c0_48] : memref<8x32xf32, #tpu.memory_space<vmem>>, vector<1x32xf32>
    %236 = tpu.concatenate %198, %235 in 1 : vector<1x32xf32>, vector<1x32xf32> -> vector<1x64xf32>
    %cst_49 = arith.constant dense<0.000000e+00> : vector<1x128xf32>
    %237 = tpu.matmul %236, %1, %cst_49 {dimension_numbers = #tpu.dot_dimension_numbers<[1], [0], [0], [1], [0, 0, 1, 1], [], []>} : vector<1x64xf32>, vector<64x128xf32>, vector<1x128xf32> -> vector<1x128xf32>
    %238 = arith.addf %237, %6 : vector<1x128xf32>
    %239 = arith.negf %238 : vector<1x128xf32>
    %240 = math.exp %239 : vector<1x128xf32>
    %cst_50 = arith.constant 1.000000e+00 : f32
    %241 = vector.broadcast %cst_50 : f32 to vector<1x128xf32>
    %242 = arith.addf %241, %240 : vector<1x128xf32>
    %243 = arith.divf %241, %242 : vector<1x128xf32>
    %244 = math.tanh %238 : vector<1x128xf32>
    %245 = vector.extract_strided_slice %243 {offsets = [0, 0], sizes = [1, 32], strides = [1, 1]} : vector<1x128xf32> to vector<1x32xf32>
    %246 = vector.extract_strided_slice %243 {offsets = [0, 32], sizes = [1, 32], strides = [1, 1]} : vector<1x128xf32> to vector<1x32xf32>
    %247 = vector.extract_strided_slice %244 {offsets = [0, 64], sizes = [1, 32], strides = [1, 1]} : vector<1x128xf32> to vector<1x32xf32>
    %248 = vector.extract_strided_slice %243 {offsets = [0, 96], sizes = [1, 32], strides = [1, 1]} : vector<1x128xf32> to vector<1x32xf32>
    %249 = arith.mulf %246, %196 : vector<1x32xf32>
    %250 = arith.mulf %245, %247 : vector<1x32xf32>
    %251 = arith.addf %249, %250 : vector<1x32xf32>
    %252 = math.tanh %251 : vector<1x32xf32>
    %253 = arith.mulf %248, %252 : vector<1x32xf32>
    %254 = tpu.concatenate %216, %253 in 1 : vector<1x32xf32>, vector<1x32xf32> -> vector<1x64xf32>
    %cst_51 = arith.constant dense<0.000000e+00> : vector<1x128xf32>
    %255 = tpu.matmul %254, %3, %cst_51 {dimension_numbers = #tpu.dot_dimension_numbers<[1], [0], [0], [1], [0, 0, 1, 1], [], []>} : vector<1x64xf32>, vector<64x128xf32>, vector<1x128xf32> -> vector<1x128xf32>
    %256 = arith.addf %255, %7 : vector<1x128xf32>
    %257 = arith.negf %256 : vector<1x128xf32>
    %258 = math.exp %257 : vector<1x128xf32>
    %cst_52 = arith.constant 1.000000e+00 : f32
    %259 = vector.broadcast %cst_52 : f32 to vector<1x128xf32>
    %260 = arith.addf %259, %258 : vector<1x128xf32>
    %261 = arith.divf %259, %260 : vector<1x128xf32>
    %262 = math.tanh %256 : vector<1x128xf32>
    %263 = vector.extract_strided_slice %261 {offsets = [0, 0], sizes = [1, 32], strides = [1, 1]} : vector<1x128xf32> to vector<1x32xf32>
    %264 = vector.extract_strided_slice %261 {offsets = [0, 32], sizes = [1, 32], strides = [1, 1]} : vector<1x128xf32> to vector<1x32xf32>
    %265 = vector.extract_strided_slice %262 {offsets = [0, 64], sizes = [1, 32], strides = [1, 1]} : vector<1x128xf32> to vector<1x32xf32>
    %266 = vector.extract_strided_slice %261 {offsets = [0, 96], sizes = [1, 32], strides = [1, 1]} : vector<1x128xf32> to vector<1x32xf32>
    %267 = arith.mulf %264, %214 : vector<1x32xf32>
    %268 = arith.mulf %263, %265 : vector<1x32xf32>
    %269 = arith.addf %267, %268 : vector<1x32xf32>
    %270 = math.tanh %269 : vector<1x32xf32>
    %271 = arith.mulf %266, %270 : vector<1x32xf32>
    %272 = tpu.concatenate %234, %271 in 1 : vector<1x32xf32>, vector<1x32xf32> -> vector<1x64xf32>
    %cst_53 = arith.constant dense<0.000000e+00> : vector<1x128xf32>
    %273 = tpu.matmul %272, %5, %cst_53 {dimension_numbers = #tpu.dot_dimension_numbers<[1], [0], [0], [1], [0, 0, 1, 1], [], []>} : vector<1x64xf32>, vector<64x128xf32>, vector<1x128xf32> -> vector<1x128xf32>
    %274 = arith.addf %273, %8 : vector<1x128xf32>
    %275 = arith.negf %274 : vector<1x128xf32>
    %276 = math.exp %275 : vector<1x128xf32>
    %cst_54 = arith.constant 1.000000e+00 : f32
    %277 = vector.broadcast %cst_54 : f32 to vector<1x128xf32>
    %278 = arith.addf %277, %276 : vector<1x128xf32>
    %279 = arith.divf %277, %278 : vector<1x128xf32>
    %280 = math.tanh %274 : vector<1x128xf32>
    %281 = vector.extract_strided_slice %279 {offsets = [0, 0], sizes = [1, 32], strides = [1, 1]} : vector<1x128xf32> to vector<1x32xf32>
    %282 = vector.extract_strided_slice %279 {offsets = [0, 32], sizes = [1, 32], strides = [1, 1]} : vector<1x128xf32> to vector<1x32xf32>
    %283 = vector.extract_strided_slice %280 {offsets = [0, 64], sizes = [1, 32], strides = [1, 1]} : vector<1x128xf32> to vector<1x32xf32>
    %284 = vector.extract_strided_slice %279 {offsets = [0, 96], sizes = [1, 32], strides = [1, 1]} : vector<1x128xf32> to vector<1x32xf32>
    %285 = arith.mulf %282, %232 : vector<1x32xf32>
    %286 = arith.mulf %281, %283 : vector<1x32xf32>
    %287 = arith.addf %285, %286 : vector<1x32xf32>
    %288 = math.tanh %287 : vector<1x32xf32>
    %289 = arith.mulf %284, %288 : vector<1x32xf32>
    %c5 = arith.constant 5 : index
    %c0_55 = arith.constant 0 : index
    %290 = vector.load %arg0[%c5, %c0_55] : memref<8x32xf32, #tpu.memory_space<vmem>>, vector<1x32xf32>
    %291 = tpu.concatenate %253, %290 in 1 : vector<1x32xf32>, vector<1x32xf32> -> vector<1x64xf32>
    %cst_56 = arith.constant dense<0.000000e+00> : vector<1x128xf32>
    %292 = tpu.matmul %291, %1, %cst_56 {dimension_numbers = #tpu.dot_dimension_numbers<[1], [0], [0], [1], [0, 0, 1, 1], [], []>} : vector<1x64xf32>, vector<64x128xf32>, vector<1x128xf32> -> vector<1x128xf32>
    %293 = arith.addf %292, %6 : vector<1x128xf32>
    %294 = arith.negf %293 : vector<1x128xf32>
    %295 = math.exp %294 : vector<1x128xf32>
    %cst_57 = arith.constant 1.000000e+00 : f32
    %296 = vector.broadcast %cst_57 : f32 to vector<1x128xf32>
    %297 = arith.addf %296, %295 : vector<1x128xf32>
    %298 = arith.divf %296, %297 : vector<1x128xf32>
    %299 = math.tanh %293 : vector<1x128xf32>
    %300 = vector.extract_strided_slice %298 {offsets = [0, 0], sizes = [1, 32], strides = [1, 1]} : vector<1x128xf32> to vector<1x32xf32>
    %301 = vector.extract_strided_slice %298 {offsets = [0, 32], sizes = [1, 32], strides = [1, 1]} : vector<1x128xf32> to vector<1x32xf32>
    %302 = vector.extract_strided_slice %299 {offsets = [0, 64], sizes = [1, 32], strides = [1, 1]} : vector<1x128xf32> to vector<1x32xf32>
    %303 = vector.extract_strided_slice %298 {offsets = [0, 96], sizes = [1, 32], strides = [1, 1]} : vector<1x128xf32> to vector<1x32xf32>
    %304 = arith.mulf %301, %251 : vector<1x32xf32>
    %305 = arith.mulf %300, %302 : vector<1x32xf32>
    %306 = arith.addf %304, %305 : vector<1x32xf32>
    %307 = math.tanh %306 : vector<1x32xf32>
    %308 = arith.mulf %303, %307 : vector<1x32xf32>
    %309 = tpu.concatenate %271, %308 in 1 : vector<1x32xf32>, vector<1x32xf32> -> vector<1x64xf32>
    %cst_58 = arith.constant dense<0.000000e+00> : vector<1x128xf32>
    %310 = tpu.matmul %309, %3, %cst_58 {dimension_numbers = #tpu.dot_dimension_numbers<[1], [0], [0], [1], [0, 0, 1, 1], [], []>} : vector<1x64xf32>, vector<64x128xf32>, vector<1x128xf32> -> vector<1x128xf32>
    %311 = arith.addf %310, %7 : vector<1x128xf32>
    %312 = arith.negf %311 : vector<1x128xf32>
    %313 = math.exp %312 : vector<1x128xf32>
    %cst_59 = arith.constant 1.000000e+00 : f32
    %314 = vector.broadcast %cst_59 : f32 to vector<1x128xf32>
    %315 = arith.addf %314, %313 : vector<1x128xf32>
    %316 = arith.divf %314, %315 : vector<1x128xf32>
    %317 = math.tanh %311 : vector<1x128xf32>
    %318 = vector.extract_strided_slice %316 {offsets = [0, 0], sizes = [1, 32], strides = [1, 1]} : vector<1x128xf32> to vector<1x32xf32>
    %319 = vector.extract_strided_slice %316 {offsets = [0, 32], sizes = [1, 32], strides = [1, 1]} : vector<1x128xf32> to vector<1x32xf32>
    %320 = vector.extract_strided_slice %317 {offsets = [0, 64], sizes = [1, 32], strides = [1, 1]} : vector<1x128xf32> to vector<1x32xf32>
    %321 = vector.extract_strided_slice %316 {offsets = [0, 96], sizes = [1, 32], strides = [1, 1]} : vector<1x128xf32> to vector<1x32xf32>
    %322 = arith.mulf %319, %269 : vector<1x32xf32>
    %323 = arith.mulf %318, %320 : vector<1x32xf32>
    %324 = arith.addf %322, %323 : vector<1x32xf32>
    %325 = math.tanh %324 : vector<1x32xf32>
    %326 = arith.mulf %321, %325 : vector<1x32xf32>
    %327 = tpu.concatenate %289, %326 in 1 : vector<1x32xf32>, vector<1x32xf32> -> vector<1x64xf32>
    %cst_60 = arith.constant dense<0.000000e+00> : vector<1x128xf32>
    %328 = tpu.matmul %327, %5, %cst_60 {dimension_numbers = #tpu.dot_dimension_numbers<[1], [0], [0], [1], [0, 0, 1, 1], [], []>} : vector<1x64xf32>, vector<64x128xf32>, vector<1x128xf32> -> vector<1x128xf32>
    %329 = arith.addf %328, %8 : vector<1x128xf32>
    %330 = arith.negf %329 : vector<1x128xf32>
    %331 = math.exp %330 : vector<1x128xf32>
    %cst_61 = arith.constant 1.000000e+00 : f32
    %332 = vector.broadcast %cst_61 : f32 to vector<1x128xf32>
    %333 = arith.addf %332, %331 : vector<1x128xf32>
    %334 = arith.divf %332, %333 : vector<1x128xf32>
    %335 = math.tanh %329 : vector<1x128xf32>
    %336 = vector.extract_strided_slice %334 {offsets = [0, 0], sizes = [1, 32], strides = [1, 1]} : vector<1x128xf32> to vector<1x32xf32>
    %337 = vector.extract_strided_slice %334 {offsets = [0, 32], sizes = [1, 32], strides = [1, 1]} : vector<1x128xf32> to vector<1x32xf32>
    %338 = vector.extract_strided_slice %335 {offsets = [0, 64], sizes = [1, 32], strides = [1, 1]} : vector<1x128xf32> to vector<1x32xf32>
    %339 = vector.extract_strided_slice %334 {offsets = [0, 96], sizes = [1, 32], strides = [1, 1]} : vector<1x128xf32> to vector<1x32xf32>
    %340 = arith.mulf %337, %287 : vector<1x32xf32>
    %341 = arith.mulf %336, %338 : vector<1x32xf32>
    %342 = arith.addf %340, %341 : vector<1x32xf32>
    %343 = math.tanh %342 : vector<1x32xf32>
    %344 = arith.mulf %339, %343 : vector<1x32xf32>
    %c6 = arith.constant 6 : index
    %c0_62 = arith.constant 0 : index
    %345 = vector.load %arg0[%c6, %c0_62] : memref<8x32xf32, #tpu.memory_space<vmem>>, vector<1x32xf32>
    %346 = tpu.concatenate %308, %345 in 1 : vector<1x32xf32>, vector<1x32xf32> -> vector<1x64xf32>
    %cst_63 = arith.constant dense<0.000000e+00> : vector<1x128xf32>
    %347 = tpu.matmul %346, %1, %cst_63 {dimension_numbers = #tpu.dot_dimension_numbers<[1], [0], [0], [1], [0, 0, 1, 1], [], []>} : vector<1x64xf32>, vector<64x128xf32>, vector<1x128xf32> -> vector<1x128xf32>
    %348 = arith.addf %347, %6 : vector<1x128xf32>
    %349 = arith.negf %348 : vector<1x128xf32>
    %350 = math.exp %349 : vector<1x128xf32>
    %cst_64 = arith.constant 1.000000e+00 : f32
    %351 = vector.broadcast %cst_64 : f32 to vector<1x128xf32>
    %352 = arith.addf %351, %350 : vector<1x128xf32>
    %353 = arith.divf %351, %352 : vector<1x128xf32>
    %354 = math.tanh %348 : vector<1x128xf32>
    %355 = vector.extract_strided_slice %353 {offsets = [0, 0], sizes = [1, 32], strides = [1, 1]} : vector<1x128xf32> to vector<1x32xf32>
    %356 = vector.extract_strided_slice %353 {offsets = [0, 32], sizes = [1, 32], strides = [1, 1]} : vector<1x128xf32> to vector<1x32xf32>
    %357 = vector.extract_strided_slice %354 {offsets = [0, 64], sizes = [1, 32], strides = [1, 1]} : vector<1x128xf32> to vector<1x32xf32>
    %358 = vector.extract_strided_slice %353 {offsets = [0, 96], sizes = [1, 32], strides = [1, 1]} : vector<1x128xf32> to vector<1x32xf32>
    %359 = arith.mulf %356, %306 : vector<1x32xf32>
    %360 = arith.mulf %355, %357 : vector<1x32xf32>
    %361 = arith.addf %359, %360 : vector<1x32xf32>
    %362 = math.tanh %361 : vector<1x32xf32>
    %363 = arith.mulf %358, %362 : vector<1x32xf32>
    %364 = tpu.concatenate %326, %363 in 1 : vector<1x32xf32>, vector<1x32xf32> -> vector<1x64xf32>
    %cst_65 = arith.constant dense<0.000000e+00> : vector<1x128xf32>
    %365 = tpu.matmul %364, %3, %cst_65 {dimension_numbers = #tpu.dot_dimension_numbers<[1], [0], [0], [1], [0, 0, 1, 1], [], []>} : vector<1x64xf32>, vector<64x128xf32>, vector<1x128xf32> -> vector<1x128xf32>
    %366 = arith.addf %365, %7 : vector<1x128xf32>
    %367 = arith.negf %366 : vector<1x128xf32>
    %368 = math.exp %367 : vector<1x128xf32>
    %cst_66 = arith.constant 1.000000e+00 : f32
    %369 = vector.broadcast %cst_66 : f32 to vector<1x128xf32>
    %370 = arith.addf %369, %368 : vector<1x128xf32>
    %371 = arith.divf %369, %370 : vector<1x128xf32>
    %372 = math.tanh %366 : vector<1x128xf32>
    %373 = vector.extract_strided_slice %371 {offsets = [0, 0], sizes = [1, 32], strides = [1, 1]} : vector<1x128xf32> to vector<1x32xf32>
    %374 = vector.extract_strided_slice %371 {offsets = [0, 32], sizes = [1, 32], strides = [1, 1]} : vector<1x128xf32> to vector<1x32xf32>
    %375 = vector.extract_strided_slice %372 {offsets = [0, 64], sizes = [1, 32], strides = [1, 1]} : vector<1x128xf32> to vector<1x32xf32>
    %376 = vector.extract_strided_slice %371 {offsets = [0, 96], sizes = [1, 32], strides = [1, 1]} : vector<1x128xf32> to vector<1x32xf32>
    %377 = arith.mulf %374, %324 : vector<1x32xf32>
    %378 = arith.mulf %373, %375 : vector<1x32xf32>
    %379 = arith.addf %377, %378 : vector<1x32xf32>
    %380 = math.tanh %379 : vector<1x32xf32>
    %381 = arith.mulf %376, %380 : vector<1x32xf32>
    %382 = tpu.concatenate %344, %381 in 1 : vector<1x32xf32>, vector<1x32xf32> -> vector<1x64xf32>
    %cst_67 = arith.constant dense<0.000000e+00> : vector<1x128xf32>
    %383 = tpu.matmul %382, %5, %cst_67 {dimension_numbers = #tpu.dot_dimension_numbers<[1], [0], [0], [1], [0, 0, 1, 1], [], []>} : vector<1x64xf32>, vector<64x128xf32>, vector<1x128xf32> -> vector<1x128xf32>
    %384 = arith.addf %383, %8 : vector<1x128xf32>
    %385 = arith.negf %384 : vector<1x128xf32>
    %386 = math.exp %385 : vector<1x128xf32>
    %cst_68 = arith.constant 1.000000e+00 : f32
    %387 = vector.broadcast %cst_68 : f32 to vector<1x128xf32>
    %388 = arith.addf %387, %386 : vector<1x128xf32>
    %389 = arith.divf %387, %388 : vector<1x128xf32>
    %390 = math.tanh %384 : vector<1x128xf32>
    %391 = vector.extract_strided_slice %389 {offsets = [0, 0], sizes = [1, 32], strides = [1, 1]} : vector<1x128xf32> to vector<1x32xf32>
    %392 = vector.extract_strided_slice %389 {offsets = [0, 32], sizes = [1, 32], strides = [1, 1]} : vector<1x128xf32> to vector<1x32xf32>
    %393 = vector.extract_strided_slice %390 {offsets = [0, 64], sizes = [1, 32], strides = [1, 1]} : vector<1x128xf32> to vector<1x32xf32>
    %394 = vector.extract_strided_slice %389 {offsets = [0, 96], sizes = [1, 32], strides = [1, 1]} : vector<1x128xf32> to vector<1x32xf32>
    %395 = arith.mulf %392, %342 : vector<1x32xf32>
    %396 = arith.mulf %391, %393 : vector<1x32xf32>
    %397 = arith.addf %395, %396 : vector<1x32xf32>
    %398 = math.tanh %397 : vector<1x32xf32>
    %399 = arith.mulf %394, %398 : vector<1x32xf32>
    %c7 = arith.constant 7 : index
    %c0_69 = arith.constant 0 : index
    %400 = vector.load %arg0[%c7, %c0_69] : memref<8x32xf32, #tpu.memory_space<vmem>>, vector<1x32xf32>
    %401 = tpu.concatenate %363, %400 in 1 : vector<1x32xf32>, vector<1x32xf32> -> vector<1x64xf32>
    %cst_70 = arith.constant dense<0.000000e+00> : vector<1x128xf32>
    %402 = tpu.matmul %401, %1, %cst_70 {dimension_numbers = #tpu.dot_dimension_numbers<[1], [0], [0], [1], [0, 0, 1, 1], [], []>} : vector<1x64xf32>, vector<64x128xf32>, vector<1x128xf32> -> vector<1x128xf32>
    %403 = arith.addf %402, %6 : vector<1x128xf32>
    %404 = arith.negf %403 : vector<1x128xf32>
    %405 = math.exp %404 : vector<1x128xf32>
    %cst_71 = arith.constant 1.000000e+00 : f32
    %406 = vector.broadcast %cst_71 : f32 to vector<1x128xf32>
    %407 = arith.addf %406, %405 : vector<1x128xf32>
    %408 = arith.divf %406, %407 : vector<1x128xf32>
    %409 = math.tanh %403 : vector<1x128xf32>
    %410 = vector.extract_strided_slice %408 {offsets = [0, 0], sizes = [1, 32], strides = [1, 1]} : vector<1x128xf32> to vector<1x32xf32>
    %411 = vector.extract_strided_slice %408 {offsets = [0, 32], sizes = [1, 32], strides = [1, 1]} : vector<1x128xf32> to vector<1x32xf32>
    %412 = vector.extract_strided_slice %409 {offsets = [0, 64], sizes = [1, 32], strides = [1, 1]} : vector<1x128xf32> to vector<1x32xf32>
    %413 = vector.extract_strided_slice %408 {offsets = [0, 96], sizes = [1, 32], strides = [1, 1]} : vector<1x128xf32> to vector<1x32xf32>
    %414 = arith.mulf %411, %361 : vector<1x32xf32>
    %415 = arith.mulf %410, %412 : vector<1x32xf32>
    %416 = arith.addf %414, %415 : vector<1x32xf32>
    %417 = math.tanh %416 : vector<1x32xf32>
    %418 = arith.mulf %413, %417 : vector<1x32xf32>
    %419 = tpu.concatenate %381, %418 in 1 : vector<1x32xf32>, vector<1x32xf32> -> vector<1x64xf32>
    %cst_72 = arith.constant dense<0.000000e+00> : vector<1x128xf32>
    %420 = tpu.matmul %419, %3, %cst_72 {dimension_numbers = #tpu.dot_dimension_numbers<[1], [0], [0], [1], [0, 0, 1, 1], [], []>} : vector<1x64xf32>, vector<64x128xf32>, vector<1x128xf32> -> vector<1x128xf32>
    %421 = arith.addf %420, %7 : vector<1x128xf32>
    %422 = arith.negf %421 : vector<1x128xf32>
    %423 = math.exp %422 : vector<1x128xf32>
    %cst_73 = arith.constant 1.000000e+00 : f32
    %424 = vector.broadcast %cst_73 : f32 to vector<1x128xf32>
    %425 = arith.addf %424, %423 : vector<1x128xf32>
    %426 = arith.divf %424, %425 : vector<1x128xf32>
    %427 = math.tanh %421 : vector<1x128xf32>
    %428 = vector.extract_strided_slice %426 {offsets = [0, 0], sizes = [1, 32], strides = [1, 1]} : vector<1x128xf32> to vector<1x32xf32>
    %429 = vector.extract_strided_slice %426 {offsets = [0, 32], sizes = [1, 32], strides = [1, 1]} : vector<1x128xf32> to vector<1x32xf32>
    %430 = vector.extract_strided_slice %427 {offsets = [0, 64], sizes = [1, 32], strides = [1, 1]} : vector<1x128xf32> to vector<1x32xf32>
    %431 = vector.extract_strided_slice %426 {offsets = [0, 96], sizes = [1, 32], strides = [1, 1]} : vector<1x128xf32> to vector<1x32xf32>
    %432 = arith.mulf %429, %379 : vector<1x32xf32>
    %433 = arith.mulf %428, %430 : vector<1x32xf32>
    %434 = arith.addf %432, %433 : vector<1x32xf32>
    %435 = math.tanh %434 : vector<1x32xf32>
    %436 = arith.mulf %431, %435 : vector<1x32xf32>
    %437 = tpu.concatenate %399, %436 in 1 : vector<1x32xf32>, vector<1x32xf32> -> vector<1x64xf32>
    %cst_74 = arith.constant dense<0.000000e+00> : vector<1x128xf32>
    %438 = tpu.matmul %437, %5, %cst_74 {dimension_numbers = #tpu.dot_dimension_numbers<[1], [0], [0], [1], [0, 0, 1, 1], [], []>} : vector<1x64xf32>, vector<64x128xf32>, vector<1x128xf32> -> vector<1x128xf32>
    %439 = arith.addf %438, %8 : vector<1x128xf32>
    %440 = arith.negf %439 : vector<1x128xf32>
    %441 = math.exp %440 : vector<1x128xf32>
    %cst_75 = arith.constant 1.000000e+00 : f32
    %442 = vector.broadcast %cst_75 : f32 to vector<1x128xf32>
    %443 = arith.addf %442, %441 : vector<1x128xf32>
    %444 = arith.divf %442, %443 : vector<1x128xf32>
    %445 = math.tanh %439 : vector<1x128xf32>
    %446 = vector.extract_strided_slice %444 {offsets = [0, 0], sizes = [1, 32], strides = [1, 1]} : vector<1x128xf32> to vector<1x32xf32>
    %447 = vector.extract_strided_slice %444 {offsets = [0, 32], sizes = [1, 32], strides = [1, 1]} : vector<1x128xf32> to vector<1x32xf32>
    %448 = vector.extract_strided_slice %445 {offsets = [0, 64], sizes = [1, 32], strides = [1, 1]} : vector<1x128xf32> to vector<1x32xf32>
    %449 = vector.extract_strided_slice %444 {offsets = [0, 96], sizes = [1, 32], strides = [1, 1]} : vector<1x128xf32> to vector<1x32xf32>
    %450 = arith.mulf %447, %397 : vector<1x32xf32>
    %451 = arith.mulf %446, %448 : vector<1x32xf32>
    %452 = arith.addf %450, %451 : vector<1x32xf32>
    %453 = math.tanh %452 : vector<1x32xf32>
    %454 = arith.mulf %449, %453 : vector<1x32xf32>
    %c0_76 = arith.constant 0 : index
    %c0_77 = arith.constant 0 : index
    %c0_78 = arith.constant 0 : index
    %455 = vector.load %arg5[%c0_76, %c0_77, %c0_78] : memref<3x64x128xf32, #tpu.memory_space<vmem>>, vector<1x64x128xf32>
    %456 = vector.shape_cast %455 : vector<1x64x128xf32> to vector<64x128xf32>
    %c1_79 = arith.constant 1 : index
    %c0_80 = arith.constant 0 : index
    %c0_81 = arith.constant 0 : index
    %457 = vector.load %arg5[%c1_79, %c0_80, %c0_81] : memref<3x64x128xf32, #tpu.memory_space<vmem>>, vector<1x64x128xf32>
    %458 = vector.shape_cast %457 : vector<1x64x128xf32> to vector<64x128xf32>
    %c2_82 = arith.constant 2 : index
    %c0_83 = arith.constant 0 : index
    %c0_84 = arith.constant 0 : index
    %459 = vector.load %arg5[%c2_82, %c0_83, %c0_84] : memref<3x64x128xf32, #tpu.memory_space<vmem>>, vector<1x64x128xf32>
    %460 = vector.shape_cast %459 : vector<1x64x128xf32> to vector<64x128xf32>
    %c0_85 = arith.constant 0 : index
    %c0_86 = arith.constant 0 : index
    %461 = vector.load %arg6[%c0_85, %c0_86] : memref<3x128xf32, #tpu.memory_space<vmem>>, vector<1x128xf32>
    %c1_87 = arith.constant 1 : index
    %c0_88 = arith.constant 0 : index
    %462 = vector.load %arg6[%c1_87, %c0_88] : memref<3x128xf32, #tpu.memory_space<vmem>>, vector<1x128xf32>
    %c2_89 = arith.constant 2 : index
    %c0_90 = arith.constant 0 : index
    %463 = vector.load %arg6[%c2_89, %c0_90] : memref<3x128xf32, #tpu.memory_space<vmem>>, vector<1x128xf32>
    %c0_91 = arith.constant 0 : index
    %c0_92 = arith.constant 0 : index
    %464 = vector.load %arg7[%c0_91, %c0_92] : memref<96x128xf32, #tpu.memory_space<vmem>>, vector<96x128xf32>
    %c0_93 = arith.constant 0 : index
    %c0_94 = arith.constant 0 : index
    %465 = vector.load %arg8[%c0_93, %c0_94] : memref<1x128xf32, #tpu.memory_space<vmem>>, vector<1x128xf32>
    %c0_95 = arith.constant 0 : index
    %c0_96 = arith.constant 0 : index
    %466 = vector.load %arg9[%c0_95, %c0_96] : memref<1x32xf32, #tpu.memory_space<vmem>>, vector<1x32xf32>
    %c0_97 = arith.constant 0 : index
    %c0_98 = arith.constant 0 : index
    %467 = vector.load %arg10[%c0_97, %c0_98] : memref<1x1xf32, #tpu.memory_space<vmem>>, vector<1x1xf32>
    %468 = tpu.iota {dimensions = array<i32: 1>} : vector<1x6xi32>
    %cst_99 = arith.constant 0.000000e+00 : f32
    %469 = vector.broadcast %cst_99 : f32 to vector<1x6xf32>
    %c0_100 = arith.constant 0 : index
    %c0_101 = arith.constant 0 : index
    %470 = vector.load %arg1[%c0_100, %c0_101] : memref<1x32xf32, #tpu.memory_space<vmem>>, vector<1x32xf32>
    %471 = tpu.concatenate %418, %470 in 1 : vector<1x32xf32>, vector<1x32xf32> -> vector<1x64xf32>
    %cst_102 = arith.constant dense<0.000000e+00> : vector<1x128xf32>
    %472 = tpu.matmul %471, %456, %cst_102 {dimension_numbers = #tpu.dot_dimension_numbers<[1], [0], [0], [1], [0, 0, 1, 1], [], []>} : vector<1x64xf32>, vector<64x128xf32>, vector<1x128xf32> -> vector<1x128xf32>
    %473 = arith.addf %472, %461 : vector<1x128xf32>
    %474 = arith.negf %473 : vector<1x128xf32>
    %475 = math.exp %474 : vector<1x128xf32>
    %cst_103 = arith.constant 1.000000e+00 : f32
    %476 = vector.broadcast %cst_103 : f32 to vector<1x128xf32>
    %477 = arith.addf %476, %475 : vector<1x128xf32>
    %478 = arith.divf %476, %477 : vector<1x128xf32>
    %479 = math.tanh %473 : vector<1x128xf32>
    %480 = vector.extract_strided_slice %478 {offsets = [0, 0], sizes = [1, 32], strides = [1, 1]} : vector<1x128xf32> to vector<1x32xf32>
    %481 = vector.extract_strided_slice %478 {offsets = [0, 32], sizes = [1, 32], strides = [1, 1]} : vector<1x128xf32> to vector<1x32xf32>
    %482 = vector.extract_strided_slice %479 {offsets = [0, 64], sizes = [1, 32], strides = [1, 1]} : vector<1x128xf32> to vector<1x32xf32>
    %483 = vector.extract_strided_slice %478 {offsets = [0, 96], sizes = [1, 32], strides = [1, 1]} : vector<1x128xf32> to vector<1x32xf32>
    %484 = arith.mulf %481, %416 : vector<1x32xf32>
    %485 = arith.mulf %480, %482 : vector<1x32xf32>
    %486 = arith.addf %484, %485 : vector<1x32xf32>
    %487 = math.tanh %486 : vector<1x32xf32>
    %488 = arith.mulf %483, %487 : vector<1x32xf32>
    %489 = tpu.concatenate %436, %488 in 1 : vector<1x32xf32>, vector<1x32xf32> -> vector<1x64xf32>
    %cst_104 = arith.constant dense<0.000000e+00> : vector<1x128xf32>
    %490 = tpu.matmul %489, %458, %cst_104 {dimension_numbers = #tpu.dot_dimension_numbers<[1], [0], [0], [1], [0, 0, 1, 1], [], []>} : vector<1x64xf32>, vector<64x128xf32>, vector<1x128xf32> -> vector<1x128xf32>
    %491 = arith.addf %490, %462 : vector<1x128xf32>
    %492 = arith.negf %491 : vector<1x128xf32>
    %493 = math.exp %492 : vector<1x128xf32>
    %cst_105 = arith.constant 1.000000e+00 : f32
    %494 = vector.broadcast %cst_105 : f32 to vector<1x128xf32>
    %495 = arith.addf %494, %493 : vector<1x128xf32>
    %496 = arith.divf %494, %495 : vector<1x128xf32>
    %497 = math.tanh %491 : vector<1x128xf32>
    %498 = vector.extract_strided_slice %496 {offsets = [0, 0], sizes = [1, 32], strides = [1, 1]} : vector<1x128xf32> to vector<1x32xf32>
    %499 = vector.extract_strided_slice %496 {offsets = [0, 32], sizes = [1, 32], strides = [1, 1]} : vector<1x128xf32> to vector<1x32xf32>
    %500 = vector.extract_strided_slice %497 {offsets = [0, 64], sizes = [1, 32], strides = [1, 1]} : vector<1x128xf32> to vector<1x32xf32>
    %501 = vector.extract_strided_slice %496 {offsets = [0, 96], sizes = [1, 32], strides = [1, 1]} : vector<1x128xf32> to vector<1x32xf32>
    %502 = arith.mulf %499, %434 : vector<1x32xf32>
    %503 = arith.mulf %498, %500 : vector<1x32xf32>
    %504 = arith.addf %502, %503 : vector<1x32xf32>
    %505 = math.tanh %504 : vector<1x32xf32>
    %506 = arith.mulf %501, %505 : vector<1x32xf32>
    %507 = tpu.concatenate %454, %506 in 1 : vector<1x32xf32>, vector<1x32xf32> -> vector<1x64xf32>
    %cst_106 = arith.constant dense<0.000000e+00> : vector<1x128xf32>
    %508 = tpu.matmul %507, %460, %cst_106 {dimension_numbers = #tpu.dot_dimension_numbers<[1], [0], [0], [1], [0, 0, 1, 1], [], []>} : vector<1x64xf32>, vector<64x128xf32>, vector<1x128xf32> -> vector<1x128xf32>
    %509 = arith.addf %508, %463 : vector<1x128xf32>
    %510 = arith.negf %509 : vector<1x128xf32>
    %511 = math.exp %510 : vector<1x128xf32>
    %cst_107 = arith.constant 1.000000e+00 : f32
    %512 = vector.broadcast %cst_107 : f32 to vector<1x128xf32>
    %513 = arith.addf %512, %511 : vector<1x128xf32>
    %514 = arith.divf %512, %513 : vector<1x128xf32>
    %515 = math.tanh %509 : vector<1x128xf32>
    %516 = vector.extract_strided_slice %514 {offsets = [0, 0], sizes = [1, 32], strides = [1, 1]} : vector<1x128xf32> to vector<1x32xf32>
    %517 = vector.extract_strided_slice %514 {offsets = [0, 32], sizes = [1, 32], strides = [1, 1]} : vector<1x128xf32> to vector<1x32xf32>
    %518 = vector.extract_strided_slice %515 {offsets = [0, 64], sizes = [1, 32], strides = [1, 1]} : vector<1x128xf32> to vector<1x32xf32>
    %519 = vector.extract_strided_slice %514 {offsets = [0, 96], sizes = [1, 32], strides = [1, 1]} : vector<1x128xf32> to vector<1x32xf32>
    %520 = arith.mulf %517, %452 : vector<1x32xf32>
    %521 = arith.mulf %516, %518 : vector<1x32xf32>
    %522 = arith.addf %520, %521 : vector<1x32xf32>
    %523 = math.tanh %522 : vector<1x32xf32>
    %524 = arith.mulf %519, %523 : vector<1x32xf32>
    %525 = arith.mulf %524, %466 : vector<1x32xf32>
    %cst_108 = arith.constant dense<0.000000e+00> : vector<1xf32>
    %526 = vector.multi_reduction <add>, %525, %cst_108 [1] : vector<1x32xf32> to vector<1xf32>
    %527 = vector.shape_cast %526 : vector<1xf32> to vector<1x1xf32>
    %528 = arith.addf %527, %467 : vector<1x1xf32>
    %c0_i32 = arith.constant 0 : i32
    %529 = vector.broadcast %c0_i32 : i32 to vector<1x6xi32>
    %530 = arith.cmpi eq, %468, %529 : vector<1x6xi32>
    %531 = vector.shape_cast %528 : vector<1x1xf32> to vector<1x1xf32>
    %532 = vector.broadcast %531 : vector<1x1xf32> to vector<1x6xf32>
    %533 = arith.select %530, %532, %469 : vector<1x6xi1>, vector<1x6xf32>
    %c1_109 = arith.constant 1 : index
    %c0_110 = arith.constant 0 : index
    %534 = vector.load %arg2[%c1_109, %c0_110] : memref<6x32xf32, #tpu.memory_space<vmem>>, vector<1x32xf32>
    %535 = tpu.concatenate %488, %534, %524 in 1 : vector<1x32xf32>, vector<1x32xf32>, vector<1x32xf32> -> vector<1x96xf32>
    %cst_111 = arith.constant dense<0.000000e+00> : vector<1x128xf32>
    %536 = tpu.matmul %535, %464, %cst_111 {dimension_numbers = #tpu.dot_dimension_numbers<[1], [0], [0], [1], [0, 0, 1, 1], [], []>} : vector<1x96xf32>, vector<96x128xf32>, vector<1x128xf32> -> vector<1x128xf32>
    %537 = arith.addf %536, %465 : vector<1x128xf32>
    %538 = arith.negf %537 : vector<1x128xf32>
    %539 = math.exp %538 : vector<1x128xf32>
    %cst_112 = arith.constant 1.000000e+00 : f32
    %540 = vector.broadcast %cst_112 : f32 to vector<1x128xf32>
    %541 = arith.addf %540, %539 : vector<1x128xf32>
    %542 = arith.divf %540, %541 : vector<1x128xf32>
    %543 = math.tanh %537 : vector<1x128xf32>
    %544 = vector.extract_strided_slice %542 {offsets = [0, 0], sizes = [1, 32], strides = [1, 1]} : vector<1x128xf32> to vector<1x32xf32>
    %545 = vector.extract_strided_slice %542 {offsets = [0, 32], sizes = [1, 32], strides = [1, 1]} : vector<1x128xf32> to vector<1x32xf32>
    %546 = vector.extract_strided_slice %543 {offsets = [0, 64], sizes = [1, 32], strides = [1, 1]} : vector<1x128xf32> to vector<1x32xf32>
    %547 = vector.extract_strided_slice %542 {offsets = [0, 96], sizes = [1, 32], strides = [1, 1]} : vector<1x128xf32> to vector<1x32xf32>
    %548 = arith.mulf %545, %486 : vector<1x32xf32>
    %549 = arith.mulf %544, %546 : vector<1x32xf32>
    %550 = arith.addf %548, %549 : vector<1x32xf32>
    %551 = math.tanh %550 : vector<1x32xf32>
    %552 = arith.mulf %547, %551 : vector<1x32xf32>
    %553 = tpu.concatenate %506, %552 in 1 : vector<1x32xf32>, vector<1x32xf32> -> vector<1x64xf32>
    %cst_113 = arith.constant dense<0.000000e+00> : vector<1x128xf32>
    %554 = tpu.matmul %553, %458, %cst_113 {dimension_numbers = #tpu.dot_dimension_numbers<[1], [0], [0], [1], [0, 0, 1, 1], [], []>} : vector<1x64xf32>, vector<64x128xf32>, vector<1x128xf32> -> vector<1x128xf32>
    %555 = arith.addf %554, %462 : vector<1x128xf32>
    %556 = arith.negf %555 : vector<1x128xf32>
    %557 = math.exp %556 : vector<1x128xf32>
    %cst_114 = arith.constant 1.000000e+00 : f32
    %558 = vector.broadcast %cst_114 : f32 to vector<1x128xf32>
    %559 = arith.addf %558, %557 : vector<1x128xf32>
    %560 = arith.divf %558, %559 : vector<1x128xf32>
    %561 = math.tanh %555 : vector<1x128xf32>
    %562 = vector.extract_strided_slice %560 {offsets = [0, 0], sizes = [1, 32], strides = [1, 1]} : vector<1x128xf32> to vector<1x32xf32>
    %563 = vector.extract_strided_slice %560 {offsets = [0, 32], sizes = [1, 32], strides = [1, 1]} : vector<1x128xf32> to vector<1x32xf32>
    %564 = vector.extract_strided_slice %561 {offsets = [0, 64], sizes = [1, 32], strides = [1, 1]} : vector<1x128xf32> to vector<1x32xf32>
    %565 = vector.extract_strided_slice %560 {offsets = [0, 96], sizes = [1, 32], strides = [1, 1]} : vector<1x128xf32> to vector<1x32xf32>
    %566 = arith.mulf %563, %504 : vector<1x32xf32>
    %567 = arith.mulf %562, %564 : vector<1x32xf32>
    %568 = arith.addf %566, %567 : vector<1x32xf32>
    %569 = math.tanh %568 : vector<1x32xf32>
    %570 = arith.mulf %565, %569 : vector<1x32xf32>
    %571 = tpu.concatenate %524, %570 in 1 : vector<1x32xf32>, vector<1x32xf32> -> vector<1x64xf32>
    %cst_115 = arith.constant dense<0.000000e+00> : vector<1x128xf32>
    %572 = tpu.matmul %571, %460, %cst_115 {dimension_numbers = #tpu.dot_dimension_numbers<[1], [0], [0], [1], [0, 0, 1, 1], [], []>} : vector<1x64xf32>, vector<64x128xf32>, vector<1x128xf32> -> vector<1x128xf32>
    %573 = arith.addf %572, %463 : vector<1x128xf32>
    %574 = arith.negf %573 : vector<1x128xf32>
    %575 = math.exp %574 : vector<1x128xf32>
    %cst_116 = arith.constant 1.000000e+00 : f32
    %576 = vector.broadcast %cst_116 : f32 to vector<1x128xf32>
    %577 = arith.addf %576, %575 : vector<1x128xf32>
    %578 = arith.divf %576, %577 : vector<1x128xf32>
    %579 = math.tanh %573 : vector<1x128xf32>
    %580 = vector.extract_strided_slice %578 {offsets = [0, 0], sizes = [1, 32], strides = [1, 1]} : vector<1x128xf32> to vector<1x32xf32>
    %581 = vector.extract_strided_slice %578 {offsets = [0, 32], sizes = [1, 32], strides = [1, 1]} : vector<1x128xf32> to vector<1x32xf32>
    %582 = vector.extract_strided_slice %579 {offsets = [0, 64], sizes = [1, 32], strides = [1, 1]} : vector<1x128xf32> to vector<1x32xf32>
    %583 = vector.extract_strided_slice %578 {offsets = [0, 96], sizes = [1, 32], strides = [1, 1]} : vector<1x128xf32> to vector<1x32xf32>
    %584 = arith.mulf %581, %522 : vector<1x32xf32>
    %585 = arith.mulf %580, %582 : vector<1x32xf32>
    %586 = arith.addf %584, %585 : vector<1x32xf32>
    %587 = math.tanh %586 : vector<1x32xf32>
    %588 = arith.mulf %583, %587 : vector<1x32xf32>
    %589 = arith.mulf %588, %466 : vector<1x32xf32>
    %cst_117 = arith.constant dense<0.000000e+00> : vector<1xf32>
    %590 = vector.multi_reduction <add>, %589, %cst_117 [1] : vector<1x32xf32> to vector<1xf32>
    %591 = vector.shape_cast %590 : vector<1xf32> to vector<1x1xf32>
    %592 = arith.addf %591, %467 : vector<1x1xf32>
    %c1_i32 = arith.constant 1 : i32
    %593 = vector.broadcast %c1_i32 : i32 to vector<1x6xi32>
    %594 = arith.cmpi eq, %468, %593 : vector<1x6xi32>
    %595 = vector.shape_cast %592 : vector<1x1xf32> to vector<1x1xf32>
    %596 = vector.broadcast %595 : vector<1x1xf32> to vector<1x6xf32>
    %597 = arith.select %594, %596, %533 : vector<1x6xi1>, vector<1x6xf32>
    %c2_118 = arith.constant 2 : index
    %c0_119 = arith.constant 0 : index
    %598 = vector.load %arg2[%c2_118, %c0_119] : memref<6x32xf32, #tpu.memory_space<vmem>>, vector<1x32xf32>
    %599 = tpu.concatenate %552, %598, %588 in 1 : vector<1x32xf32>, vector<1x32xf32>, vector<1x32xf32> -> vector<1x96xf32>
    %cst_120 = arith.constant dense<0.000000e+00> : vector<1x128xf32>
    %600 = tpu.matmul %599, %464, %cst_120 {dimension_numbers = #tpu.dot_dimension_numbers<[1], [0], [0], [1], [0, 0, 1, 1], [], []>} : vector<1x96xf32>, vector<96x128xf32>, vector<1x128xf32> -> vector<1x128xf32>
    %601 = arith.addf %600, %465 : vector<1x128xf32>
    %602 = arith.negf %601 : vector<1x128xf32>
    %603 = math.exp %602 : vector<1x128xf32>
    %cst_121 = arith.constant 1.000000e+00 : f32
    %604 = vector.broadcast %cst_121 : f32 to vector<1x128xf32>
    %605 = arith.addf %604, %603 : vector<1x128xf32>
    %606 = arith.divf %604, %605 : vector<1x128xf32>
    %607 = math.tanh %601 : vector<1x128xf32>
    %608 = vector.extract_strided_slice %606 {offsets = [0, 0], sizes = [1, 32], strides = [1, 1]} : vector<1x128xf32> to vector<1x32xf32>
    %609 = vector.extract_strided_slice %606 {offsets = [0, 32], sizes = [1, 32], strides = [1, 1]} : vector<1x128xf32> to vector<1x32xf32>
    %610 = vector.extract_strided_slice %607 {offsets = [0, 64], sizes = [1, 32], strides = [1, 1]} : vector<1x128xf32> to vector<1x32xf32>
    %611 = vector.extract_strided_slice %606 {offsets = [0, 96], sizes = [1, 32], strides = [1, 1]} : vector<1x128xf32> to vector<1x32xf32>
    %612 = arith.mulf %609, %550 : vector<1x32xf32>
    %613 = arith.mulf %608, %610 : vector<1x32xf32>
    %614 = arith.addf %612, %613 : vector<1x32xf32>
    %615 = math.tanh %614 : vector<1x32xf32>
    %616 = arith.mulf %611, %615 : vector<1x32xf32>
    %617 = tpu.concatenate %570, %616 in 1 : vector<1x32xf32>, vector<1x32xf32> -> vector<1x64xf32>
    %cst_122 = arith.constant dense<0.000000e+00> : vector<1x128xf32>
    %618 = tpu.matmul %617, %458, %cst_122 {dimension_numbers = #tpu.dot_dimension_numbers<[1], [0], [0], [1], [0, 0, 1, 1], [], []>} : vector<1x64xf32>, vector<64x128xf32>, vector<1x128xf32> -> vector<1x128xf32>
    %619 = arith.addf %618, %462 : vector<1x128xf32>
    %620 = arith.negf %619 : vector<1x128xf32>
    %621 = math.exp %620 : vector<1x128xf32>
    %cst_123 = arith.constant 1.000000e+00 : f32
    %622 = vector.broadcast %cst_123 : f32 to vector<1x128xf32>
    %623 = arith.addf %622, %621 : vector<1x128xf32>
    %624 = arith.divf %622, %623 : vector<1x128xf32>
    %625 = math.tanh %619 : vector<1x128xf32>
    %626 = vector.extract_strided_slice %624 {offsets = [0, 0], sizes = [1, 32], strides = [1, 1]} : vector<1x128xf32> to vector<1x32xf32>
    %627 = vector.extract_strided_slice %624 {offsets = [0, 32], sizes = [1, 32], strides = [1, 1]} : vector<1x128xf32> to vector<1x32xf32>
    %628 = vector.extract_strided_slice %625 {offsets = [0, 64], sizes = [1, 32], strides = [1, 1]} : vector<1x128xf32> to vector<1x32xf32>
    %629 = vector.extract_strided_slice %624 {offsets = [0, 96], sizes = [1, 32], strides = [1, 1]} : vector<1x128xf32> to vector<1x32xf32>
    %630 = arith.mulf %627, %568 : vector<1x32xf32>
    %631 = arith.mulf %626, %628 : vector<1x32xf32>
    %632 = arith.addf %630, %631 : vector<1x32xf32>
    %633 = math.tanh %632 : vector<1x32xf32>
    %634 = arith.mulf %629, %633 : vector<1x32xf32>
    %635 = tpu.concatenate %588, %634 in 1 : vector<1x32xf32>, vector<1x32xf32> -> vector<1x64xf32>
    %cst_124 = arith.constant dense<0.000000e+00> : vector<1x128xf32>
    %636 = tpu.matmul %635, %460, %cst_124 {dimension_numbers = #tpu.dot_dimension_numbers<[1], [0], [0], [1], [0, 0, 1, 1], [], []>} : vector<1x64xf32>, vector<64x128xf32>, vector<1x128xf32> -> vector<1x128xf32>
    %637 = arith.addf %636, %463 : vector<1x128xf32>
    %638 = arith.negf %637 : vector<1x128xf32>
    %639 = math.exp %638 : vector<1x128xf32>
    %cst_125 = arith.constant 1.000000e+00 : f32
    %640 = vector.broadcast %cst_125 : f32 to vector<1x128xf32>
    %641 = arith.addf %640, %639 : vector<1x128xf32>
    %642 = arith.divf %640, %641 : vector<1x128xf32>
    %643 = math.tanh %637 : vector<1x128xf32>
    %644 = vector.extract_strided_slice %642 {offsets = [0, 0], sizes = [1, 32], strides = [1, 1]} : vector<1x128xf32> to vector<1x32xf32>
    %645 = vector.extract_strided_slice %642 {offsets = [0, 32], sizes = [1, 32], strides = [1, 1]} : vector<1x128xf32> to vector<1x32xf32>
    %646 = vector.extract_strided_slice %643 {offsets = [0, 64], sizes = [1, 32], strides = [1, 1]} : vector<1x128xf32> to vector<1x32xf32>
    %647 = vector.extract_strided_slice %642 {offsets = [0, 96], sizes = [1, 32], strides = [1, 1]} : vector<1x128xf32> to vector<1x32xf32>
    %648 = arith.mulf %645, %586 : vector<1x32xf32>
    %649 = arith.mulf %644, %646 : vector<1x32xf32>
    %650 = arith.addf %648, %649 : vector<1x32xf32>
    %651 = math.tanh %650 : vector<1x32xf32>
    %652 = arith.mulf %647, %651 : vector<1x32xf32>
    %653 = arith.mulf %652, %466 : vector<1x32xf32>
    %cst_126 = arith.constant dense<0.000000e+00> : vector<1xf32>
    %654 = vector.multi_reduction <add>, %653, %cst_126 [1] : vector<1x32xf32> to vector<1xf32>
    %655 = vector.shape_cast %654 : vector<1xf32> to vector<1x1xf32>
    %656 = arith.addf %655, %467 : vector<1x1xf32>
    %c2_i32 = arith.constant 2 : i32
    %657 = vector.broadcast %c2_i32 : i32 to vector<1x6xi32>
    %658 = arith.cmpi eq, %468, %657 : vector<1x6xi32>
    %659 = vector.shape_cast %656 : vector<1x1xf32> to vector<1x1xf32>
    %660 = vector.broadcast %659 : vector<1x1xf32> to vector<1x6xf32>
    %661 = arith.select %658, %660, %597 : vector<1x6xi1>, vector<1x6xf32>
    %c3_127 = arith.constant 3 : index
    %c0_128 = arith.constant 0 : index
    %662 = vector.load %arg2[%c3_127, %c0_128] : memref<6x32xf32, #tpu.memory_space<vmem>>, vector<1x32xf32>
    %663 = tpu.concatenate %616, %662, %652 in 1 : vector<1x32xf32>, vector<1x32xf32>, vector<1x32xf32> -> vector<1x96xf32>
    %cst_129 = arith.constant dense<0.000000e+00> : vector<1x128xf32>
    %664 = tpu.matmul %663, %464, %cst_129 {dimension_numbers = #tpu.dot_dimension_numbers<[1], [0], [0], [1], [0, 0, 1, 1], [], []>} : vector<1x96xf32>, vector<96x128xf32>, vector<1x128xf32> -> vector<1x128xf32>
    %665 = arith.addf %664, %465 : vector<1x128xf32>
    %666 = arith.negf %665 : vector<1x128xf32>
    %667 = math.exp %666 : vector<1x128xf32>
    %cst_130 = arith.constant 1.000000e+00 : f32
    %668 = vector.broadcast %cst_130 : f32 to vector<1x128xf32>
    %669 = arith.addf %668, %667 : vector<1x128xf32>
    %670 = arith.divf %668, %669 : vector<1x128xf32>
    %671 = math.tanh %665 : vector<1x128xf32>
    %672 = vector.extract_strided_slice %670 {offsets = [0, 0], sizes = [1, 32], strides = [1, 1]} : vector<1x128xf32> to vector<1x32xf32>
    %673 = vector.extract_strided_slice %670 {offsets = [0, 32], sizes = [1, 32], strides = [1, 1]} : vector<1x128xf32> to vector<1x32xf32>
    %674 = vector.extract_strided_slice %671 {offsets = [0, 64], sizes = [1, 32], strides = [1, 1]} : vector<1x128xf32> to vector<1x32xf32>
    %675 = vector.extract_strided_slice %670 {offsets = [0, 96], sizes = [1, 32], strides = [1, 1]} : vector<1x128xf32> to vector<1x32xf32>
    %676 = arith.mulf %673, %614 : vector<1x32xf32>
    %677 = arith.mulf %672, %674 : vector<1x32xf32>
    %678 = arith.addf %676, %677 : vector<1x32xf32>
    %679 = math.tanh %678 : vector<1x32xf32>
    %680 = arith.mulf %675, %679 : vector<1x32xf32>
    %681 = tpu.concatenate %634, %680 in 1 : vector<1x32xf32>, vector<1x32xf32> -> vector<1x64xf32>
    %cst_131 = arith.constant dense<0.000000e+00> : vector<1x128xf32>
    %682 = tpu.matmul %681, %458, %cst_131 {dimension_numbers = #tpu.dot_dimension_numbers<[1], [0], [0], [1], [0, 0, 1, 1], [], []>} : vector<1x64xf32>, vector<64x128xf32>, vector<1x128xf32> -> vector<1x128xf32>
    %683 = arith.addf %682, %462 : vector<1x128xf32>
    %684 = arith.negf %683 : vector<1x128xf32>
    %685 = math.exp %684 : vector<1x128xf32>
    %cst_132 = arith.constant 1.000000e+00 : f32
    %686 = vector.broadcast %cst_132 : f32 to vector<1x128xf32>
    %687 = arith.addf %686, %685 : vector<1x128xf32>
    %688 = arith.divf %686, %687 : vector<1x128xf32>
    %689 = math.tanh %683 : vector<1x128xf32>
    %690 = vector.extract_strided_slice %688 {offsets = [0, 0], sizes = [1, 32], strides = [1, 1]} : vector<1x128xf32> to vector<1x32xf32>
    %691 = vector.extract_strided_slice %688 {offsets = [0, 32], sizes = [1, 32], strides = [1, 1]} : vector<1x128xf32> to vector<1x32xf32>
    %692 = vector.extract_strided_slice %689 {offsets = [0, 64], sizes = [1, 32], strides = [1, 1]} : vector<1x128xf32> to vector<1x32xf32>
    %693 = vector.extract_strided_slice %688 {offsets = [0, 96], sizes = [1, 32], strides = [1, 1]} : vector<1x128xf32> to vector<1x32xf32>
    %694 = arith.mulf %691, %632 : vector<1x32xf32>
    %695 = arith.mulf %690, %692 : vector<1x32xf32>
    %696 = arith.addf %694, %695 : vector<1x32xf32>
    %697 = math.tanh %696 : vector<1x32xf32>
    %698 = arith.mulf %693, %697 : vector<1x32xf32>
    %699 = tpu.concatenate %652, %698 in 1 : vector<1x32xf32>, vector<1x32xf32> -> vector<1x64xf32>
    %cst_133 = arith.constant dense<0.000000e+00> : vector<1x128xf32>
    %700 = tpu.matmul %699, %460, %cst_133 {dimension_numbers = #tpu.dot_dimension_numbers<[1], [0], [0], [1], [0, 0, 1, 1], [], []>} : vector<1x64xf32>, vector<64x128xf32>, vector<1x128xf32> -> vector<1x128xf32>
    %701 = arith.addf %700, %463 : vector<1x128xf32>
    %702 = arith.negf %701 : vector<1x128xf32>
    %703 = math.exp %702 : vector<1x128xf32>
    %cst_134 = arith.constant 1.000000e+00 : f32
    %704 = vector.broadcast %cst_134 : f32 to vector<1x128xf32>
    %705 = arith.addf %704, %703 : vector<1x128xf32>
    %706 = arith.divf %704, %705 : vector<1x128xf32>
    %707 = math.tanh %701 : vector<1x128xf32>
    %708 = vector.extract_strided_slice %706 {offsets = [0, 0], sizes = [1, 32], strides = [1, 1]} : vector<1x128xf32> to vector<1x32xf32>
    %709 = vector.extract_strided_slice %706 {offsets = [0, 32], sizes = [1, 32], strides = [1, 1]} : vector<1x128xf32> to vector<1x32xf32>
    %710 = vector.extract_strided_slice %707 {offsets = [0, 64], sizes = [1, 32], strides = [1, 1]} : vector<1x128xf32> to vector<1x32xf32>
    %711 = vector.extract_strided_slice %706 {offsets = [0, 96], sizes = [1, 32], strides = [1, 1]} : vector<1x128xf32> to vector<1x32xf32>
    %712 = arith.mulf %709, %650 : vector<1x32xf32>
    %713 = arith.mulf %708, %710 : vector<1x32xf32>
    %714 = arith.addf %712, %713 : vector<1x32xf32>
    %715 = math.tanh %714 : vector<1x32xf32>
    %716 = arith.mulf %711, %715 : vector<1x32xf32>
    %717 = arith.mulf %716, %466 : vector<1x32xf32>
    %cst_135 = arith.constant dense<0.000000e+00> : vector<1xf32>
    %718 = vector.multi_reduction <add>, %717, %cst_135 [1] : vector<1x32xf32> to vector<1xf32>
    %719 = vector.shape_cast %718 : vector<1xf32> to vector<1x1xf32>
    %720 = arith.addf %719, %467 : vector<1x1xf32>
    %c3_i32 = arith.constant 3 : i32
    %721 = vector.broadcast %c3_i32 : i32 to vector<1x6xi32>
    %722 = arith.cmpi eq, %468, %721 : vector<1x6xi32>
    %723 = vector.shape_cast %720 : vector<1x1xf32> to vector<1x1xf32>
    %724 = vector.broadcast %723 : vector<1x1xf32> to vector<1x6xf32>
    %725 = arith.select %722, %724, %661 : vector<1x6xi1>, vector<1x6xf32>
    %c4_136 = arith.constant 4 : index
    %c0_137 = arith.constant 0 : index
    %726 = vector.load %arg2[%c4_136, %c0_137] : memref<6x32xf32, #tpu.memory_space<vmem>>, vector<1x32xf32>
    %727 = tpu.concatenate %680, %726, %716 in 1 : vector<1x32xf32>, vector<1x32xf32>, vector<1x32xf32> -> vector<1x96xf32>
    %cst_138 = arith.constant dense<0.000000e+00> : vector<1x128xf32>
    %728 = tpu.matmul %727, %464, %cst_138 {dimension_numbers = #tpu.dot_dimension_numbers<[1], [0], [0], [1], [0, 0, 1, 1], [], []>} : vector<1x96xf32>, vector<96x128xf32>, vector<1x128xf32> -> vector<1x128xf32>
    %729 = arith.addf %728, %465 : vector<1x128xf32>
    %730 = arith.negf %729 : vector<1x128xf32>
    %731 = math.exp %730 : vector<1x128xf32>
    %cst_139 = arith.constant 1.000000e+00 : f32
    %732 = vector.broadcast %cst_139 : f32 to vector<1x128xf32>
    %733 = arith.addf %732, %731 : vector<1x128xf32>
    %734 = arith.divf %732, %733 : vector<1x128xf32>
    %735 = math.tanh %729 : vector<1x128xf32>
    %736 = vector.extract_strided_slice %734 {offsets = [0, 0], sizes = [1, 32], strides = [1, 1]} : vector<1x128xf32> to vector<1x32xf32>
    %737 = vector.extract_strided_slice %734 {offsets = [0, 32], sizes = [1, 32], strides = [1, 1]} : vector<1x128xf32> to vector<1x32xf32>
    %738 = vector.extract_strided_slice %735 {offsets = [0, 64], sizes = [1, 32], strides = [1, 1]} : vector<1x128xf32> to vector<1x32xf32>
    %739 = vector.extract_strided_slice %734 {offsets = [0, 96], sizes = [1, 32], strides = [1, 1]} : vector<1x128xf32> to vector<1x32xf32>
    %740 = arith.mulf %737, %678 : vector<1x32xf32>
    %741 = arith.mulf %736, %738 : vector<1x32xf32>
    %742 = arith.addf %740, %741 : vector<1x32xf32>
    %743 = math.tanh %742 : vector<1x32xf32>
    %744 = arith.mulf %739, %743 : vector<1x32xf32>
    %745 = tpu.concatenate %698, %744 in 1 : vector<1x32xf32>, vector<1x32xf32> -> vector<1x64xf32>
    %cst_140 = arith.constant dense<0.000000e+00> : vector<1x128xf32>
    %746 = tpu.matmul %745, %458, %cst_140 {dimension_numbers = #tpu.dot_dimension_numbers<[1], [0], [0], [1], [0, 0, 1, 1], [], []>} : vector<1x64xf32>, vector<64x128xf32>, vector<1x128xf32> -> vector<1x128xf32>
    %747 = arith.addf %746, %462 : vector<1x128xf32>
    %748 = arith.negf %747 : vector<1x128xf32>
    %749 = math.exp %748 : vector<1x128xf32>
    %cst_141 = arith.constant 1.000000e+00 : f32
    %750 = vector.broadcast %cst_141 : f32 to vector<1x128xf32>
    %751 = arith.addf %750, %749 : vector<1x128xf32>
    %752 = arith.divf %750, %751 : vector<1x128xf32>
    %753 = math.tanh %747 : vector<1x128xf32>
    %754 = vector.extract_strided_slice %752 {offsets = [0, 0], sizes = [1, 32], strides = [1, 1]} : vector<1x128xf32> to vector<1x32xf32>
    %755 = vector.extract_strided_slice %752 {offsets = [0, 32], sizes = [1, 32], strides = [1, 1]} : vector<1x128xf32> to vector<1x32xf32>
    %756 = vector.extract_strided_slice %753 {offsets = [0, 64], sizes = [1, 32], strides = [1, 1]} : vector<1x128xf32> to vector<1x32xf32>
    %757 = vector.extract_strided_slice %752 {offsets = [0, 96], sizes = [1, 32], strides = [1, 1]} : vector<1x128xf32> to vector<1x32xf32>
    %758 = arith.mulf %755, %696 : vector<1x32xf32>
    %759 = arith.mulf %754, %756 : vector<1x32xf32>
    %760 = arith.addf %758, %759 : vector<1x32xf32>
    %761 = math.tanh %760 : vector<1x32xf32>
    %762 = arith.mulf %757, %761 : vector<1x32xf32>
    %763 = tpu.concatenate %716, %762 in 1 : vector<1x32xf32>, vector<1x32xf32> -> vector<1x64xf32>
    %cst_142 = arith.constant dense<0.000000e+00> : vector<1x128xf32>
    %764 = tpu.matmul %763, %460, %cst_142 {dimension_numbers = #tpu.dot_dimension_numbers<[1], [0], [0], [1], [0, 0, 1, 1], [], []>} : vector<1x64xf32>, vector<64x128xf32>, vector<1x128xf32> -> vector<1x128xf32>
    %765 = arith.addf %764, %463 : vector<1x128xf32>
    %766 = arith.negf %765 : vector<1x128xf32>
    %767 = math.exp %766 : vector<1x128xf32>
    %cst_143 = arith.constant 1.000000e+00 : f32
    %768 = vector.broadcast %cst_143 : f32 to vector<1x128xf32>
    %769 = arith.addf %768, %767 : vector<1x128xf32>
    %770 = arith.divf %768, %769 : vector<1x128xf32>
    %771 = math.tanh %765 : vector<1x128xf32>
    %772 = vector.extract_strided_slice %770 {offsets = [0, 0], sizes = [1, 32], strides = [1, 1]} : vector<1x128xf32> to vector<1x32xf32>
    %773 = vector.extract_strided_slice %770 {offsets = [0, 32], sizes = [1, 32], strides = [1, 1]} : vector<1x128xf32> to vector<1x32xf32>
    %774 = vector.extract_strided_slice %771 {offsets = [0, 64], sizes = [1, 32], strides = [1, 1]} : vector<1x128xf32> to vector<1x32xf32>
    %775 = vector.extract_strided_slice %770 {offsets = [0, 96], sizes = [1, 32], strides = [1, 1]} : vector<1x128xf32> to vector<1x32xf32>
    %776 = arith.mulf %773, %714 : vector<1x32xf32>
    %777 = arith.mulf %772, %774 : vector<1x32xf32>
    %778 = arith.addf %776, %777 : vector<1x32xf32>
    %779 = math.tanh %778 : vector<1x32xf32>
    %780 = arith.mulf %775, %779 : vector<1x32xf32>
    %781 = arith.mulf %780, %466 : vector<1x32xf32>
    %cst_144 = arith.constant dense<0.000000e+00> : vector<1xf32>
    %782 = vector.multi_reduction <add>, %781, %cst_144 [1] : vector<1x32xf32> to vector<1xf32>
    %783 = vector.shape_cast %782 : vector<1xf32> to vector<1x1xf32>
    %784 = arith.addf %783, %467 : vector<1x1xf32>
    %c4_i32 = arith.constant 4 : i32
    %785 = vector.broadcast %c4_i32 : i32 to vector<1x6xi32>
    %786 = arith.cmpi eq, %468, %785 : vector<1x6xi32>
    %787 = vector.shape_cast %784 : vector<1x1xf32> to vector<1x1xf32>
    %788 = vector.broadcast %787 : vector<1x1xf32> to vector<1x6xf32>
    %789 = arith.select %786, %788, %725 : vector<1x6xi1>, vector<1x6xf32>
    %c5_145 = arith.constant 5 : index
    %c0_146 = arith.constant 0 : index
    %790 = vector.load %arg2[%c5_145, %c0_146] : memref<6x32xf32, #tpu.memory_space<vmem>>, vector<1x32xf32>
    %791 = tpu.concatenate %744, %790, %780 in 1 : vector<1x32xf32>, vector<1x32xf32>, vector<1x32xf32> -> vector<1x96xf32>
    %cst_147 = arith.constant dense<0.000000e+00> : vector<1x128xf32>
    %792 = tpu.matmul %791, %464, %cst_147 {dimension_numbers = #tpu.dot_dimension_numbers<[1], [0], [0], [1], [0, 0, 1, 1], [], []>} : vector<1x96xf32>, vector<96x128xf32>, vector<1x128xf32> -> vector<1x128xf32>
    %793 = arith.addf %792, %465 : vector<1x128xf32>
    %794 = arith.negf %793 : vector<1x128xf32>
    %795 = math.exp %794 : vector<1x128xf32>
    %cst_148 = arith.constant 1.000000e+00 : f32
    %796 = vector.broadcast %cst_148 : f32 to vector<1x128xf32>
    %797 = arith.addf %796, %795 : vector<1x128xf32>
    %798 = arith.divf %796, %797 : vector<1x128xf32>
    %799 = math.tanh %793 : vector<1x128xf32>
    %800 = vector.extract_strided_slice %798 {offsets = [0, 0], sizes = [1, 32], strides = [1, 1]} : vector<1x128xf32> to vector<1x32xf32>
    %801 = vector.extract_strided_slice %798 {offsets = [0, 32], sizes = [1, 32], strides = [1, 1]} : vector<1x128xf32> to vector<1x32xf32>
    %802 = vector.extract_strided_slice %799 {offsets = [0, 64], sizes = [1, 32], strides = [1, 1]} : vector<1x128xf32> to vector<1x32xf32>
    %803 = vector.extract_strided_slice %798 {offsets = [0, 96], sizes = [1, 32], strides = [1, 1]} : vector<1x128xf32> to vector<1x32xf32>
    %804 = arith.mulf %801, %742 : vector<1x32xf32>
    %805 = arith.mulf %800, %802 : vector<1x32xf32>
    %806 = arith.addf %804, %805 : vector<1x32xf32>
    %807 = math.tanh %806 : vector<1x32xf32>
    %808 = arith.mulf %803, %807 : vector<1x32xf32>
    %809 = tpu.concatenate %762, %808 in 1 : vector<1x32xf32>, vector<1x32xf32> -> vector<1x64xf32>
    %cst_149 = arith.constant dense<0.000000e+00> : vector<1x128xf32>
    %810 = tpu.matmul %809, %458, %cst_149 {dimension_numbers = #tpu.dot_dimension_numbers<[1], [0], [0], [1], [0, 0, 1, 1], [], []>} : vector<1x64xf32>, vector<64x128xf32>, vector<1x128xf32> -> vector<1x128xf32>
    %811 = arith.addf %810, %462 : vector<1x128xf32>
    %812 = arith.negf %811 : vector<1x128xf32>
    %813 = math.exp %812 : vector<1x128xf32>
    %cst_150 = arith.constant 1.000000e+00 : f32
    %814 = vector.broadcast %cst_150 : f32 to vector<1x128xf32>
    %815 = arith.addf %814, %813 : vector<1x128xf32>
    %816 = arith.divf %814, %815 : vector<1x128xf32>
    %817 = math.tanh %811 : vector<1x128xf32>
    %818 = vector.extract_strided_slice %816 {offsets = [0, 0], sizes = [1, 32], strides = [1, 1]} : vector<1x128xf32> to vector<1x32xf32>
    %819 = vector.extract_strided_slice %816 {offsets = [0, 32], sizes = [1, 32], strides = [1, 1]} : vector<1x128xf32> to vector<1x32xf32>
    %820 = vector.extract_strided_slice %817 {offsets = [0, 64], sizes = [1, 32], strides = [1, 1]} : vector<1x128xf32> to vector<1x32xf32>
    %821 = vector.extract_strided_slice %816 {offsets = [0, 96], sizes = [1, 32], strides = [1, 1]} : vector<1x128xf32> to vector<1x32xf32>
    %822 = arith.mulf %819, %760 : vector<1x32xf32>
    %823 = arith.mulf %818, %820 : vector<1x32xf32>
    %824 = arith.addf %822, %823 : vector<1x32xf32>
    %825 = math.tanh %824 : vector<1x32xf32>
    %826 = arith.mulf %821, %825 : vector<1x32xf32>
    %827 = tpu.concatenate %780, %826 in 1 : vector<1x32xf32>, vector<1x32xf32> -> vector<1x64xf32>
    %cst_151 = arith.constant dense<0.000000e+00> : vector<1x128xf32>
    %828 = tpu.matmul %827, %460, %cst_151 {dimension_numbers = #tpu.dot_dimension_numbers<[1], [0], [0], [1], [0, 0, 1, 1], [], []>} : vector<1x64xf32>, vector<64x128xf32>, vector<1x128xf32> -> vector<1x128xf32>
    %829 = arith.addf %828, %463 : vector<1x128xf32>
    %830 = arith.negf %829 : vector<1x128xf32>
    %831 = math.exp %830 : vector<1x128xf32>
    %cst_152 = arith.constant 1.000000e+00 : f32
    %832 = vector.broadcast %cst_152 : f32 to vector<1x128xf32>
    %833 = arith.addf %832, %831 : vector<1x128xf32>
    %834 = arith.divf %832, %833 : vector<1x128xf32>
    %835 = math.tanh %829 : vector<1x128xf32>
    %836 = vector.extract_strided_slice %834 {offsets = [0, 0], sizes = [1, 32], strides = [1, 1]} : vector<1x128xf32> to vector<1x32xf32>
    %837 = vector.extract_strided_slice %834 {offsets = [0, 32], sizes = [1, 32], strides = [1, 1]} : vector<1x128xf32> to vector<1x32xf32>
    %838 = vector.extract_strided_slice %835 {offsets = [0, 64], sizes = [1, 32], strides = [1, 1]} : vector<1x128xf32> to vector<1x32xf32>
    %839 = vector.extract_strided_slice %834 {offsets = [0, 96], sizes = [1, 32], strides = [1, 1]} : vector<1x128xf32> to vector<1x32xf32>
    %840 = arith.mulf %837, %778 : vector<1x32xf32>
    %841 = arith.mulf %836, %838 : vector<1x32xf32>
    %842 = arith.addf %840, %841 : vector<1x32xf32>
    %843 = math.tanh %842 : vector<1x32xf32>
    %844 = arith.mulf %839, %843 : vector<1x32xf32>
    %845 = arith.mulf %844, %466 : vector<1x32xf32>
    %cst_153 = arith.constant dense<0.000000e+00> : vector<1xf32>
    %846 = vector.multi_reduction <add>, %845, %cst_153 [1] : vector<1x32xf32> to vector<1xf32>
    %847 = vector.shape_cast %846 : vector<1xf32> to vector<1x1xf32>
    %848 = arith.addf %847, %467 : vector<1x1xf32>
    %c5_i32 = arith.constant 5 : i32
    %849 = vector.broadcast %c5_i32 : i32 to vector<1x6xi32>
    %850 = arith.cmpi eq, %468, %849 : vector<1x6xi32>
    %851 = vector.shape_cast %848 : vector<1x1xf32> to vector<1x1xf32>
    %852 = vector.broadcast %851 : vector<1x1xf32> to vector<1x6xf32>
    %853 = arith.select %850, %852, %789 : vector<1x6xi1>, vector<1x6xf32>
    %c0_154 = arith.constant 0 : index
    %c0_155 = arith.constant 0 : index
    %854 = vector.load %arg11[%c0_154, %c0_155] : memref<1x6xf32, #tpu.memory_space<vmem>>, vector<1x6xf32>
    tpu.vector_store %arg11[%c0_154, %c0_155], %853 {strides = array<i32>} : memref<1x6xf32, #tpu.memory_space<vmem>>, vector<1x6xf32>,
    return
  }
}

</mosaic_0001>

<bundles_post_ra>
// kernel: tpu_custom_call.1
= control target key start
LH: loop header
LB: loop body
LE: loop exit
PB: predicated region body
PF: predicated region fallthrough
CT: control target
= control target key end

     0   :  { %s8325_s0 = inlined_call_operand.hbm [shape: f32[8,32], index: 0, kind: input, shape index: {}]   ;;  %s8326_s1 = inlined_call_operand.vmem [shape: f32[1,32], index: 1, kind: input, shape index: {}]   ;;  %s8327_s2 = inlined_call_operand.hbm [shape: f32[6,32], index: 2, kind: input, shape index: {}]   ;;  %s8328_s3 = inlined_call_operand.hbm [shape: f32[3,64,128], index: 3, kind: input, shape index: {}]   ;;  %s8329_s4 = inlined_call_operand.vmem [shape: f32[3,128], index: 4, kind: input, shape index: {}]   ;;  %s8330_s5 = inlined_call_operand.hbm [shape: f32[3,64,128], index: 5, kind: input, shape index: {}]   ;;  %s8331_s6 = inlined_call_operand.vmem [shape: f32[3,128], index: 6, kind: input, shape index: {}]   ;;  %s8332_s7 = inlined_call_operand.hbm [shape: f32[96,128], index: 7, kind: input, shape index: {}]   ;;  %s8333_s8 = inlined_call_operand.vmem [shape: f32[1,128], index: 8, kind: input, shape index: {}]   ;;  %s8334_s9 = inlined_call_operand.vmem [shape: f32[1,32], index: 9, kind: input, shape index: {}]   ;;  %s8335_s10 = inlined_call_operand.<no memory space> [shape: f32[1,1], index: 10, kind: input, shape index: {}]   ;;  %s8336_s11 = inlined_call_operand.hbm [shape: f32[1,6], index: 11, kind: output, shape index: {}]  }
   0x1   :  { %v16_v0 = vstv %s8335_s10 }
   0x2   :  { %17 = vst [vmem:[#allocation2] sm:$0x1] %v16_v0 }
   0x3   :  { %18 = vsyncpa [#allocation4], 0 }
   0x4   :  { %19 = vsyncpa [#allocation7], 0 }
   0x5   :  { %20 = vsyncpa [#allocation10], 0 }
   0x6   :  { %21 = vsyncpa [#allocation5], 0  ;;  %s6619_s19 = smov [#allocation6]  }
   0x7   :  { %s40_s20 = sshll.u32 %s6619_s19, 4  ;;  %s41_s20 = int_to_ptr.vmem [resolvable:$true] %s40_s20 }
   0x8   :  { %s6499_s21 = scalar_lea.vmem %s41_s20, 128  ;;  %p6504_p1 = scmp.lt.s32.totalorder %s41_s20, %s41_s20 }
   0x9   :  { %p6500_p0 = scmp.ne.s32.totalorder %s41_s20, %s6499_s21  ;;  %p6505_p2 = scmp.lt.s32.totalorder %s6499_s21, %s6499_s21 }
   0xb   :  { %p6506_p3 = por %p6505_p2, %p6504_p1 }
   0xd   :  { %p6507_p4 = pnand %p6506_p3, %p6500_p0 }
   0xf   :  { %6510 = shalt.err (!%p6507_p4)
}
  0x10   :  { %43 = dma.hbm_to_vmem [thread:$0]  %s8327_s2, 128, %s41_s20, [#allocation7]  }
  0x11   :  { %s6620_s10 = smov [#allocation9]   ;;  %s6621_s25 = smov [#allocation3]  }
  0x12   :  { %s63_s24 = sshll.u32 %s6620_s10, 4  ;;  %s28_s26 = sshll.u32 %s6621_s25, 4  ;;  %s64_s24 = int_to_ptr.vmem [resolvable:$true] %s63_s24  ;;  %s29_s26 = int_to_ptr.vmem [resolvable:$true] %s28_s26 }
  0x13   :  { %s6519_s27 = scalar_lea.vmem %s64_s24, 3072  ;;  %p6524_p6 = scmp.lt.s32.totalorder %s64_s24, %s64_s24 }
  0x14   :  { %p6520_p5 = scmp.ne.s32.totalorder %s64_s24, %s6519_s27  ;;  %p6525_p7 = scmp.lt.s32.totalorder %s6519_s27, %s6519_s27 }
  0x16   :  { %p6526_p8 = por %p6525_p7, %p6524_p6 }
  0x18   :  { %p6527_p9 = pnand %p6526_p8, %p6520_p5 }
  0x1a   :  { %6530 = shalt.err (!%p6527_p9)
}
  0x1b   :  { %s6622_s28 = smov 128   ;;  %s6623_s29 = smov 8  }
  0x1c   :  { %69 = dma.hbm_to_vmem [thread:$0]  %s8330_s5, 3072, %s64_s24, [#allocation10], %s6622_s28, %s6622_s28, %s6623_s29  }
  0x1d   :  { %s6539_s2 = scalar_lea.vmem %s29_s26, 128  ;;  %p6544_p11 = scmp.lt.s32.totalorder %s29_s26, %s29_s26 }
  0x1e   :  { %p6540_p10 = scmp.ne.s32.totalorder %s29_s26, %s6539_s2  ;;  %p6545_p12 = scmp.lt.s32.totalorder %s6539_s2, %s6539_s2 }
  0x20   :  { %p6546_p13 = por %p6545_p12, %p6544_p11 }
  0x22   :  { %p6547_p0 = pnand %p6546_p13, %p6540_p10 }
  0x24   :  { %6550 = shalt.err (!%p6547_p0)
}
  0x25   :  { %31 = dma.hbm_to_vmem [thread:$0]  %s8325_s0, 128, %s29_s26, [#allocation4]  }
  0x26   :  { %s6624_s15 = smov [#allocation8]   ;;  %s6625_s17 = smov [#allocation11]  }
  0x27   :  { %s49_s16 = sshll.u32 %s6624_s15, 4  ;;  %s77_s18 = sshll.u32 %s6625_s17, 4  ;;  %s50_s16 = int_to_ptr.vmem [resolvable:$true] %s49_s16  ;;  %s78_s18 = int_to_ptr.vmem [resolvable:$true] %s77_s18 }
  0x28   :  { %s6559_s19 = scalar_lea.vmem %s50_s16, 3072  ;;  %p6564_p2 = scmp.lt.s32.totalorder %s50_s16, %s50_s16 }
  0x29   :  { %p6560_p1 = scmp.ne.s32.totalorder %s50_s16, %s6559_s19  ;;  %p6565_p3 = scmp.lt.s32.totalorder %s6559_s19, %s6559_s19 }
  0x2b   :  { %p6566_p4 = por %p6565_p3, %p6564_p2 }
  0x2d   :  { %p6567_p5 = pnand %p6566_p4, %p6560_p1 }
  0x2f   :  { %6570 = shalt.err (!%p6567_p5)
}
  0x30   :  { %55 = dma.hbm_to_vmem [thread:$0]  %s8328_s3, 3072, %s50_s16, [#allocation7], %s6622_s28, %s6622_s28, %s6623_s29  }
  0x31   :  { %s6579_s0 = scalar_lea.vmem %s78_s18, 1536  ;;  %p6584_p7 = scmp.lt.s32.totalorder %s78_s18, %s78_s18 }
  0x32   :  { %p6580_p6 = scmp.ne.s32.totalorder %s78_s18, %s6579_s0  ;;  %p6585_p8 = scmp.lt.s32.totalorder %s6579_s0, %s6579_s0 }
  0x34   :  { %p6586_p9 = por %p6585_p8, %p6584_p7 }
  0x36   :  { %p6587_p10 = pnand %p6586_p9, %p6580_p6 }
  0x38   :  { %6590 = shalt.err (!%p6587_p10)
}
  0x39   :  { %83 = dma.hbm_to_vmem [thread:$0]  %s8332_s7, 1536, %s78_s18, [#allocation10], %s6622_s28, %s6622_s28, %s6623_s29  }
  0x3a   :  { %6611 = dma.done.wait [#allocation4], 128  }
  0x3b   :  { %6612 = vsyncadd [#allocation4], 4294967168 }
  0x3c   :  { %6613 = dma.done.wait [#allocation7], 3200  }
  0x3d   :  { %6614 = vsyncadd [#allocation7], 4294964096 }
  0x3e   :  { %6615 = dma.done.wait [#allocation10], 4608  }
  0x3f   :  { %6616 = vsyncadd [#allocation10], 4294962688  ;;  %v6626_v1 = vmov 0.0   ;;  %vm6627_vm0 = vmmov 0   ;;  %v134_v2 = vld [vmem:[#allocation3] sm:$0x1] }
  0x40   :  { %5243 = vmatprep.subr.mxu0 %v6626_v1  ;;  %5259 = vmatprep.mubr.msk.f32.mxu0 %vm6627_vm0, %v6626_v1  ;;  %v6726_v3 = vld [vmem:[#allocation8 + $0x38] sm:$0xff]  ;;  %v6728_v4 = vld [vmem:[#allocation8 + $0x30] sm:$0xff]  ;;  %s6628_s3 = smov 32   ;;  %v6733_v5 = vld [vmem:[#allocation8 + $0x28] sm:$0xff]  ;;  %vm139_vm1 = vcmask 261120   ;;  %vm141_vm2 = vcmask 523264  }
  0x41   :  { %5262 = vmatprep.subr.mxu1 %v6626_v1  ;;  %5278 = vmatprep.mubr.msk.f32.mxu1 %vm6627_vm0, %v6626_v1  ;;  %v6737_v6 = vld [vmem:[#allocation8 + $0x20] sm:$0xff]  ;;  %v6741_v7 = vld [vmem:[#allocation8 + $0x18] sm:$0xff]  ;;  %v6745_v8 = vld [vmem:[#allocation8 + $0x10] sm:$0xff]  ;;  %s6629_s10 = smov 64   ;;  %s6630_s5 = smov 96   ;;  %vm3068_vm3 = vcmask 785408  }
  0x42   :  { %136 = vrot.lane.b32.xlu0 %v134_v2, %s6628_s3  ;;  %5244 = vmatpush3.msra.mxu0 %v6726_v3  ;;  %v6749_v9 = vld [vmem:[#allocation8 + $0x8] sm:$0xff]  ;;  %v6753_v10 = vld [vmem:[#allocation8] sm:$0xff]  ;;  %v6774_v27 = vld [vmem:[#allocation8 + $0x78] sm:$0xff]  ;;  %vm3042_vm4 = vcmask 253952   ;;  %vm4740_vm11 = vcmask 40960  }
  0x43   :  { %5245 = vmatprep.subr.mxu0 %v6626_v1  ;;  %v6766_v13 = vld [vmem:[%s8329_s4] sm:$0x1]  ;;  %v6776_v28 = vld [vmem:[#allocation8 + $0x70] sm:$0xff]  ;;  %5263 = vmatpush3.msra.mxu1 %v6774_v27  ;;  %v6784_v30 = vld [vmem:[#allocation8 + $0x60] sm:$0xff] }
  0x44   :  { %5246 = vmatpush3.msra.mxu0 %v6728_v4  ;;  %5264 = vmatprep.subr.mxu1 %v6626_v1  ;;  %v6780_v29 = vld [vmem:[#allocation8 + $0x68] sm:$0xff]  ;;  %v6788_v32 = vld [vmem:[#allocation8 + $0x58] sm:$0xff]  ;;  %v6793_v33 = vld [vmem:[#allocation8 + $0x50] sm:$0xff] }
  0x45   :  { %5247 = vmatprep.subr.mxu0 %v6626_v1  ;;  %5265 = vmatpush3.msra.mxu1 %v6776_v28  ;;  %v6797_v34 = vld [vmem:[#allocation8 + $0x48] sm:$0xff]  ;;  %v6801_v35 = vld [vmem:[#allocation8 + $0x40] sm:$0xff]  ;;  %v443_v38 = vld [vmem:[#allocation3 + $0x1] sm:$0x1] }
  0x46   :  { %5248 = vmatpush3.msra.mxu0 %v6733_v5  ;;  %5266 = vmatprep.subr.mxu1 %v6626_v1  ;;  %v6837_v44 = vld [vmem:[%s8329_s4 + $0x1] sm:$0x1] }
  0x47   :  { %5249 = vmatprep.subr.mxu0 %v6626_v1  ;;  %5267 = vmatpush3.msra.mxu1 %v6780_v29 }
  0x48   :  { %5250 = vmatpush3.msra.mxu0 %v6737_v6  ;;  %5268 = vmatprep.subr.mxu1 %v6626_v1 }
  0x49   :  { %5251 = vmatprep.subr.mxu0 %v6626_v1  ;;  %5269 = vmatpush3.msra.mxu1 %v6784_v30 }
  0x4a   :  { %5252 = vmatpush3.msra.mxu0 %v6741_v7  ;;  %5270 = vmatprep.subr.mxu1 %v6626_v1 }
  0x4b   :  { %5253 = vmatprep.subr.mxu0 %v6626_v1  ;;  %5271 = vmatpush3.msra.mxu1 %v6788_v32 }
  0x4c   :  { %5254 = vmatpush3.msra.mxu0 %v6745_v8  ;;  %5272 = vmatprep.subr.mxu1 %v6626_v1 }
  0x4d   :  { %5255 = vmatprep.subr.mxu0 %v6626_v1  ;;  %5273 = vmatpush3.msra.mxu1 %v6793_v33 }
  0x4e   :  { %5256 = vmatpush3.msra.mxu0 %v6749_v9  ;;  %5274 = vmatprep.subr.mxu1 %v6626_v1 }
  0x4f   :  { %5257 = vmatprep.subr.mxu0 %v6626_v1  ;;  %5275 = vmatpush3.msra.mxu1 %v6797_v34 }
  0x50   :  { %5258 = vmatpush3.msra.mxu0 %v6753_v10  ;;  %5276 = vmatprep.subr.mxu1 %v6626_v1 }
  0x51   :  { %5281 = vmatprep.subr.mxu0 %v6626_v1  ;;  %5277 = vmatpush3.msra.mxu1 %v6801_v35 }
  0x52   :  { %5300 = vmatprep.subr.mxu1 %v6626_v1 }
  0xb4   :  { %v137_v11 = vpop.permute.xlu0 %136 }
  0xb5   :  { %v140_v12 = vsel %vm139_vm1, 0.0, %v137_v11 }
  0xb6   :  { %5260 = vmatmul.mubr.msk.f32.vlgmr.msra.gmra.mxu0 %vm141_vm2, %v140_v12 }
  0xb7   :  { %5297 = vmatprep.mubr.msk.f32.mxu0 %vm6627_vm0, %v6626_v1 }
 0x176   :  { %v211_v14 = vpop.f32.mrf.mxu0 }
 0x177   :  { %v212_v15 = vadd.f32 %v211_v14, %v6766_v13 }
 0x178   :  { %v5261_v16 = vpop.f32.mrf.mxu0 }
 0x179   :  { %6097 = vtanh.f32 %v212_v15  ;;  %v4760_v18 = vmul.f32 -1.442695, %v212_v15 }
 0x17b   :  { %6099 = vpow2.f32 %v4760_v18  ;;  %v6853_v18 = vld [vmem:[#allocation8 + $0xb8] sm:$0xff] }
 0x17c   :  { %5282 = vmatpush3.msra.mxu0 %v6853_v18 }
 0x17d   :  { %5283 = vmatprep.subr.mxu0 %v6626_v1 }
 0x186   :  { %v6098_v17 = vpop.eup %6097 }
 0x187   :  { %224 = vrot.lane.b32.xlu0 %v6098_v17, %s6629_s10 }
 0x188   :  { %v6100_v19 = vpop.eup %6099 }
 0x189   :  { %v218_v20 = vadd.f32 1.0, %v6100_v19  ;;  %v6855_v19 = vld [vmem:[#allocation8 + $0xb0] sm:$0xff] }
 0x18a   :  { %5284 = vmatpush3.msra.mxu0 %v6855_v19 }
 0x18b   :  { %6101 = vrcp.f32 %v218_v20  ;;  %v6860_v20 = vld [vmem:[#allocation8 + $0xa8] sm:$0xff]  ;;  %5285 = vmatprep.subr.mxu0 %v6626_v1 }
 0x18c   :  { %5286 = vmatpush3.msra.mxu0 %v6860_v20 }
 0x18d   :  { %5287 = vmatprep.subr.mxu0 %v6626_v1 }
 0x198   :  { %v6102_v21 = vpop.eup %6101 }
 0x199   :  { %v222_v24 = vmul.f32 0.0, %v6102_v21 }
 0x1f9   :  { %v225_v22 = vpop.permute.xlu0 %224 }
 0x1fa   :  { %v227_v23 = vmul.f32 %v6102_v21, %v225_v22 }
 0x1fc   :  { %229 = vrot.lane.b32.xlu1 %v227_v23, %s6628_s3  ;;  %v6872_v23 = vld [vmem:[#allocation8 + $0x98] sm:$0xff] }
 0x26e   :  { %v230_v25 = vpop.permute.xlu1 %229 }
 0x26f   :  { %v6771_v26 = vadd.f32 %v230_v25, %v222_v24  ;;  %v6878_v24 = vld [vmem:[#allocation8 + $0x90] sm:$0xff]  ;;  %v6884_v25 = vld [vmem:[#allocation8 + $0x88] sm:$0xff] }
 0x271   :  { %6103 = vtanh.f32 %v6771_v26 }
 0x27e   :  { %v6104_v31 = vpop.eup %6103 }
 0x27f   :  { %235 = vrot.lane.b32.xlu1 %v6104_v31, %s6629_s10 }
 0x2f1   :  { %v236_v36 = vpop.permute.xlu1 %235 }
 0x2f2   :  { %v238_v37 = vmul.f32 %v6102_v21, %v236_v36  ;;  %v6866_v21 = vld [vmem:[#allocation8 + $0xa0] sm:$0xff] }
 0x2f3   :  { %5288 = vmatpush3.msra.mxu0 %v6866_v21 }
 0x2f4   :  { %444 = vrot.lane.b32.xlu1 %v238_v37, %s6628_s3  ;;  %240 = vrot.lane.b32.xlu0 %v238_v37, %s6629_s10 }
 0x2f5   :  { %5289 = vmatprep.subr.mxu0 %v6626_v1 }
 0x2f6   :  { %5290 = vmatpush3.msra.mxu0 %v6872_v23 }
 0x2f7   :  { %5291 = vmatprep.subr.mxu0 %v6626_v1 }
 0x2f8   :  { %448 = vrot.lane.b32.xlu0 %v443_v38, %s6628_s3  ;;  %5292 = vmatpush3.msra.mxu0 %v6878_v24 }
 0x2f9   :  { %5293 = vmatprep.subr.mxu0 %v6626_v1 }
 0x2fa   :  { %5294 = vmatpush3.msra.mxu0 %v6884_v25 }
 0x2fb   :  { %5295 = vmatprep.subr.mxu0 %v6626_v1 }
 0x366   :  { %v241_v39 = vpop.permute.xlu0 %240  ;;  %v445_v42 = vpop.permute.xlu1 %444 }
 0x367   :  { %v243_v40 = vsel %vm139_vm1, 0.0, %v241_v39  ;;  %v760_v39 = vld [vmem:[#allocation3 + $0x2] sm:$0x1] }
 0x368   :  { %5279 = vmatmul.mubr.msk.f32.vlgmr.msra.gmra.mxu1 %vm141_vm2, %v243_v40 }
 0x369   :  { %5301 = vmatpush3.msra.mxu1 %v6726_v3  ;;  %5316 = vmatprep.mubr.msk.f32.mxu1 %vm6627_vm0, %v6626_v1 }
 0x36a   :  { %5302 = vmatprep.subr.mxu1 %v6626_v1  ;;  %v449_v41 = vpop.permute.xlu0 %448 }
 0x36b   :  { %5303 = vmatpush3.msra.mxu1 %v6728_v4  ;;  %v451_v43 = vsel %vm139_vm1, %v445_v42, %v449_v41 }
 0x36c   :  { %5304 = vmatprep.subr.mxu1 %v6626_v1 }
 0x36d   :  { %5305 = vmatpush3.msra.mxu1 %v6733_v5 }
 0x36e   :  { %5306 = vmatprep.subr.mxu1 %v6626_v1 }
 0x36f   :  { %5307 = vmatpush3.msra.mxu1 %v6737_v6 }
 0x370   :  { %5308 = vmatprep.subr.mxu1 %v6626_v1 }
 0x371   :  { %5309 = vmatpush3.msra.mxu1 %v6741_v7 }
 0x372   :  { %5310 = vmatprep.subr.mxu1 %v6626_v1 }
 0x373   :  { %5311 = vmatpush3.msra.mxu1 %v6745_v8 }
 0x374   :  { %5312 = vmatprep.subr.mxu1 %v6626_v1 }
 0x375   :  { %5313 = vmatpush3.msra.mxu1 %v6749_v9 }
 0x376   :  { %5314 = vmatprep.subr.mxu1 %v6626_v1 }
 0x377   :  { %5315 = vmatpush3.msra.mxu1 %v6753_v10 }
 0x378   :  { %5317 = vmatmul.mubr.msk.f32.vlgmr.msra.gmra.mxu1 %vm141_vm2, %v451_v43  ;;  %5338 = vmatprep.subr.mxu1 %v6626_v1 }
 0x379   :  { %5354 = vmatprep.mubr.msk.f32.mxu1 %vm6627_vm0, %v6626_v1  ;;  %5339 = vmatpush3.msra.mxu1 %v6853_v18 }
 0x37a   :  { %5340 = vmatprep.subr.mxu1 %v6626_v1 }
 0x37b   :  { %5341 = vmatpush3.msra.mxu1 %v6855_v19 }
 0x37c   :  { %5342 = vmatprep.subr.mxu1 %v6626_v1 }
 0x37d   :  { %5343 = vmatpush3.msra.mxu1 %v6860_v20 }
 0x37e   :  { %5344 = vmatprep.subr.mxu1 %v6626_v1 }
 0x37f   :  { %5345 = vmatpush3.msra.mxu1 %v6866_v21 }
 0x380   :  { %5346 = vmatprep.subr.mxu1 %v6626_v1 }
 0x381   :  { %5347 = vmatpush3.msra.mxu1 %v6872_v23 }
 0x382   :  { %5348 = vmatprep.subr.mxu1 %v6626_v1 }
 0x383   :  { %5349 = vmatpush3.msra.mxu1 %v6878_v24 }
 0x384   :  { %5350 = vmatprep.subr.mxu1 %v6626_v1 }
 0x385   :  { %5351 = vmatpush3.msra.mxu1 %v6884_v25 }
 0x386   :  { %5352 = vmatprep.subr.mxu1 %v6626_v1 }
 0x428   :  { %v313_v45 = vpop.f32.mrf.mxu1 }
 0x429   :  { %v314_v46 = vadd.f32 %v313_v45, %v6837_v44 }
 0x42a   :  { %v5280_v47 = vpop.f32.mrf.mxu1 }
 0x42b   :  { %6105 = vtanh.f32 %v314_v46  ;;  %v4762_v53 = vmul.f32 -1.442695, %v314_v46 }
 0x438   :  { %v6106_v48 = vpop.eup %6105  ;;  %v521_v49 = vpop.f32.mrf.mxu1 }
 0x439   :  { %v522_v50 = vadd.f32 %v521_v49, %v6766_v13  ;;  %326 = vrot.lane.b32.xlu1 %v6106_v48, %s6629_s10  ;;  %v6970_v49 = vld [vmem:[%s8329_s4 + $0x2] sm:$0x1] }
 0x43a   :  { %v5318_v51 = vpop.f32.mrf.mxu1 }
 0x43b   :  { %6107 = vtanh.f32 %v522_v50  ;;  %v4766_v54 = vmul.f32 -1.442695, %v522_v50 }
 0x43c   :  { %6109 = vpow2.f32 %v4762_v53 }
 0x43d   :  { %6111 = vpow2.f32 %v4766_v54 }
 0x448   :  { %v6108_v52 = vpop.eup %6107 }
 0x449   :  { %534 = vrot.lane.b32.xlu0 %v6108_v52, %s6629_s10  ;;  %v6110_v55 = vpop.eup %6109 }
 0x44a   :  { %v320_v56 = vadd.f32 1.0, %v6110_v55  ;;  %v6112_v57 = vpop.eup %6111 }
 0x44b   :  { %v528_v58 = vadd.f32 1.0, %v6112_v57 }
 0x44c   :  { %6113 = vrcp.f32 %v320_v56 }
 0x44d   :  { %6115 = vrcp.f32 %v528_v58 }
 0x459   :  { %v6114_v59 = vpop.eup %6113 }
 0x45a   :  { %v6116_v62 = vpop.eup %6115  ;;  %v324_v2 = vmul.f32 0.0, %v6114_v59 }
 0x45b   :  { %v532_v14 = vmul.f32 %v6116_v62, %v6771_v26  ;;  %v6890_v26 = vld [vmem:[#allocation8 + $0x80] sm:$0xff] }
 0x45c   :  { %5296 = vmatpush3.msra.mxu0 %v6890_v26  ;;  %5353 = vmatpush3.msra.mxu1 %v6890_v26 }
 0x45d   :  { %5319 = vmatprep.subr.mxu0 %v6626_v1  ;;  %5376 = vmatprep.subr.mxu1 %v6626_v1 }
 0x4ab   :  { %v327_v60 = vpop.permute.xlu1 %326 }
 0x4ac   :  { %v329_v61 = vmul.f32 %v6114_v59, %v327_v60 }
 0x4ae   :  { %331 = vrot.lane.b32.xlu1 %v329_v61, %s6628_s3 }
 0x4bb   :  { %v535_v63 = vpop.permute.xlu0 %534 }
 0x4bc   :  { %v537_v0 = vmul.f32 %v6116_v62, %v535_v63 }
 0x4be   :  { %539 = vrot.lane.b32.xlu0 %v537_v0, %s6628_s3 }
 0x520   :  { %v332_v11 = vpop.permute.xlu1 %331 }
 0x521   :  { %v6845_v12 = vadd.f32 %v332_v11, %v324_v2 }
 0x523   :  { %6117 = vtanh.f32 %v6845_v12 }
 0x530   :  { %v6118_v15 = vpop.eup %6117  ;;  %v540_v16 = vpop.permute.xlu0 %539 }
 0x531   :  { %v6849_v17 = vadd.f32 %v540_v16, %v532_v14  ;;  %337 = vrot.lane.b32.xlu1 %v6118_v15, %s6629_s10 }
 0x533   :  { %6119 = vtanh.f32 %v6849_v17 }
 0x540   :  { %v6120_v22 = vpop.eup %6119 }
 0x541   :  { %545 = vrot.lane.b32.xlu0 %v6120_v22, %s6629_s10 }
 0x5a3   :  { %v338_v31 = vpop.permute.xlu1 %337 }
 0x5a4   :  { %v340_v36 = vmul.f32 %v6114_v59, %v338_v31 }
 0x5a6   :  { %342 = vrot.lane.b32.xlu1 %v340_v36, %s6629_s10  ;;  %549 = vrot.lane.b32.xlu0 %v340_v36, %s6628_s3 }
 0x5b3   :  { %v546_v37 = vpop.permute.xlu0 %545 }
 0x5b4   :  { %v548_v38 = vmul.f32 %v6116_v62, %v546_v37 }
 0x5b6   :  { %761 = vrot.lane.b32.xlu0 %v548_v38, %s6628_s3  ;;  %553 = vrot.lane.b32.xlu1 %v548_v38, %s6629_s10 }
 0x5ba   :  { %765 = vrot.lane.b32.xlu1 %v760_v39, %s6628_s3 }
 0x618   :  { %v343_v40 = vpop.permute.xlu1 %342  ;;  %v550_v42 = vpop.permute.xlu0 %549 }
 0x619   :  { %v345_v41 = vsel %vm139_vm1, 0.0, %v343_v40 }
 0x61a   :  { %5298 = vmatmul.mubr.msk.f32.vlgmr.msra.gmra.mxu0 %vm141_vm2, %v345_v41 }
 0x61b   :  { %5320 = vmatpush3.msra.mxu0 %v6774_v27  ;;  %5335 = vmatprep.mubr.msk.f32.mxu0 %vm6627_vm0, %v6626_v1 }
 0x61c   :  { %5321 = vmatprep.subr.mxu0 %v6626_v1 }
 0x61d   :  { %5322 = vmatpush3.msra.mxu0 %v6776_v28 }
 0x61e   :  { %5323 = vmatprep.subr.mxu0 %v6626_v1 }
 0x61f   :  { %5324 = vmatpush3.msra.mxu0 %v6780_v29 }
 0x620   :  { %5325 = vmatprep.subr.mxu0 %v6626_v1 }
 0x621   :  { %5326 = vmatpush3.msra.mxu0 %v6784_v30 }
 0x622   :  { %5327 = vmatprep.subr.mxu0 %v6626_v1 }
 0x623   :  { %5328 = vmatpush3.msra.mxu0 %v6788_v32 }
 0x624   :  { %5329 = vmatprep.subr.mxu0 %v6626_v1 }
 0x625   :  { %5330 = vmatpush3.msra.mxu0 %v6793_v33 }
 0x626   :  { %5331 = vmatprep.subr.mxu0 %v6626_v1 }
 0x627   :  { %5332 = vmatpush3.msra.mxu0 %v6797_v34 }
 0x628   :  { %5333 = vmatprep.subr.mxu0 %v6626_v1  ;;  %v554_v43 = vpop.permute.xlu1 %553  ;;  %v762_v47 = vpop.permute.xlu0 %761 }
 0x629   :  { %v556_v45 = vsel %vm139_vm1, %v550_v42, %v554_v43  ;;  %5334 = vmatpush3.msra.mxu0 %v6801_v35 }
 0x62a   :  { %5336 = vmatmul.mubr.msk.f32.vlgmr.msra.gmra.mxu0 %vm141_vm2, %v556_v45  ;;  %5357 = vmatprep.subr.mxu0 %v6626_v1 }
 0x62b   :  { %5358 = vmatpush3.msra.mxu0 %v6726_v3  ;;  %5373 = vmatprep.mubr.msk.f32.mxu0 %vm6627_vm0, %v6626_v1 }
 0x62c   :  { %5359 = vmatprep.subr.mxu0 %v6626_v1  ;;  %v766_v46 = vpop.permute.xlu1 %765 }
 0x62d   :  { %5360 = vmatpush3.msra.mxu0 %v6728_v4  ;;  %v768_v48 = vsel %vm139_vm1, %v762_v47, %v766_v46 }
 0x62e   :  { %5361 = vmatprep.subr.mxu0 %v6626_v1 }
 0x62f   :  { %5362 = vmatpush3.msra.mxu0 %v6733_v5 }
 0x630   :  { %5363 = vmatprep.subr.mxu0 %v6626_v1 }
 0x631   :  { %5364 = vmatpush3.msra.mxu0 %v6737_v6 }
 0x632   :  { %5365 = vmatprep.subr.mxu0 %v6626_v1 }
 0x633   :  { %5366 = vmatpush3.msra.mxu0 %v6741_v7 }
 0x634   :  { %5367 = vmatprep.subr.mxu0 %v6626_v1 }
 0x635   :  { %5368 = vmatpush3.msra.mxu0 %v6745_v8 }
 0x636   :  { %5369 = vmatprep.subr.mxu0 %v6626_v1 }
 0x637   :  { %5370 = vmatpush3.msra.mxu0 %v6749_v9 }
 0x638   :  { %5371 = vmatprep.subr.mxu0 %v6626_v1 }
 0x639   :  { %5372 = vmatpush3.msra.mxu0 %v6753_v10 }
 0x63a   :  { %5374 = vmatmul.mubr.msk.f32.vlgmr.msra.gmra.mxu0 %vm141_vm2, %v768_v48  ;;  %5395 = vmatprep.subr.mxu0 %v6626_v1 }
 0x63b   :  { %5396 = vmatpush3.msra.mxu0 %v6853_v18  ;;  %5411 = vmatprep.mubr.msk.f32.mxu0 %vm6627_vm0, %v6626_v1 }
 0x63c   :  { %5397 = vmatprep.subr.mxu0 %v6626_v1 }
 0x63d   :  { %5398 = vmatpush3.msra.mxu0 %v6855_v19 }
 0x63e   :  { %5399 = vmatprep.subr.mxu0 %v6626_v1 }
 0x63f   :  { %5400 = vmatpush3.msra.mxu0 %v6860_v20 }
 0x640   :  { %5401 = vmatprep.subr.mxu0 %v6626_v1 }
 0x641   :  { %5402 = vmatpush3.msra.mxu0 %v6866_v21 }
 0x642   :  { %5403 = vmatprep.subr.mxu0 %v6626_v1 }
 0x643   :  { %5404 = vmatpush3.msra.mxu0 %v6872_v23 }
 0x644   :  { %5405 = vmatprep.subr.mxu0 %v6626_v1 }
 0x645   :  { %5406 = vmatpush3.msra.mxu0 %v6878_v24 }
 0x646   :  { %5407 = vmatprep.subr.mxu0 %v6626_v1 }
 0x647   :  { %5408 = vmatpush3.msra.mxu0 %v6884_v25 }
 0x648   :  { %5409 = vmatprep.subr.mxu0 %v6626_v1 }
 0x649   :  { %5410 = vmatpush3.msra.mxu0 %v6890_v26 }
 0x64a   :  { %5433 = vmatprep.subr.mxu0 %v6626_v1 }
 0x6da   :  { %v415_v50 = vpop.f32.mrf.mxu0 }
 0x6db   :  { %v416_v51 = vadd.f32 %v415_v50, %v6970_v49 }
 0x6dc   :  { %v5299_v52 = vpop.f32.mrf.mxu0 }
 0x6dd   :  { %6121 = vtanh.f32 %v416_v51  ;;  %v4764_v62 = vmul.f32 -1.442695, %v416_v51 }
 0x6ea   :  { %v6122_v53 = vpop.eup %6121  ;;  %v626_v54 = vpop.f32.mrf.mxu0 }
 0x6eb   :  { %v627_v55 = vadd.f32 %v626_v54, %v6837_v44  ;;  %428 = vrot.lane.b32.xlu0 %v6122_v53, %s6629_s10 }
 0x6ec   :  { %v5337_v56 = vpop.f32.mrf.mxu0 }
 0x6ed   :  { %6123 = vtanh.f32 %v627_v55  ;;  %v4768_v63 = vmul.f32 -1.442695, %v627_v55 }
 0x6fa   :  { %v6124_v57 = vpop.eup %6123  ;;  %v838_v58 = vpop.f32.mrf.mxu0 }
 0x6fb   :  { %v839_v59 = vadd.f32 %v838_v58, %v6766_v13  ;;  %639 = vrot.lane.b32.xlu1 %v6124_v57, %s6629_s10 }
 0x6fc   :  { %v5375_v60 = vpop.f32.mrf.mxu0 }
 0x6fd   :  { %6125 = vtanh.f32 %v839_v59  ;;  %v4772_v11 = vmul.f32 -1.442695, %v839_v59 }
 0x6fe   :  { %6127 = vpow2.f32 %v4764_v62  ;;  %v1077_v62 = vld [vmem:[#allocation3 + $0x3] sm:$0x1] }
 0x6ff   :  { %6129 = vpow2.f32 %v4768_v63 }
 0x70a   :  { %v6126_v61 = vpop.eup %6125 }
 0x70b   :  { %851 = vrot.lane.b32.xlu0 %v6126_v61, %s6629_s10  ;;  %v6128_v0 = vpop.eup %6127 }
 0x70c   :  { %v422_v2 = vadd.f32 1.0, %v6128_v0  ;;  %v6130_v14 = vpop.eup %6129 }
 0x70d   :  { %v633_v15 = vadd.f32 1.0, %v6130_v14 }
 0x70e   :  { %6131 = vrcp.f32 %v422_v2 }
 0x70f   :  { %6133 = vpow2.f32 %v4772_v11 }
 0x710   :  { %6135 = vrcp.f32 %v633_v15 }
 0x71b   :  { %v6132_v16 = vpop.eup %6131 }
 0x71c   :  { %v6134_v36 = vpop.eup %6133  ;;  %v426_v45 = vmul.f32 0.0, %v6132_v16 }
 0x71d   :  { %v845_v37 = vadd.f32 1.0, %v6134_v36  ;;  %v6136_v38 = vpop.eup %6135 }
 0x71e   :  { %v637_v48 = vmul.f32 %v6136_v38, %v6845_v12 }
 0x71f   :  { %6137 = vrcp.f32 %v845_v37 }
 0x72c   :  { %v6138_v41 = vpop.eup %6137 }
 0x72d   :  { %v849_v53 = vmul.f32 %v6138_v41, %v6849_v17 }
 0x75d   :  { %v429_v22 = vpop.permute.xlu0 %428 }
 0x75e   :  { %v431_v31 = vmul.f32 %v6132_v16, %v429_v22 }
 0x760   :  { %433 = vrot.lane.b32.xlu1 %v431_v31, %s6628_s3 }
 0x76d   :  { %v640_v39 = vpop.permute.xlu1 %639 }
 0x76e   :  { %v642_v40 = vmul.f32 %v6136_v38, %v640_v39 }
 0x770   :  { %644 = vrot.lane.b32.xlu0 %v642_v40, %s6628_s3 }
 0x77d   :  { %v852_v42 = vpop.permute.xlu0 %851 }
 0x77e   :  { %v854_v43 = vmul.f32 %v6138_v41, %v852_v42 }
 0x780   :  { %856 = vrot.lane.b32.xlu1 %v854_v43, %s6628_s3 }
 0x7d2   :  { %v434_v46 = vpop.permute.xlu1 %433 }
 0x7d3   :  { %v6981_v47 = vadd.f32 %v434_v46, %v426_v45 }
 0x7d5   :  { %6139 = vtanh.f32 %v6981_v47 }
 0x7e2   :  { %v6140_v50 = vpop.eup %6139  ;;  %v645_v51 = vpop.permute.xlu0 %644 }
 0x7e3   :  { %v6985_v52 = vadd.f32 %v645_v51, %v637_v48  ;;  %439 = vrot.lane.b32.xlu0 %v6140_v50, %s6629_s10 }
 0x7e5   :  { %6141 = vtanh.f32 %v6985_v52 }
 0x7f2   :  { %v6142_v54 = vpop.eup %6141  ;;  %v857_v55 = vpop.permute.xlu1 %856 }
 0x7f3   :  { %v6990_v56 = vadd.f32 %v857_v55, %v849_v53  ;;  %650 = vrot.lane.b32.xlu1 %v6142_v54, %s6629_s10 }
 0x7f5   :  { %6143 = vtanh.f32 %v6990_v56 }
 0x802   :  { %v6144_v57 = vpop.eup %6143 }
 0x803   :  { %862 = vrot.lane.b32.xlu0 %v6144_v57, %s6629_s10 }
 0x855   :  { %v440_v12 = vpop.permute.xlu0 %439 }
 0x856   :  { %v442_v58 = vmul.f32 %v6132_v16, %v440_v12 }
 0x858   :  { %655 = vrot.lane.b32.xlu1 %v442_v58, %s6628_s3 }
 0x865   :  { %v651_v59 = vpop.permute.xlu1 %650 }
 0x866   :  { %v653_v60 = vmul.f32 %v6136_v38, %v651_v59 }
 0x868   :  { %866 = vrot.lane.b32.xlu1 %v653_v60, %s6628_s3  ;;  %659 = vrot.lane.b32.xlu0 %v653_v60, %s6629_s10 }
 0x875   :  { %v863_v17 = vpop.permute.xlu0 %862 }
 0x876   :  { %v865_v61 = vmul.f32 %v6138_v41, %v863_v17 }
 0x878   :  { %1078 = vrot.lane.b32.xlu1 %v865_v61, %s6628_s3  ;;  %870 = vrot.lane.b32.xlu0 %v865_v61, %s6629_s10 }
 0x87c   :  { %1082 = vrot.lane.b32.xlu0 %v1077_v62, %s6628_s3 }
 0x8ca   :  { %v656_v63 = vpop.permute.xlu1 %655 }
 0x8da   :  { %v660_v0 = vpop.permute.xlu0 %659  ;;  %v867_v11 = vpop.permute.xlu1 %866 }
 0x8db   :  { %v662_v2 = vsel %vm139_vm1, %v656_v63, %v660_v0 }
 0x8dc   :  { %5355 = vmatmul.mubr.msk.f32.vlgmr.msra.gmra.mxu1 %vm141_vm2, %v662_v2 }
 0x8dd   :  { %5377 = vmatpush3.msra.mxu1 %v6774_v27  ;;  %5392 = vmatprep.mubr.msk.f32.mxu1 %vm6627_vm0, %v6626_v1 }
 0x8de   :  { %5378 = vmatprep.subr.mxu1 %v6626_v1 }
 0x8df   :  { %5379 = vmatpush3.msra.mxu1 %v6776_v28 }
 0x8e0   :  { %5380 = vmatprep.subr.mxu1 %v6626_v1 }
 0x8e1   :  { %5381 = vmatpush3.msra.mxu1 %v6780_v29 }
 0x8e2   :  { %5382 = vmatprep.subr.mxu1 %v6626_v1 }
 0x8e3   :  { %5383 = vmatpush3.msra.mxu1 %v6784_v30 }
 0x8e4   :  { %5384 = vmatprep.subr.mxu1 %v6626_v1 }
 0x8e5   :  { %5385 = vmatpush3.msra.mxu1 %v6788_v32 }
 0x8e6   :  { %5386 = vmatprep.subr.mxu1 %v6626_v1 }
 0x8e7   :  { %5387 = vmatpush3.msra.mxu1 %v6793_v33 }
 0x8e8   :  { %5388 = vmatprep.subr.mxu1 %v6626_v1 }
 0x8e9   :  { %5389 = vmatpush3.msra.mxu1 %v6797_v34 }
 0x8ea   :  { %5390 = vmatprep.subr.mxu1 %v6626_v1  ;;  %v871_v14 = vpop.permute.xlu0 %870  ;;  %v1079_v22 = vpop.permute.xlu1 %1078 }
 0x8eb   :  { %5391 = vmatpush3.msra.mxu1 %v6801_v35  ;;  %v873_v15 = vsel %vm139_vm1, %v867_v11, %v871_v14 }
 0x8ec   :  { %5414 = vmatprep.subr.mxu1 %v6626_v1  ;;  %5393 = vmatmul.mubr.msk.f32.vlgmr.msra.gmra.mxu1 %vm141_vm2, %v873_v15 }
 0x8ed   :  { %5415 = vmatpush3.msra.mxu1 %v6726_v3  ;;  %5430 = vmatprep.mubr.msk.f32.mxu1 %vm6627_vm0, %v6626_v1 }
 0x8ee   :  { %5416 = vmatprep.subr.mxu1 %v6626_v1  ;;  %v1083_v16 = vpop.permute.xlu0 %1082 }
 0x8ef   :  { %5417 = vmatpush3.msra.mxu1 %v6728_v4  ;;  %v1085_v31 = vsel %vm139_vm1, %v1079_v22, %v1083_v16 }
 0x8f0   :  { %5418 = vmatprep.subr.mxu1 %v6626_v1 }
 0x8f1   :  { %5419 = vmatpush3.msra.mxu1 %v6733_v5 }
 0x8f2   :  { %5420 = vmatprep.subr.mxu1 %v6626_v1 }
 0x8f3   :  { %5421 = vmatpush3.msra.mxu1 %v6737_v6 }
 0x8f4   :  { %5422 = vmatprep.subr.mxu1 %v6626_v1 }
 0x8f5   :  { %5423 = vmatpush3.msra.mxu1 %v6741_v7 }
 0x8f6   :  { %5424 = vmatprep.subr.mxu1 %v6626_v1 }
 0x8f7   :  { %5425 = vmatpush3.msra.mxu1 %v6745_v8 }
 0x8f8   :  { %5426 = vmatprep.subr.mxu1 %v6626_v1 }
 0x8f9   :  { %5427 = vmatpush3.msra.mxu1 %v6749_v9 }
 0x8fa   :  { %5428 = vmatprep.subr.mxu1 %v6626_v1 }
 0x8fb   :  { %5429 = vmatpush3.msra.mxu1 %v6753_v10 }
 0x8fc   :  { %5431 = vmatmul.mubr.msk.f32.vlgmr.msra.gmra.mxu1 %vm141_vm2, %v1085_v31  ;;  %5452 = vmatprep.subr.mxu1 %v6626_v1 }
 0x8fd   :  { %5453 = vmatpush3.msra.mxu1 %v6853_v18  ;;  %5468 = vmatprep.mubr.msk.f32.mxu1 %vm6627_vm0, %v6626_v1 }
 0x8fe   :  { %5454 = vmatprep.subr.mxu1 %v6626_v1 }
 0x8ff   :  { %5455 = vmatpush3.msra.mxu1 %v6855_v19 }
 0x900   :  { %5456 = vmatprep.subr.mxu1 %v6626_v1 }
 0x901   :  { %5457 = vmatpush3.msra.mxu1 %v6860_v20 }
 0x902   :  { %5458 = vmatprep.subr.mxu1 %v6626_v1 }
 0x903   :  { %5459 = vmatpush3.msra.mxu1 %v6866_v21 }
 0x904   :  { %5460 = vmatprep.subr.mxu1 %v6626_v1 }
 0x905   :  { %5461 = vmatpush3.msra.mxu1 %v6872_v23 }
 0x906   :  { %5462 = vmatprep.subr.mxu1 %v6626_v1 }
 0x907   :  { %5463 = vmatpush3.msra.mxu1 %v6878_v24 }
 0x908   :  { %5464 = vmatprep.subr.mxu1 %v6626_v1 }
 0x909   :  { %5465 = vmatpush3.msra.mxu1 %v6884_v25 }
 0x90a   :  { %5466 = vmatprep.subr.mxu1 %v6626_v1 }
 0x90b   :  { %5467 = vmatpush3.msra.mxu1 %v6890_v26 }
 0x90c   :  { %5490 = vmatprep.subr.mxu1 %v6626_v1 }
 0x99c   :  { %v732_v36 = vpop.f32.mrf.mxu1 }
 0x99d   :  { %v733_v37 = vadd.f32 %v732_v36, %v6970_v49 }
 0x99e   :  { %v5356_v38 = vpop.f32.mrf.mxu1 }
 0x99f   :  { %6145 = vtanh.f32 %v733_v37  ;;  %v4770_v51 = vmul.f32 -1.442695, %v733_v37 }
 0x9ac   :  { %v6146_v39 = vpop.eup %6145  ;;  %v943_v40 = vpop.f32.mrf.mxu1 }
 0x9ad   :  { %v944_v41 = vadd.f32 %v943_v40, %v6837_v44  ;;  %745 = vrot.lane.b32.xlu1 %v6146_v39, %s6629_s10 }
 0x9ae   :  { %v5394_v42 = vpop.f32.mrf.mxu1 }
 0x9af   :  { %6147 = vtanh.f32 %v944_v41  ;;  %v4774_v53 = vmul.f32 -1.442695, %v944_v41 }
 0x9bc   :  { %v6148_v43 = vpop.eup %6147  ;;  %v1155_v45 = vpop.f32.mrf.mxu1 }
 0x9bd   :  { %v1156_v46 = vadd.f32 %v1155_v45, %v6766_v13  ;;  %956 = vrot.lane.b32.xlu0 %v6148_v43, %s6629_s10 }
 0x9be   :  { %v5432_v48 = vpop.f32.mrf.mxu1 }
 0x9bf   :  { %6149 = vtanh.f32 %v1156_v46  ;;  %v4778_v57 = vmul.f32 -1.442695, %v1156_v46 }
 0x9c0   :  { %6151 = vpow2.f32 %v4770_v51 }
 0x9c1   :  { %6153 = vpow2.f32 %v4774_v53 }
 0x9cc   :  { %v6150_v50 = vpop.eup %6149 }
 0x9cd   :  { %1168 = vrot.lane.b32.xlu1 %v6150_v50, %s6629_s10  ;;  %v6152_v54 = vpop.eup %6151  ;;  %v1394_v50 = vld [vmem:[#allocation3 + $0x4] sm:$0x1] }
 0x9ce   :  { %v739_v55 = vadd.f32 1.0, %v6152_v54  ;;  %v6154_v12 = vpop.eup %6153 }
 0x9cf   :  { %v950_v58 = vadd.f32 1.0, %v6154_v12 }
 0x9d0   :  { %6155 = vrcp.f32 %v739_v55 }
 0x9d1   :  { %6157 = vpow2.f32 %v4778_v57 }
 0x9d2   :  { %6159 = vrcp.f32 %v950_v58 }
 0x9dd   :  { %v6156_v59 = vpop.eup %6155 }
 0x9de   :  { %v6158_v17 = vpop.eup %6157  ;;  %v743_v15 = vmul.f32 %v6156_v59, %v6981_v47 }
 0x9df   :  { %v1162_v61 = vadd.f32 1.0, %v6158_v17  ;;  %v6160_v62 = vpop.eup %6159 }
 0x9e0   :  { %v954_v31 = vmul.f32 %v6160_v62, %v6985_v52 }
 0x9e1   :  { %6161 = vrcp.f32 %v1162_v61 }
 0x9ee   :  { %v6162_v2 = vpop.eup %6161 }
 0x9ef   :  { %v1166_v39 = vmul.f32 %v6162_v2, %v6990_v56 }
 0xa1f   :  { %v746_v13 = vpop.permute.xlu1 %745 }
 0xa20   :  { %v748_v60 = vmul.f32 %v6156_v59, %v746_v13 }
 0xa22   :  { %750 = vrot.lane.b32.xlu0 %v748_v60, %s6628_s3 }
 0xa2f   :  { %v957_v63 = vpop.permute.xlu0 %956 }
 0xa30   :  { %v959_v0 = vmul.f32 %v6160_v62, %v957_v63 }
 0xa32   :  { %961 = vrot.lane.b32.xlu1 %v959_v0, %s6628_s3 }
 0xa3f   :  { %v1169_v11 = vpop.permute.xlu1 %1168 }
 0xa40   :  { %v1171_v14 = vmul.f32 %v6162_v2, %v1169_v11 }
 0xa42   :  { %1173 = vrot.lane.b32.xlu0 %v1171_v14, %s6628_s3 }
 0xa94   :  { %v751_v16 = vpop.permute.xlu0 %750 }
 0xa95   :  { %v7071_v22 = vadd.f32 %v751_v16, %v743_v15 }
 0xa97   :  { %6163 = vtanh.f32 %v7071_v22 }
 0xaa4   :  { %v6164_v36 = vpop.eup %6163  ;;  %v962_v37 = vpop.permute.xlu1 %961 }
 0xaa5   :  { %v7075_v38 = vadd.f32 %v962_v37, %v954_v31  ;;  %756 = vrot.lane.b32.xlu1 %v6164_v36, %s6629_s10 }
 0xaa7   :  { %6165 = vtanh.f32 %v7075_v38 }
 0xab4   :  { %v6166_v40 = vpop.eup %6165  ;;  %v1174_v41 = vpop.permute.xlu0 %1173 }
 0xab5   :  { %v7080_v47 = vadd.f32 %v1174_v41, %v1166_v39  ;;  %967 = vrot.lane.b32.xlu0 %v6166_v40, %s6629_s10 }
 0xab7   :  { %6167 = vtanh.f32 %v7080_v47 }
 0xac4   :  { %v6168_v42 = vpop.eup %6167 }
 0xac5   :  { %1179 = vrot.lane.b32.xlu1 %v6168_v42, %s6629_s10 }
 0xb17   :  { %v757_v52 = vpop.permute.xlu1 %756 }
 0xb18   :  { %v759_v43 = vmul.f32 %v6156_v59, %v757_v52 }
 0xb1a   :  { %972 = vrot.lane.b32.xlu0 %v759_v43, %s6628_s3 }
 0xb27   :  { %v968_v45 = vpop.permute.xlu0 %967 }
 0xb28   :  { %v970_v46 = vmul.f32 %v6160_v62, %v968_v45 }
 0xb2a   :  { %1183 = vrot.lane.b32.xlu0 %v970_v46, %s6628_s3  ;;  %976 = vrot.lane.b32.xlu1 %v970_v46, %s6629_s10 }
 0xb37   :  { %v1180_v56 = vpop.permute.xlu1 %1179 }
 0xb38   :  { %v1182_v48 = vmul.f32 %v6162_v2, %v1180_v56 }
 0xb3a   :  { %1395 = vrot.lane.b32.xlu0 %v1182_v48, %s6628_s3  ;;  %1187 = vrot.lane.b32.xlu1 %v1182_v48, %s6629_s10 }
 0xb3e   :  { %1399 = vrot.lane.b32.xlu1 %v1394_v50, %s6628_s3 }
 0xb8c   :  { %v973_v51 = vpop.permute.xlu0 %972 }
 0xb9c   :  { %v977_v53 = vpop.permute.xlu1 %976 }
 0xb9d   :  { %v979_v54 = vsel %vm139_vm1, %v973_v51, %v977_v53  ;;  %v1711_v51 = vld [vmem:[#allocation3 + $0x5] sm:$0x1] }
 0xb9e   :  { %5412 = vmatmul.mubr.msk.f32.vlgmr.msra.gmra.mxu0 %vm141_vm2, %v979_v54 }
 0xb9f   :  { %5434 = vmatpush3.msra.mxu0 %v6774_v27  ;;  %5449 = vmatprep.mubr.msk.f32.mxu0 %vm6627_vm0, %v6626_v1  ;;  %v1184_v27 = vpop.permute.xlu0 %1183 }
 0xba0   :  { %5435 = vmatprep.subr.mxu0 %v6626_v1 }
 0xba1   :  { %5436 = vmatpush3.msra.mxu0 %v6776_v28 }
 0xba2   :  { %5437 = vmatprep.subr.mxu0 %v6626_v1 }
 0xba3   :  { %5438 = vmatpush3.msra.mxu0 %v6780_v29 }
 0xba4   :  { %5439 = vmatprep.subr.mxu0 %v6626_v1 }
 0xba5   :  { %5440 = vmatpush3.msra.mxu0 %v6784_v30 }
 0xba6   :  { %5441 = vmatprep.subr.mxu0 %v6626_v1 }
 0xba7   :  { %5442 = vmatpush3.msra.mxu0 %v6788_v32 }
 0xba8   :  { %5443 = vmatprep.subr.mxu0 %v6626_v1 }
 0xba9   :  { %5444 = vmatpush3.msra.mxu0 %v6793_v33 }
 0xbaa   :  { %5445 = vmatprep.subr.mxu0 %v6626_v1 }
 0xbab   :  { %5446 = vmatpush3.msra.mxu0 %v6797_v34 }
 0xbac   :  { %v1188_v28 = vpop.permute.xlu1 %1187  ;;  %5447 = vmatprep.subr.mxu0 %v6626_v1 }
 0xbad   :  { %v1190_v29 = vsel %vm139_vm1, %v1184_v27, %v1188_v28  ;;  %5448 = vmatpush3.msra.mxu0 %v6801_v35  ;;  %v7157_v35 = vld [vmem:[%s8329_s4] sm:$0x1]  ;;  %v7188_v28 = vld [vmem:[#allocation8 + $0x78] sm:$0xff] }
 0xbae   :  { %5450 = vmatmul.mubr.msk.f32.vlgmr.msra.gmra.mxu0 %vm141_vm2, %v1190_v29  ;;  %5471 = vmatprep.subr.mxu0 %v6626_v1  ;;  %v7194_v29 = vld [vmem:[#allocation8 + $0x70] sm:$0xff] }
 0xbaf   :  { %5472 = vmatpush3.msra.mxu0 %v6726_v3  ;;  %5487 = vmatprep.mubr.msk.f32.mxu0 %vm6627_vm0, %v6626_v1 }
 0xbb0   :  { %5473 = vmatprep.subr.mxu0 %v6626_v1  ;;  %v1400_v3 = vpop.permute.xlu1 %1399 }
 0xbb1   :  { %5474 = vmatpush3.msra.mxu0 %v6728_v4  ;;  %v1396_v4 = vpop.permute.xlu0 %1395 }
 0xbb2   :  { %5475 = vmatprep.subr.mxu0 %v6626_v1 }
 0xbb3   :  { %5476 = vmatpush3.msra.mxu0 %v6733_v5  ;;  %v1402_v5 = vsel %vm139_vm1, %v1396_v4, %v1400_v3  ;;  %v7198_v3 = vld [vmem:[#allocation8 + $0x68] sm:$0xff]  ;;  %v7202_v4 = vld [vmem:[#allocation8 + $0x60] sm:$0xff] }
 0xbb4   :  { %5477 = vmatprep.subr.mxu0 %v6626_v1 }
 0xbb5   :  { %5478 = vmatpush3.msra.mxu0 %v6737_v6 }
 0xbb6   :  { %5479 = vmatprep.subr.mxu0 %v6626_v1 }
 0xbb7   :  { %5480 = vmatpush3.msra.mxu0 %v6741_v7 }
 0xbb8   :  { %5481 = vmatprep.subr.mxu0 %v6626_v1 }
 0xbb9   :  { %5482 = vmatpush3.msra.mxu0 %v6745_v8 }
 0xbba   :  { %5483 = vmatprep.subr.mxu0 %v6626_v1 }
 0xbbb   :  { %5484 = vmatpush3.msra.mxu0 %v6749_v9 }
 0xbbc   :  { %5485 = vmatprep.subr.mxu0 %v6626_v1 }
 0xbbd   :  { %5486 = vmatpush3.msra.mxu0 %v6753_v10 }
 0xbbe   :  { %5488 = vmatmul.mubr.msk.f32.vlgmr.msra.gmra.mxu0 %vm141_vm2, %v1402_v5  ;;  %5509 = vmatprep.subr.mxu0 %v6626_v1  ;;  %v7206_v5 = vld [vmem:[#allocation8 + $0x58] sm:$0xff] }
 0xbbf   :  { %5510 = vmatpush3.msra.mxu0 %v6853_v18  ;;  %5525 = vmatprep.mubr.msk.f32.mxu0 %vm6627_vm0, %v6626_v1 }
 0xbc0   :  { %5511 = vmatprep.subr.mxu0 %v6626_v1 }
 0xbc1   :  { %5512 = vmatpush3.msra.mxu0 %v6855_v19 }
 0xbc2   :  { %5513 = vmatprep.subr.mxu0 %v6626_v1 }
 0xbc3   :  { %5514 = vmatpush3.msra.mxu0 %v6860_v20 }
 0xbc4   :  { %5515 = vmatprep.subr.mxu0 %v6626_v1 }
 0xbc5   :  { %5516 = vmatpush3.msra.mxu0 %v6866_v21 }
 0xbc6   :  { %5517 = vmatprep.subr.mxu0 %v6626_v1 }
 0xbc7   :  { %5518 = vmatpush3.msra.mxu0 %v6872_v23 }
 0xbc8   :  { %5519 = vmatprep.subr.mxu0 %v6626_v1 }
 0xbc9   :  { %5520 = vmatpush3.msra.mxu0 %v6878_v24 }
 0xbca   :  { %5521 = vmatprep.subr.mxu0 %v6626_v1 }
 0xbcb   :  { %5522 = vmatpush3.msra.mxu0 %v6884_v25 }
 0xbcc   :  { %5523 = vmatprep.subr.mxu0 %v6626_v1 }
 0xbcd   :  { %5524 = vmatpush3.msra.mxu0 %v6890_v26 }
 0xbce   :  { %5547 = vmatprep.subr.mxu0 %v6626_v1 }
 0xc5e   :  { %v1049_v6 = vpop.f32.mrf.mxu0 }
 0xc5f   :  { %v1050_v7 = vadd.f32 %v1049_v6, %v6970_v49  ;;  %v7210_v6 = vld [vmem:[#allocation8 + $0x50] sm:$0xff] }
 0xc60   :  { %v5413_v8 = vpop.f32.mrf.mxu0 }
 0xc61   :  { %6169 = vtanh.f32 %v1050_v7 }
 0xc6e   :  { %v6170_v9 = vpop.eup %6169  ;;  %v1260_v10 = vpop.f32.mrf.mxu0 }
 0xc6f   :  { %v1261_v30 = vadd.f32 %v1260_v10, %v6837_v44  ;;  %1062 = vrot.lane.b32.xlu0 %v6170_v9, %s6629_s10  ;;  %v4776_v44 = vmul.f32 -1.442695, %v1050_v7  ;;  %v7214_v7 = vld [vmem:[#allocation8 + $0x48] sm:$0xff]  ;;  %v7218_v10 = vld [vmem:[#allocation8 + $0x40] sm:$0xff] }
 0xc70   :  { %v5451_v32 = vpop.f32.mrf.mxu0 }
 0xc71   :  { %6171 = vtanh.f32 %v1261_v30  ;;  %v4780_v21 = vmul.f32 -1.442695, %v1261_v30  ;;  %v7224_v32 = vld [vmem:[#allocation8 + $0x38] sm:$0xff] }
 0xc7e   :  { %v6172_v33 = vpop.eup %6171  ;;  %v1472_v34 = vpop.f32.mrf.mxu0 }
 0xc7f   :  { %v1473_v18 = vadd.f32 %v7157_v35, %v1472_v34  ;;  %1273 = vrot.lane.b32.xlu1 %v6172_v33, %s6629_s10  ;;  %v7230_v33 = vld [vmem:[#allocation8 + $0x30] sm:$0xff]  ;;  %v7234_v34 = vld [vmem:[#allocation8 + $0x28] sm:$0xff] }
 0xc80   :  { %v5489_v19 = vpop.f32.mrf.mxu0 }
 0xc81   :  { %6173 = vtanh.f32 %v1473_v18  ;;  %v4784_v12 = vmul.f32 -1.442695, %v1473_v18  ;;  %v7238_v18 = vld [vmem:[#allocation8 + $0x20] sm:$0xff]  ;;  %v7242_v19 = vld [vmem:[#allocation8 + $0x18] sm:$0xff] }
 0xc82   :  { %6175 = vpow2.f32 %v4776_v44 }
 0xc83   :  { %6177 = vpow2.f32 %v4780_v21  ;;  %v7250_v21 = vld [vmem:[#allocation8 + $0x8] sm:$0xff] }
 0xc8e   :  { %v6174_v20 = vpop.eup %6173 }
 0xc8f   :  { %1485 = vrot.lane.b32.xlu0 %v6174_v20, %s6629_s10  ;;  %v6176_v55 = vpop.eup %6175  ;;  %v7246_v20 = vld [vmem:[#allocation8 + $0x10] sm:$0xff] }
 0xc90   :  { %v1056_v57 = vadd.f32 1.0, %v6176_v55  ;;  %v6178_v58 = vpop.eup %6177 }
 0xc91   :  { %v1267_v59 = vadd.f32 1.0, %v6178_v58  ;;  %v7260_v58 = vld [vmem:[#allocation8 + $0xb8] sm:$0xff] }
 0xc92   :  { %6179 = vrcp.f32 %v1056_v57 }
 0xc93   :  { %6181 = vpow2.f32 %v4784_v12  ;;  %v7255_v12 = vld [vmem:[#allocation8] sm:$0xff] }
 0xc94   :  { %6183 = vrcp.f32 %v1267_v59  ;;  %v7266_v59 = vld [vmem:[#allocation8 + $0xb0] sm:$0xff] }
 0xc9f   :  { %v6180_v13 = vpop.eup %6179 }
 0xca0   :  { %v6182_v61 = vpop.eup %6181  ;;  %v1060_v16 = vmul.f32 %v6180_v13, %v7071_v22 }
 0xca1   :  { %v1479_v62 = vadd.f32 1.0, %v6182_v61  ;;  %v6184_v63 = vpop.eup %6183 }
 0xca2   :  { %v1271_v37 = vmul.f32 %v6184_v63, %v7075_v38 }
 0xca3   :  { %6185 = vrcp.f32 %v1479_v62 }
 0xcb0   :  { %v6186_v11 = vpop.eup %6185 }
 0xcb1   :  { %v1483_v42 = vmul.f32 %v6186_v11, %v7080_v47 }
 0xce1   :  { %v1063_v60 = vpop.permute.xlu0 %1062 }
 0xce2   :  { %v1065_v17 = vmul.f32 %v6180_v13, %v1063_v60  ;;  %v7274_v60 = vld [vmem:[#allocation8 + $0xa0] sm:$0xff] }
 0xce4   :  { %1067 = vrot.lane.b32.xlu1 %v1065_v17, %s6628_s3 }
 0xcf1   :  { %v1274_v0 = vpop.permute.xlu1 %1273 }
 0xcf2   :  { %v1276_v2 = vmul.f32 %v6184_v63, %v1274_v0 }
 0xcf4   :  { %1278 = vrot.lane.b32.xlu0 %v1276_v2, %s6628_s3 }
 0xd01   :  { %v1486_v14 = vpop.permute.xlu0 %1485 }
 0xd02   :  { %v1488_v15 = vmul.f32 %v6186_v11, %v1486_v14 }
 0xd04   :  { %1490 = vrot.lane.b32.xlu1 %v1488_v15, %s6628_s3 }
 0xd56   :  { %v1068_v31 = vpop.permute.xlu1 %1067 }
 0xd57   :  { %v7166_v36 = vadd.f32 %v1068_v31, %v1060_v16 }
 0xd59   :  { %6187 = vtanh.f32 %v7166_v36 }
 0xd66   :  { %v6188_v39 = vpop.eup %6187  ;;  %v1279_v40 = vpop.permute.xlu0 %1278 }
 0xd67   :  { %v7170_v41 = vadd.f32 %v1279_v40, %v1271_v37  ;;  %1073 = vrot.lane.b32.xlu0 %v6188_v39, %s6629_s10 }
 0xd69   :  { %6189 = vtanh.f32 %v7170_v41 }
 0xd76   :  { %v6190_v52 = vpop.eup %6189  ;;  %v1491_v43 = vpop.permute.xlu1 %1490 }
 0xd77   :  { %v7175_v22 = vadd.f32 %v1491_v43, %v1483_v42  ;;  %1284 = vrot.lane.b32.xlu1 %v6190_v52, %s6629_s10 }
 0xd79   :  { %6191 = vtanh.f32 %v7175_v22 }
 0xd86   :  { %v6192_v45 = vpop.eup %6191 }
 0xd87   :  { %1496 = vrot.lane.b32.xlu0 %v6192_v45, %s6629_s10 }
 0xdd9   :  { %v1074_v38 = vpop.permute.xlu0 %1073 }
 0xdda   :  { %v1076_v46 = vmul.f32 %v6180_v13, %v1074_v38  ;;  %v7270_v13 = vld [vmem:[#allocation8 + $0xa8] sm:$0xff] }
 0xddc   :  { %1289 = vrot.lane.b32.xlu1 %v1076_v46, %s6628_s3 }
 0xde9   :  { %v1285_v56 = vpop.permute.xlu1 %1284 }
 0xdea   :  { %v1287_v48 = vmul.f32 %v6184_v63, %v1285_v56 }
 0xdec   :  { %1500 = vrot.lane.b32.xlu1 %v1287_v48, %s6628_s3  ;;  %1293 = vrot.lane.b32.xlu0 %v1287_v48, %s6629_s10 }
 0xdf9   :  { %v1497_v47 = vpop.permute.xlu0 %1496 }
 0xdfa   :  { %v1499_v50 = vmul.f32 %v6186_v11, %v1497_v47 }
 0xdfc   :  { %1712 = vrot.lane.b32.xlu1 %v1499_v50, %s6628_s3  ;;  %1504 = vrot.lane.b32.xlu0 %v1499_v50, %s6629_s10 }
 0xe00   :  { %1716 = vrot.lane.b32.xlu0 %v1711_v51, %s6628_s3 }
 0xe4e   :  { %v1290_v53 = vpop.permute.xlu1 %1289 }
 0xe5e   :  { %v1294_v54 = vpop.permute.xlu0 %1293  ;;  %v1501_v8 = vpop.permute.xlu1 %1500 }
 0xe5f   :  { %v1296_v27 = vsel %vm139_vm1, %v1290_v53, %v1294_v54 }
 0xe60   :  { %5469 = vmatmul.mubr.msk.f32.vlgmr.msra.gmra.mxu1 %vm141_vm2, %v1296_v27 }
 0xe61   :  { %5491 = vmatpush3.msra.mxu1 %v7188_v28  ;;  %5506 = vmatprep.mubr.msk.f32.mxu1 %vm6627_vm0, %v6626_v1 }
 0xe62   :  { %5492 = vmatprep.subr.mxu1 %v6626_v1 }
 0xe63   :  { %5493 = vmatpush3.msra.mxu1 %v7194_v29 }
 0xe64   :  { %5494 = vmatprep.subr.mxu1 %v6626_v1 }
 0xe65   :  { %5495 = vmatpush3.msra.mxu1 %v7198_v3 }
 0xe66   :  { %5496 = vmatprep.subr.mxu1 %v6626_v1 }
 0xe67   :  { %5497 = vmatpush3.msra.mxu1 %v7202_v4 }
 0xe68   :  { %5498 = vmatprep.subr.mxu1 %v6626_v1 }
 0xe69   :  { %5499 = vmatpush3.msra.mxu1 %v7206_v5 }
 0xe6a   :  { %5500 = vmatprep.subr.mxu1 %v6626_v1 }
 0xe6b   :  { %5501 = vmatpush3.msra.mxu1 %v7210_v6 }
 0xe6c   :  { %5502 = vmatprep.subr.mxu1 %v6626_v1 }
 0xe6d   :  { %5503 = vmatpush3.msra.mxu1 %v7214_v7 }
 0xe6e   :  { %5504 = vmatprep.subr.mxu1 %v6626_v1  ;;  %v1505_v9 = vpop.permute.xlu0 %1504  ;;  %v1713_v55 = vpop.permute.xlu1 %1712 }
 0xe6f   :  { %5505 = vmatpush3.msra.mxu1 %v7218_v10  ;;  %v1507_v30 = vsel %vm139_vm1, %v1501_v8, %v1505_v9 }
 0xe70   :  { %5528 = vmatprep.subr.mxu1 %v6626_v1  ;;  %5507 = vmatmul.mubr.msk.f32.vlgmr.msra.gmra.mxu1 %vm141_vm2, %v1507_v30 }
 0xe71   :  { %5529 = vmatpush3.msra.mxu1 %v7224_v32  ;;  %5544 = vmatprep.mubr.msk.f32.mxu1 %vm6627_vm0, %v6626_v1 }
 0xe72   :  { %5530 = vmatprep.subr.mxu1 %v6626_v1  ;;  %v1717_v44 = vpop.permute.xlu0 %1716 }
 0xe73   :  { %5531 = vmatpush3.msra.mxu1 %v7230_v33  ;;  %v1719_v57 = vsel %vm139_vm1, %v1713_v55, %v1717_v44 }
 0xe74   :  { %5532 = vmatprep.subr.mxu1 %v6626_v1 }
 0xe75   :  { %5533 = vmatpush3.msra.mxu1 %v7234_v34 }
 0xe76   :  { %5534 = vmatprep.subr.mxu1 %v6626_v1 }
 0xe77   :  { %5535 = vmatpush3.msra.mxu1 %v7238_v18 }
 0xe78   :  { %5536 = vmatprep.subr.mxu1 %v6626_v1 }
 0xe79   :  { %5537 = vmatpush3.msra.mxu1 %v7242_v19 }
 0xe7a   :  { %5538 = vmatprep.subr.mxu1 %v6626_v1 }
 0xe7b   :  { %5539 = vmatpush3.msra.mxu1 %v7246_v20 }
 0xe7c   :  { %5540 = vmatprep.subr.mxu1 %v6626_v1 }
 0xe7d   :  { %5541 = vmatpush3.msra.mxu1 %v7250_v21 }
 0xe7e   :  { %5542 = vmatprep.subr.mxu1 %v6626_v1 }
 0xe7f   :  { %5543 = vmatpush3.msra.mxu1 %v7255_v12 }
 0xe80   :  { %5545 = vmatmul.mubr.msk.f32.vlgmr.msra.gmra.mxu1 %vm141_vm2, %v1719_v57  ;;  %5566 = vmatprep.subr.mxu1 %v6626_v1 }
 0xe81   :  { %5567 = vmatpush3.msra.mxu1 %v7260_v58  ;;  %5582 = vmatprep.mubr.msk.f32.mxu1 %vm6627_vm0, %v6626_v1 }
 0xe82   :  { %5568 = vmatprep.subr.mxu1 %v6626_v1 }
 0xe83   :  { %5569 = vmatpush3.msra.mxu1 %v7266_v59 }
 0xe84   :  { %5570 = vmatprep.subr.mxu1 %v6626_v1 }
 0xe85   :  { %5571 = vmatpush3.msra.mxu1 %v7270_v13 }
 0xe86   :  { %5572 = vmatprep.subr.mxu1 %v6626_v1 }
 0xe87   :  { %5573 = vmatpush3.msra.mxu1 %v7274_v60 }
 0xe88   :  { %5574 = vmatprep.subr.mxu1 %v6626_v1 }
 0xe89   :  { %5575 = vmatpush3.msra.mxu1 %v6872_v23 }
 0xe8a   :  { %5576 = vmatprep.subr.mxu1 %v6626_v1 }
 0xe8b   :  { %5577 = vmatpush3.msra.mxu1 %v6878_v24  ;;  %v7290_v24 = vld [vmem:[%s8329_s4 + $0x1] sm:$0x1] }
 0xe8c   :  { %5578 = vmatprep.subr.mxu1 %v6626_v1 }
 0xe8d   :  { %5579 = vmatpush3.msra.mxu1 %v6884_v25 }
 0xe8e   :  { %5580 = vmatprep.subr.mxu1 %v6626_v1 }
 0xe8f   :  { %5581 = vmatpush3.msra.mxu1 %v6890_v26 }
 0xe90   :  { %5604 = vmatprep.subr.mxu1 %v6626_v1 }
 0xf20   :  { %v1366_v17 = vpop.f32.mrf.mxu1 }
 0xf21   :  { %v1367_v61 = vadd.f32 %v1366_v17, %v6970_v49 }
 0xf22   :  { %v5470_v62 = vpop.f32.mrf.mxu1 }
 0xf23   :  { %6193 = vtanh.f32 %v1367_v61  ;;  %v4782_v15 = vmul.f32 -1.442695, %v1367_v61 }
 0xf30   :  { %v6194_v23 = vpop.eup %6193  ;;  %v1577_v63 = vpop.f32.mrf.mxu1 }
 0xf31   :  { %v1578_v25 = vadd.f32 %v7290_v24, %v1577_v63  ;;  %1379 = vrot.lane.b32.xlu1 %v6194_v23, %s6629_s10 }
 0xf32   :  { %v5508_v0 = vpop.f32.mrf.mxu1 }
 0xf33   :  { %6195 = vtanh.f32 %v1578_v25  ;;  %v4786_v16 = vmul.f32 -1.442695, %v1578_v25 }
 0xf40   :  { %v6196_v26 = vpop.eup %6195  ;;  %v1789_v2 = vpop.f32.mrf.mxu1 }
 0xf41   :  { %v1790_v11 = vadd.f32 %v7157_v35, %v1789_v2  ;;  %1590 = vrot.lane.b32.xlu0 %v6196_v26, %s6629_s10  ;;  %v2028_v26 = vld [vmem:[#allocation3 + $0x6] sm:$0x1] }
 0xf42   :  { %v5546_v49 = vpop.f32.mrf.mxu1 }
 0xf43   :  { %6197 = vtanh.f32 %v1790_v11  ;;  %v4790_v39 = vmul.f32 -1.442695, %v1790_v11 }
 0xf44   :  { %6199 = vpow2.f32 %v4782_v15 }
 0xf45   :  { %6201 = vpow2.f32 %v4786_v16 }
 0xf50   :  { %v6198_v14 = vpop.eup %6197 }
 0xf51   :  { %1802 = vrot.lane.b32.xlu1 %v6198_v14, %s6629_s10  ;;  %v6200_v31 = vpop.eup %6199 }
 0xf52   :  { %v1373_v37 = vadd.f32 1.0, %v6200_v31  ;;  %v6202_v40 = vpop.eup %6201 }
 0xf53   :  { %v1584_v42 = vadd.f32 1.0, %v6202_v40  ;;  %v7373_v40 = vld [vmem:[#allocation8 + $0x98] sm:$0xff] }
 0xf54   :  { %6203 = vrcp.f32 %v1373_v37 }
 0xf55   :  { %6205 = vpow2.f32 %v4790_v39 }
 0xf56   :  { %6207 = vrcp.f32 %v1584_v42  ;;  %v7377_v42 = vld [vmem:[#allocation8 + $0x90] sm:$0xff] }
 0xf61   :  { %v6204_v52 = vpop.eup %6203 }
 0xf62   :  { %v6206_v38 = vpop.eup %6205  ;;  %v1377_v54 = vmul.f32 %v6204_v52, %v7166_v36 }
 0xf63   :  { %v1796_v46 = vadd.f32 1.0, %v6206_v38  ;;  %v6208_v56 = vpop.eup %6207  ;;  %v7392_v38 = vld [vmem:[%s8329_s4 + $0x2] sm:$0x1] }
 0xf64   :  { %v1588_v9 = vmul.f32 %v6208_v56, %v7170_v41 }
 0xf65   :  { %6209 = vrcp.f32 %v1796_v46 }
 0xf72   :  { %v6210_v50 = vpop.eup %6209 }
 0xf73   :  { %v1800_v57 = vmul.f32 %v6210_v50, %v7175_v22 }
 0xfa3   :  { %v1380_v43 = vpop.permute.xlu1 %1379 }
 0xfa4   :  { %v1382_v45 = vmul.f32 %v6204_v52, %v1380_v43  ;;  %v7385_v43 = vld [vmem:[#allocation8 + $0x80] sm:$0xff] }
 0xfa6   :  { %1384 = vrot.lane.b32.xlu0 %v1382_v45, %s6628_s3 }
 0xfb3   :  { %v1591_v48 = vpop.permute.xlu0 %1590 }
 0xfb4   :  { %v1593_v47 = vmul.f32 %v6208_v56, %v1591_v48 }
 0xfb6   :  { %1595 = vrot.lane.b32.xlu1 %v1593_v47, %s6628_s3 }
 0xfc3   :  { %v1803_v51 = vpop.permute.xlu1 %1802 }
 0xfc4   :  { %v1805_v53 = vmul.f32 %v6210_v50, %v1803_v51 }
 0xfc6   :  { %1807 = vrot.lane.b32.xlu0 %v1805_v53, %s6628_s3 }
0x1018   :  { %v1385_v27 = vpop.permute.xlu0 %1384 }
0x1019   :  { %v7301_v8 = vadd.f32 %v1385_v27, %v1377_v54 }
0x101b   :  { %6211 = vtanh.f32 %v7301_v8 }
0x1028   :  { %v6212_v30 = vpop.eup %6211  ;;  %v1596_v44 = vpop.permute.xlu1 %1595 }
0x1029   :  { %v7305_v55 = vadd.f32 %v1596_v44, %v1588_v9  ;;  %1390 = vrot.lane.b32.xlu1 %v6212_v30, %s6629_s10 }
0x102b   :  { %6213 = vtanh.f32 %v7305_v55 }
0x1038   :  { %v6214_v17 = vpop.eup %6213  ;;  %v1808_v61 = vpop.permute.xlu0 %1807 }
0x1039   :  { %v7310_v36 = vadd.f32 %v1808_v61, %v1800_v57  ;;  %1601 = vrot.lane.b32.xlu0 %v6214_v17, %s6629_s10 }
0x103b   :  { %6215 = vtanh.f32 %v7310_v36 }
0x1048   :  { %v6216_v62 = vpop.eup %6215 }
0x1049   :  { %1813 = vrot.lane.b32.xlu1 %v6216_v62, %s6629_s10 }
0x109b   :  { %v1391_v41 = vpop.permute.xlu1 %1390 }
0x109c   :  { %v1393_v23 = vmul.f32 %v6204_v52, %v1391_v41  ;;  %v7381_v52 = vld [vmem:[#allocation8 + $0x88] sm:$0xff] }
0x109e   :  { %1606 = vrot.lane.b32.xlu0 %v1393_v23, %s6628_s3 }
0x10ab   :  { %v1602_v63 = vpop.permute.xlu0 %1601 }
0x10ac   :  { %v1604_v25 = vmul.f32 %v6208_v56, %v1602_v63 }
0x10ae   :  { %1817 = vrot.lane.b32.xlu0 %v1604_v25, %s6628_s3  ;;  %1610 = vrot.lane.b32.xlu1 %v1604_v25, %s6629_s10 }
0x10bb   :  { %v1814_v22 = vpop.permute.xlu1 %1813 }
0x10bc   :  { %v1816_v0 = vmul.f32 %v6210_v50, %v1814_v22 }
0x10be   :  { %2029 = vrot.lane.b32.xlu0 %v1816_v0, %s6628_s3  ;;  %1821 = vrot.lane.b32.xlu1 %v1816_v0, %s6629_s10 }
0x10c2   :  { %2033 = vrot.lane.b32.xlu1 %v2028_v26, %s6628_s3 }
0x1110   :  { %v1607_v2 = vpop.permute.xlu0 %1606 }
0x1120   :  { %v1611_v11 = vpop.permute.xlu1 %1610  ;;  %v1818_v14 = vpop.permute.xlu0 %1817 }
0x1121   :  { %v1613_v49 = vsel %vm139_vm1, %v1607_v2, %v1611_v11 }
0x1122   :  { %5526 = vmatmul.mubr.msk.f32.vlgmr.msra.gmra.mxu0 %vm141_vm2, %v1613_v49 }
0x1123   :  { %5548 = vmatpush3.msra.mxu0 %v7188_v28  ;;  %5563 = vmatprep.mubr.msk.f32.mxu0 %vm6627_vm0, %v6626_v1 }
0x1124   :  { %5549 = vmatprep.subr.mxu0 %v6626_v1 }
0x1125   :  { %5550 = vmatpush3.msra.mxu0 %v7194_v29 }
0x1126   :  { %5551 = vmatprep.subr.mxu0 %v6626_v1 }
0x1127   :  { %5552 = vmatpush3.msra.mxu0 %v7198_v3 }
0x1128   :  { %5553 = vmatprep.subr.mxu0 %v6626_v1 }
0x1129   :  { %5554 = vmatpush3.msra.mxu0 %v7202_v4 }
0x112a   :  { %5555 = vmatprep.subr.mxu0 %v6626_v1 }
0x112b   :  { %5556 = vmatpush3.msra.mxu0 %v7206_v5 }
0x112c   :  { %5557 = vmatprep.subr.mxu0 %v6626_v1 }
0x112d   :  { %5558 = vmatpush3.msra.mxu0 %v7210_v6 }
0x112e   :  { %5559 = vmatprep.subr.mxu0 %v6626_v1 }
0x112f   :  { %5560 = vmatpush3.msra.mxu0 %v7214_v7 }
0x1130   :  { %v1822_v15 = vpop.permute.xlu1 %1821  ;;  %5561 = vmatprep.subr.mxu0 %v6626_v1  ;;  %v2030_v37 = vpop.permute.xlu0 %2029 }
0x1131   :  { %v1824_v16 = vsel %vm139_vm1, %v1818_v14, %v1822_v15  ;;  %5562 = vmatpush3.msra.mxu0 %v7218_v10 }
0x1132   :  { %5564 = vmatmul.mubr.msk.f32.vlgmr.msra.gmra.mxu0 %vm141_vm2, %v1824_v16  ;;  %5585 = vmatprep.subr.mxu0 %v6626_v1 }
0x1133   :  { %5586 = vmatpush3.msra.mxu0 %v7224_v32  ;;  %5601 = vmatprep.mubr.msk.f32.mxu0 %vm6627_vm0, %v6626_v1 }
0x1134   :  { %5587 = vmatprep.subr.mxu0 %v6626_v1  ;;  %v2034_v31 = vpop.permute.xlu1 %2033 }
0x1135   :  { %5588 = vmatpush3.msra.mxu0 %v7230_v33  ;;  %v2036_v39 = vsel %vm139_vm1, %v2030_v37, %v2034_v31 }
0x1136   :  { %5589 = vmatprep.subr.mxu0 %v6626_v1 }
0x1137   :  { %5590 = vmatpush3.msra.mxu0 %v7234_v34 }
0x1138   :  { %5591 = vmatprep.subr.mxu0 %v6626_v1 }
0x1139   :  { %5592 = vmatpush3.msra.mxu0 %v7238_v18 }
0x113a   :  { %5593 = vmatprep.subr.mxu0 %v6626_v1 }
0x113b   :  { %5594 = vmatpush3.msra.mxu0 %v7242_v19 }
0x113c   :  { %5595 = vmatprep.subr.mxu0 %v6626_v1 }
0x113d   :  { %5596 = vmatpush3.msra.mxu0 %v7246_v20 }
0x113e   :  { %5597 = vmatprep.subr.mxu0 %v6626_v1 }
0x113f   :  { %5598 = vmatpush3.msra.mxu0 %v7250_v21 }
0x1140   :  { %5599 = vmatprep.subr.mxu0 %v6626_v1 }
0x1141   :  { %5600 = vmatpush3.msra.mxu0 %v7255_v12 }
0x1142   :  { %5602 = vmatmul.mubr.msk.f32.vlgmr.msra.gmra.mxu0 %vm141_vm2, %v2036_v39  ;;  %5623 = vmatprep.subr.mxu0 %v6626_v1 }
0x1143   :  { %5624 = vmatpush3.msra.mxu0 %v7260_v58  ;;  %5639 = vmatprep.mubr.msk.f32.mxu0 %vm6627_vm0, %v6626_v1 }
0x1144   :  { %5625 = vmatprep.subr.mxu0 %v6626_v1 }
0x1145   :  { %5626 = vmatpush3.msra.mxu0 %v7266_v59 }
0x1146   :  { %5627 = vmatprep.subr.mxu0 %v6626_v1 }
0x1147   :  { %5628 = vmatpush3.msra.mxu0 %v7270_v13 }
0x1148   :  { %5629 = vmatprep.subr.mxu0 %v6626_v1 }
0x1149   :  { %5630 = vmatpush3.msra.mxu0 %v7274_v60 }
0x114a   :  { %5631 = vmatprep.subr.mxu0 %v6626_v1 }
0x114b   :  { %5632 = vmatpush3.msra.mxu0 %v7373_v40 }
0x114c   :  { %5633 = vmatprep.subr.mxu0 %v6626_v1 }
0x114d   :  { %5634 = vmatpush3.msra.mxu0 %v7377_v42 }
0x114e   :  { %5635 = vmatprep.subr.mxu0 %v6626_v1 }
0x114f   :  { %5636 = vmatpush3.msra.mxu0 %v7381_v52 }
0x1150   :  { %5637 = vmatprep.subr.mxu0 %v6626_v1 }
0x1151   :  { %5638 = vmatpush3.msra.mxu0 %v7385_v43 }
0x1152   :  { %5661 = vmatprep.subr.mxu0 %v6626_v1 }
0x11e2   :  { %v1683_v45 = vpop.f32.mrf.mxu0 }
0x11e3   :  { %v1684_v46 = vadd.f32 %v7392_v38, %v1683_v45 }
0x11e4   :  { %v5527_v56 = vpop.f32.mrf.mxu0 }
0x11e5   :  { %6217 = vtanh.f32 %v1684_v46  ;;  %v4788_v44 = vmul.f32 -1.442695, %v1684_v46 }
0x11f2   :  { %v6218_v48 = vpop.eup %6217  ;;  %v1894_v47 = vpop.f32.mrf.mxu0 }
0x11f3   :  { %v1895_v50 = vadd.f32 %v7290_v24, %v1894_v47  ;;  %1696 = vrot.lane.b32.xlu0 %v6218_v48, %s6629_s10 }
0x11f4   :  { %v5565_v51 = vpop.f32.mrf.mxu0 }
0x11f5   :  { %6219 = vtanh.f32 %v1895_v50  ;;  %v4792_v57 = vmul.f32 -1.442695, %v1895_v50 }
0x1202   :  { %v6220_v53 = vpop.eup %6219  ;;  %v2106_v54 = vpop.f32.mrf.mxu0 }
0x1203   :  { %v2107_v27 = vadd.f32 %v7157_v35, %v2106_v54  ;;  %1907 = vrot.lane.b32.xlu1 %v6220_v53, %s6629_s10 }
0x1204   :  { %v5603_v9 = vpop.f32.mrf.mxu0 }
0x1205   :  { %6221 = vtanh.f32 %v2107_v27  ;;  %v4796_v62 = vmul.f32 -1.442695, %v2107_v27 }
0x1206   :  { %6223 = vpow2.f32 %v4788_v44  ;;  %v2345_v44 = vld [vmem:[#allocation3 + $0x7] sm:$0x1] }
0x1207   :  { %6225 = vpow2.f32 %v4792_v57 }
0x1212   :  { %v6222_v30 = vpop.eup %6221 }
0x1213   :  { %2119 = vrot.lane.b32.xlu0 %v6222_v30, %s6629_s10  ;;  %v6224_v17 = vpop.eup %6223 }
0x1214   :  { %v1690_v61 = vadd.f32 1.0, %v6224_v17  ;;  %v6226_v41 = vpop.eup %6225 }
0x1215   :  { %v1901_v23 = vadd.f32 1.0, %v6226_v41 }
0x1216   :  { %6227 = vrcp.f32 %v1690_v61 }
0x1217   :  { %6229 = vpow2.f32 %v4796_v62 }
0x1218   :  { %6231 = vrcp.f32 %v1901_v23 }
0x1223   :  { %v6228_v63 = vpop.eup %6227 }
0x1224   :  { %v6230_v0 = vpop.eup %6229  ;;  %v1694_v31 = vmul.f32 %v6228_v63, %v7301_v8 }
0x1225   :  { %v2113_v26 = vadd.f32 1.0, %v6230_v0  ;;  %v6232_v2 = vpop.eup %6231 }
0x1226   :  { %v1905_v45 = vmul.f32 %v6232_v2, %v7305_v55 }
0x1227   :  { %6233 = vrcp.f32 %v2113_v26 }
0x1234   :  { %v6234_v14 = vpop.eup %6233 }
0x1235   :  { %v2117_v47 = vmul.f32 %v6234_v14, %v7310_v36 }
0x1265   :  { %v1697_v25 = vpop.permute.xlu0 %1696 }
0x1266   :  { %v1699_v22 = vmul.f32 %v6228_v63, %v1697_v25 }
0x1268   :  { %1701 = vrot.lane.b32.xlu1 %v1699_v22, %s6628_s3 }
0x1275   :  { %v1908_v11 = vpop.permute.xlu1 %1907 }
0x1276   :  { %v1910_v49 = vmul.f32 %v6232_v2, %v1908_v11 }
0x1278   :  { %1912 = vrot.lane.b32.xlu0 %v1910_v49, %s6628_s3 }
0x1285   :  { %v2120_v15 = vpop.permute.xlu0 %2119 }
0x1286   :  { %v2122_v16 = vmul.f32 %v6234_v14, %v2120_v15 }
0x1288   :  { %2124 = vrot.lane.b32.xlu1 %v2122_v16, %s6628_s3 }
0x12da   :  { %v1702_v37 = vpop.permute.xlu1 %1701 }
0x12db   :  { %v7404_v39 = vadd.f32 %v1702_v37, %v1694_v31 }
0x12dd   :  { %6235 = vtanh.f32 %v7404_v39 }
0x12ea   :  { %v6236_v46 = vpop.eup %6235  ;;  %v1913_v56 = vpop.permute.xlu0 %1912 }
0x12eb   :  { %v7408_v48 = vadd.f32 %v1913_v56, %v1905_v45  ;;  %1707 = vrot.lane.b32.xlu0 %v6236_v46, %s6629_s10 }
0x12ed   :  { %6237 = vtanh.f32 %v7408_v48 }
0x12fa   :  { %v6238_v50 = vpop.eup %6237  ;;  %v2125_v51 = vpop.permute.xlu1 %2124 }
0x12fb   :  { %v7413_v8 = vadd.f32 %v2125_v51, %v2117_v47  ;;  %1918 = vrot.lane.b32.xlu1 %v6238_v50, %s6629_s10 }
0x12fd   :  { %6239 = vtanh.f32 %v7413_v8 }
0x130a   :  { %v6240_v53 = vpop.eup %6239 }
0x130b   :  { %2130 = vrot.lane.b32.xlu0 %v6240_v53, %s6629_s10 }
0x135d   :  { %v1708_v55 = vpop.permute.xlu0 %1707 }
0x135e   :  { %v1710_v54 = vmul.f32 %v6228_v63, %v1708_v55 }
0x1360   :  { %1923 = vrot.lane.b32.xlu1 %v1710_v54, %s6628_s3 }
0x136d   :  { %v1919_v27 = vpop.permute.xlu1 %1918 }
0x136e   :  { %v1921_v9 = vmul.f32 %v6232_v2, %v1919_v27 }
0x1370   :  { %2134 = vrot.lane.b32.xlu1 %v1921_v9, %s6628_s3  ;;  %1927 = vrot.lane.b32.xlu0 %v1921_v9, %s6629_s10 }
0x137d   :  { %v2131_v36 = vpop.permute.xlu0 %2130 }
0x137e   :  { %v2133_v30 = vmul.f32 %v6234_v14, %v2131_v36 }
0x1380   :  { %2346 = vrot.lane.b32.xlu1 %v2133_v30, %s6628_s3  ;;  %2138 = vrot.lane.b32.xlu0 %v2133_v30, %s6629_s10 }
0x1384   :  { %2350 = vrot.lane.b32.xlu0 %v2345_v44, %s6628_s3 }
0x13d2   :  { %v1924_v57 = vpop.permute.xlu1 %1923 }
0x13e2   :  { %v1928_v17 = vpop.permute.xlu0 %1927  ;;  %v2135_v62 = vpop.permute.xlu1 %2134 }
0x13e3   :  { %v1930_v61 = vsel %vm139_vm1, %v1924_v57, %v1928_v17 }
0x13e4   :  { %5583 = vmatmul.mubr.msk.f32.vlgmr.msra.gmra.mxu1 %vm141_vm2, %v1930_v61 }
0x13e5   :  { %5605 = vmatpush3.msra.mxu1 %v7188_v28  ;;  %5620 = vmatprep.mubr.msk.f32.mxu1 %vm6627_vm0, %v6626_v1 }
0x13e6   :  { %5606 = vmatprep.subr.mxu1 %v6626_v1 }
0x13e7   :  { %5607 = vmatpush3.msra.mxu1 %v7194_v29 }
0x13e8   :  { %5608 = vmatprep.subr.mxu1 %v6626_v1 }
0x13e9   :  { %5609 = vmatpush3.msra.mxu1 %v7198_v3 }
0x13ea   :  { %5610 = vmatprep.subr.mxu1 %v6626_v1 }
0x13eb   :  { %5611 = vmatpush3.msra.mxu1 %v7202_v4 }
0x13ec   :  { %5612 = vmatprep.subr.mxu1 %v6626_v1 }
0x13ed   :  { %5613 = vmatpush3.msra.mxu1 %v7206_v5 }
0x13ee   :  { %5614 = vmatprep.subr.mxu1 %v6626_v1 }
0x13ef   :  { %5615 = vmatpush3.msra.mxu1 %v7210_v6 }
0x13f0   :  { %5616 = vmatprep.subr.mxu1 %v6626_v1 }
0x13f1   :  { %5617 = vmatpush3.msra.mxu1 %v7214_v7 }
0x13f2   :  { %5618 = vmatprep.subr.mxu1 %v6626_v1  ;;  %v2139_v41 = vpop.permute.xlu0 %2138 }
0x13f3   :  { %5619 = vmatpush3.msra.mxu1 %v7218_v10  ;;  %v2141_v23 = vsel %vm139_vm1, %v2135_v62, %v2139_v41  ;;  %v4807_v41 = vld [vmem:[%s8326_s1] ss:$0 sm:$0xff] }
0x13f4   :  { %5642 = vmatprep.subr.mxu1 %v6626_v1  ;;  %5621 = vmatmul.mubr.msk.f32.vlgmr.msra.gmra.mxu1 %vm141_vm2, %v2141_v23 }
0x13f5   :  { %5643 = vmatpush3.msra.mxu1 %v7224_v32  ;;  %5658 = vmatprep.mubr.msk.f32.mxu1 %vm6627_vm0, %v6626_v1 }
0x13f6   :  { %5644 = vmatprep.subr.mxu1 %v6626_v1  ;;  %v2351_v32 = vpop.permute.xlu0 %2350 }
0x13f7   :  { %5645 = vmatpush3.msra.mxu1 %v7230_v33  ;;  %v2347_v33 = vpop.permute.xlu1 %2346 }
0x13f8   :  { %5646 = vmatprep.subr.mxu1 %v6626_v1 }
0x13f9   :  { %5647 = vmatpush3.msra.mxu1 %v7234_v34  ;;  %v2353_v34 = vsel %vm139_vm1, %v2347_v33, %v2351_v32 }
0x13fa   :  { %5648 = vmatprep.subr.mxu1 %v6626_v1 }
0x13fb   :  { %5649 = vmatpush3.msra.mxu1 %v7238_v18 }
0x13fc   :  { %5650 = vmatprep.subr.mxu1 %v6626_v1 }
0x13fd   :  { %5651 = vmatpush3.msra.mxu1 %v7242_v19 }
0x13fe   :  { %5652 = vmatprep.subr.mxu1 %v6626_v1 }
0x13ff   :  { %5653 = vmatpush3.msra.mxu1 %v7246_v20 }
0x1400   :  { %5654 = vmatprep.subr.mxu1 %v6626_v1 }
0x1401   :  { %5655 = vmatpush3.msra.mxu1 %v7250_v21 }
0x1402   :  { %5656 = vmatprep.subr.mxu1 %v6626_v1 }
0x1403   :  { %5657 = vmatpush3.msra.mxu1 %v7255_v12 }
0x1404   :  { %5659 = vmatmul.mubr.msk.f32.vlgmr.msra.gmra.mxu1 %vm141_vm2, %v2353_v34  ;;  %5680 = vmatprep.subr.mxu1 %v6626_v1 }
0x1405   :  { %5681 = vmatpush3.msra.mxu1 %v7260_v58  ;;  %5696 = vmatprep.mubr.msk.f32.mxu1 %vm6627_vm0, %v6626_v1 }
0x1406   :  { %5682 = vmatprep.subr.mxu1 %v6626_v1 }
0x1407   :  { %5683 = vmatpush3.msra.mxu1 %v7266_v59 }
0x1408   :  { %5684 = vmatprep.subr.mxu1 %v6626_v1 }
0x1409   :  { %5685 = vmatpush3.msra.mxu1 %v7270_v13 }
0x140a   :  { %5686 = vmatprep.subr.mxu1 %v6626_v1 }
0x140b   :  { %5687 = vmatpush3.msra.mxu1 %v7274_v60 }
0x140c   :  { %5688 = vmatprep.subr.mxu1 %v6626_v1 }
0x140d   :  { %5689 = vmatpush3.msra.mxu1 %v7373_v40 }
0x140e   :  { %5690 = vmatprep.subr.mxu1 %v6626_v1 }
0x140f   :  { %5691 = vmatpush3.msra.mxu1 %v7377_v42 }
0x1410   :  { %5692 = vmatprep.subr.mxu1 %v6626_v1 }
0x1411   :  { %5693 = vmatpush3.msra.mxu1 %v7381_v52 }
0x1412   :  { %5694 = vmatprep.subr.mxu1 %v6626_v1 }
0x1413   :  { %5695 = vmatpush3.msra.mxu1 %v7385_v43 }
0x1414   :  { %5718 = vmatprep.subr.mxu1 %v6626_v1 }
0x14a4   :  { %v2000_v18 = vpop.f32.mrf.mxu1 }
0x14a5   :  { %v2001_v19 = vadd.f32 %v7392_v38, %v2000_v18  ;;  %v2663_v18 = vld [vmem:[#allocation9 + $0x8] sm:$0xff] }
0x14a6   :  { %v5584_v20 = vpop.f32.mrf.mxu1 }
0x14a7   :  { %6241 = vtanh.f32 %v2001_v19  ;;  %v4794_v43 = vmul.f32 -1.442695, %v2001_v19  ;;  %v2662_v20 = vld [vmem:[#allocation9] sm:$0xff] }
0x14b4   :  { %v6242_v21 = vpop.eup %6241  ;;  %v2211_v12 = vpop.f32.mrf.mxu1 }
0x14b5   :  { %v2212_v58 = vadd.f32 %v7290_v24, %v2211_v12  ;;  %2013 = vrot.lane.b32.xlu1 %v6242_v21, %s6629_s10 }
0x14b6   :  { %v5622_v59 = vpop.f32.mrf.mxu1 }
0x14b7   :  { %6243 = vtanh.f32 %v2212_v58  ;;  %v4798_v63 = vmul.f32 -1.442695, %v2212_v58 }
0x14c4   :  { %v6244_v13 = vpop.eup %6243  ;;  %v2423_v60 = vpop.f32.mrf.mxu1 }
0x14c5   :  { %v2424_v40 = vadd.f32 %v7157_v35, %v2423_v60  ;;  %2224 = vrot.lane.b32.xlu0 %v6244_v13, %s6629_s10 }
0x14c6   :  { %v5660_v42 = vpop.f32.mrf.mxu1 }
0x14c7   :  { %6245 = vtanh.f32 %v2424_v40  ;;  %v4802_v0 = vmul.f32 -1.442695, %v2424_v40 }
0x14c8   :  { %6247 = vpow2.f32 %v4794_v43  ;;  %v2688_v43 = vld [vmem:[%s8331_s6] sm:$0x1] }
0x14c9   :  { %6249 = vpow2.f32 %v4798_v63 }
0x14d4   :  { %v6246_v52 = vpop.eup %6245 }
0x14d5   :  { %2436 = vrot.lane.b32.xlu1 %v6246_v52, %s6629_s10  ;;  %v6248_v25 = vpop.eup %6247 }
0x14d6   :  { %v2007_v22 = vadd.f32 1.0, %v6248_v25  ;;  %v6250_v26 = vpop.eup %6249 }
0x14d7   :  { %v2218_v2 = vadd.f32 1.0, %v6250_v26 }
0x14d8   :  { %6251 = vrcp.f32 %v2007_v22 }
0x14d9   :  { %6253 = vpow2.f32 %v4802_v0 }
0x14da   :  { %6255 = vrcp.f32 %v2218_v2 }
0x14e5   :  { %v6252_v11 = vpop.eup %6251 }
0x14e6   :  { %v6254_v14 = vpop.eup %6253  ;;  %v2011_v47 = vmul.f32 %v6252_v11, %v7404_v39 }
0x14e7   :  { %v2430_v15 = vadd.f32 1.0, %v6254_v14  ;;  %v6256_v16 = vpop.eup %6255 }
0x14e8   :  { %v2222_v53 = vmul.f32 %v6256_v16, %v7408_v48 }
0x14e9   :  { %6257 = vrcp.f32 %v2430_v15 }
0x14f6   :  { %v6258_v45 = vpop.eup %6257 }
0x14f7   :  { %v2434_v9 = vmul.f32 %v6258_v45, %v7413_v8 }
0x1527   :  { %v2014_v35 = vpop.permute.xlu1 %2013 }
0x1528   :  { %v2016_v49 = vmul.f32 %v6252_v11, %v2014_v35 }
0x152a   :  { %2018 = vrot.lane.b32.xlu0 %v2016_v49, %s6628_s3 }
0x1537   :  { %v2225_v31 = vpop.permute.xlu0 %2224 }
0x1538   :  { %v2227_v37 = vmul.f32 %v6256_v16, %v2225_v31 }
0x153a   :  { %2229 = vrot.lane.b32.xlu1 %v2227_v37, %s6628_s3 }
0x1547   :  { %v2437_v46 = vpop.permute.xlu1 %2436 }
0x1548   :  { %v2439_v56 = vmul.f32 %v6258_v45, %v2437_v46 }
0x154a   :  { %2441 = vrot.lane.b32.xlu0 %v2439_v56, %s6628_s3 }
0x159c   :  { %v2019_v50 = vpop.permute.xlu0 %2018 }
0x159d   :  { %v7494_v51 = vadd.f32 %v2019_v50, %v2011_v47 }
0x159f   :  { %6259 = vtanh.f32 %v7494_v51 }
0x15ac   :  { %v6260_v55 = vpop.eup %6259  ;;  %v2230_v54 = vpop.permute.xlu1 %2229 }
0x15ad   :  { %v7498_v27 = vadd.f32 %v2230_v54, %v2222_v53  ;;  %2024 = vrot.lane.b32.xlu1 %v6260_v55, %s6629_s10 }
0x15af   :  { %6261 = vtanh.f32 %v7498_v27 }
0x15bc   :  { %v6262_v36 = vpop.eup %6261  ;;  %v2442_v30 = vpop.permute.xlu0 %2441 }
0x15bd   :  { %v7503_v39 = vadd.f32 %v2442_v30, %v2434_v9  ;;  %2235 = vrot.lane.b32.xlu0 %v6262_v36, %s6629_s10 }
0x15bf   :  { %6263 = vtanh.f32 %v7503_v39 }
0x15cc   :  { %v6264_v44 = vpop.eup %6263 }
0x15cd   :  { %2447 = vrot.lane.b32.xlu1 %v6264_v44, %s6629_s10 }
0x161f   :  { %v2025_v48 = vpop.permute.xlu1 %2024 }
0x1620   :  { %v2027_v57 = vmul.f32 %v6252_v11, %v2025_v48 }
0x1622   :  { %2240 = vrot.lane.b32.xlu0 %v2027_v57, %s6628_s3 }
0x162f   :  { %v2236_v17 = vpop.permute.xlu0 %2235 }
0x1630   :  { %v2238_v61 = vmul.f32 %v6256_v16, %v2236_v17 }
0x1632   :  { %2451 = vrot.lane.b32.xlu0 %v2238_v61, %s6628_s3  ;;  %2244 = vrot.lane.b32.xlu1 %v2238_v61, %s6629_s10 }
0x163f   :  { %v2448_v8 = vpop.permute.xlu1 %2447 }
0x1640   :  { %v2450_v62 = vmul.f32 %v6258_v45, %v2448_v8 }
0x1642   :  { %2709 = vrot.lane.b32.xlu0 %v2450_v62, %s6628_s3  ;;  %2455 = vrot.lane.b32.xlu1 %v2450_v62, %s6629_s10 }
0x1646   :  { %2717 = vrot.lane.b32.xlu1 %v4807_v41, %s6628_s3 }
0x1694   :  { %v2241_v23 = vpop.permute.xlu0 %2240 }
0x16a4   :  { %v2245_v32 = vpop.permute.xlu1 %2244 }
0x16a5   :  { %v2247_v33 = vsel %vm139_vm1, %v2241_v23, %v2245_v32 }
0x16a6   :  { %5640 = vmatmul.mubr.msk.f32.vlgmr.msra.gmra.mxu0 %vm141_vm2, %v2247_v33 }
0x16a7   :  { %5662 = vmatpush3.msra.mxu0 %v7188_v28  ;;  %5677 = vmatprep.mubr.msk.f32.mxu0 %vm6627_vm0, %v6626_v1  ;;  %v2452_v28 = vpop.permute.xlu0 %2451 }
0x16a8   :  { %5663 = vmatprep.subr.mxu0 %v6626_v1 }
0x16a9   :  { %5664 = vmatpush3.msra.mxu0 %v7194_v29 }
0x16aa   :  { %5665 = vmatprep.subr.mxu0 %v6626_v1 }
0x16ab   :  { %5666 = vmatpush3.msra.mxu0 %v7198_v3  ;;  %v2669_v3 = vld [vmem:[#allocation9 + $0x38] sm:$0xff] }
0x16ac   :  { %5667 = vmatprep.subr.mxu0 %v6626_v1 }
0x16ad   :  { %5668 = vmatpush3.msra.mxu0 %v7202_v4  ;;  %v2668_v4 = vld [vmem:[#allocation9 + $0x30] sm:$0xff] }
0x16ae   :  { %5669 = vmatprep.subr.mxu0 %v6626_v1 }
0x16af   :  { %5670 = vmatpush3.msra.mxu0 %v7206_v5  ;;  %v2667_v5 = vld [vmem:[#allocation9 + $0x28] sm:$0xff] }
0x16b0   :  { %5671 = vmatprep.subr.mxu0 %v6626_v1 }
0x16b1   :  { %5672 = vmatpush3.msra.mxu0 %v7210_v6  ;;  %v2666_v6 = vld [vmem:[#allocation9 + $0x20] sm:$0xff] }
0x16b2   :  { %5673 = vmatprep.subr.mxu0 %v6626_v1 }
0x16b3   :  { %5674 = vmatpush3.msra.mxu0 %v7214_v7  ;;  %v2665_v7 = vld [vmem:[#allocation9 + $0x18] sm:$0xff] }
0x16b4   :  { %v2456_v29 = vpop.permute.xlu1 %2455  ;;  %5675 = vmatprep.subr.mxu0 %v6626_v1  ;;  %v2710_v21 = vpop.permute.xlu0 %2709 }
0x16b5   :  { %v2458_v34 = vsel %vm139_vm1, %v2452_v28, %v2456_v29  ;;  %5676 = vmatpush3.msra.mxu0 %v7218_v10  ;;  %v2664_v10 = vld [vmem:[#allocation9 + $0x10] sm:$0xff] }
0x16b6   :  { %5678 = vmatmul.mubr.msk.f32.vlgmr.msra.gmra.mxu0 %vm141_vm2, %v2458_v34  ;;  %5699 = vmatprep.subr.mxu0 %v6626_v1  ;;  %v7586_v34 = vld [vmem:[#allocation9 + $0x78] sm:$0xff] }
0x16b7   :  { %5700 = vmatpush3.msra.mxu0 %v2669_v3  ;;  %5715 = vmatprep.mubr.msk.f32.mxu0 %vm6627_vm0, %v6626_v1 }
0x16b8   :  { %5701 = vmatprep.subr.mxu0 %v6626_v1  ;;  %v2718_v19 = vpop.permute.xlu1 %2717 }
0x16b9   :  { %5702 = vmatpush3.msra.mxu0 %v2668_v4  ;;  %v2720_v12 = vsel %vm139_vm1, %v2710_v21, %v2718_v19  ;;  %v7612_v19 = vld [vmem:[#allocation9 + $0x48] sm:$0xff] }
0x16ba   :  { %5703 = vmatprep.subr.mxu0 %v6626_v1 }
0x16bb   :  { %5704 = vmatpush3.msra.mxu0 %v2667_v5  ;;  %v7590_v5 = vld [vmem:[#allocation9 + $0x70] sm:$0xff] }
0x16bc   :  { %5705 = vmatprep.subr.mxu0 %v6626_v1 }
0x16bd   :  { %5706 = vmatpush3.msra.mxu0 %v2666_v6  ;;  %v7596_v6 = vld [vmem:[#allocation9 + $0x68] sm:$0xff] }
0x16be   :  { %5707 = vmatprep.subr.mxu0 %v6626_v1 }
0x16bf   :  { %5708 = vmatpush3.msra.mxu0 %v2665_v7  ;;  %v7600_v7 = vld [vmem:[#allocation9 + $0x60] sm:$0xff] }
0x16c0   :  { %5709 = vmatprep.subr.mxu0 %v6626_v1 }
0x16c1   :  { %5710 = vmatpush3.msra.mxu0 %v2664_v10  ;;  %v7604_v10 = vld [vmem:[#allocation9 + $0x58] sm:$0xff] }
0x16c2   :  { %5711 = vmatprep.subr.mxu0 %v6626_v1 }
0x16c3   :  { %5712 = vmatpush3.msra.mxu0 %v2663_v18  ;;  %v7608_v18 = vld [vmem:[#allocation9 + $0x50] sm:$0xff] }
0x16c4   :  { %5713 = vmatprep.subr.mxu0 %v6626_v1 }
0x16c5   :  { %5714 = vmatpush3.msra.mxu0 %v2662_v20  ;;  %v7616_v20 = vld [vmem:[#allocation9 + $0x40] sm:$0xff] }
0x16c6   :  { %5716 = vmatmul.mubr.msk.f32.vlgmr.msra.gmra.mxu0 %vm141_vm2, %v2720_v12  ;;  %5737 = vmatprep.subr.mxu0 %v6626_v1 }
0x16c7   :  { %5753 = vmatprep.mubr.msk.f32.mxu0 %vm6627_vm0, %v6626_v1 }
0x1766   :  { %v2317_v58 = vpop.f32.mrf.mxu0 }
0x1767   :  { %v2318_v59 = vadd.f32 %v7392_v38, %v2317_v58 }
0x1768   :  { %v5641_v13 = vpop.f32.mrf.mxu0 }
0x1769   :  { %6265 = vtanh.f32 %v2318_v59  ;;  %v4800_v2 = vmul.f32 -1.442695, %v2318_v59 }
0x1776   :  { %v6266_v60 = vpop.eup %6265  ;;  %v2528_v40 = vpop.f32.mrf.mxu0 }
0x1777   :  { %v2529_v42 = vadd.f32 %v7290_v24, %v2528_v40  ;;  %2330 = vrot.lane.b32.xlu0 %v6266_v60, %s6629_s10  ;;  %v7630_v40 = vld [vmem:[%s8331_s6 + $0x1] sm:$0x1] }
0x1778   :  { %v5679_v52 = vpop.f32.mrf.mxu0 }
0x1779   :  { %6267 = vtanh.f32 %v2529_v42  ;;  %v4804_v24 = vmul.f32 -1.442695, %v2529_v42 }
0x1786   :  { %v6268_v63 = vpop.eup %6267  ;;  %v2790_v25 = vpop.f32.mrf.mxu0 }
0x1787   :  { %v2791_v22 = vadd.f32 %v2790_v25, %v2688_v43  ;;  %2541 = vrot.lane.b32.xlu1 %v6268_v63, %s6629_s10 }
0x1788   :  { %v5717_v0 = vpop.f32.mrf.mxu0 }
0x1789   :  { %6269 = vtanh.f32 %v2791_v22  ;;  %v4809_v49 = vmul.f32 -1.442695, %v2791_v22 }
0x178a   :  { %6271 = vpow2.f32 %v4800_v2 }
0x178b   :  { %6273 = vpow2.f32 %v4804_v24 }
0x1796   :  { %v6270_v26 = vpop.eup %6269 }
0x1797   :  { %2803 = vrot.lane.b32.xlu0 %v6270_v26, %s6629_s10  ;;  %v6272_v11 = vpop.eup %6271 }
0x1798   :  { %v2324_v35 = vadd.f32 1.0, %v6272_v11  ;;  %v6274_v14 = vpop.eup %6273 }
0x1799   :  { %v2535_v15 = vadd.f32 1.0, %v6274_v14 }
0x179a   :  { %6275 = vrcp.f32 %v2324_v35 }
0x179b   :  { %6277 = vpow2.f32 %v4809_v49 }
0x179c   :  { %6279 = vrcp.f32 %v2535_v15 }
0x17a7   :  { %v6276_v16 = vpop.eup %6275 }
0x17a8   :  { %v6278_v45 = vpop.eup %6277  ;;  %v2328_v9 = vmul.f32 %v6276_v16, %v7494_v51 }
0x17a9   :  { %v2797_v46 = vadd.f32 1.0, %v6278_v45  ;;  %v6280_v56 = vpop.eup %6279 }
0x17aa   :  { %v2539_v44 = vmul.f32 %v6280_v56, %v7498_v27 }
0x17ab   :  { %6281 = vrcp.f32 %v2797_v46 }
0x17b8   :  { %v6282_v53 = vpop.eup %6281 }
0x17b9   :  { %v2801_v61 = vmul.f32 %v6282_v53, %v7503_v39 }
0x17e9   :  { %v2331_v31 = vpop.permute.xlu0 %2330 }
0x17ea   :  { %v2333_v37 = vmul.f32 %v6276_v16, %v2331_v31 }
0x17ec   :  { %2335 = vrot.lane.b32.xlu1 %v2333_v37, %s6628_s3 }
0x17f9   :  { %v2542_v47 = vpop.permute.xlu1 %2541 }
0x17fa   :  { %v2544_v50 = vmul.f32 %v6280_v56, %v2542_v47 }
0x17fc   :  { %2546 = vrot.lane.b32.xlu0 %v2544_v50, %s6628_s3 }
0x1809   :  { %v2804_v55 = vpop.permute.xlu0 %2803 }
0x180a   :  { %v2806_v54 = vmul.f32 %v6282_v53, %v2804_v55  ;;  %v7647_v55 = vld [vmem:[#allocation9 + $0xb8] sm:$0xff] }
0x180b   :  { %5738 = vmatpush3.msra.mxu0 %v7647_v55 }
0x180c   :  { %2808 = vrot.lane.b32.xlu1 %v2806_v54, %s6628_s3  ;;  %v7649_v54 = vld [vmem:[#allocation9 + $0xb0] sm:$0xff]  ;;  %5739 = vmatprep.subr.mxu0 %v6626_v1 }
0x180d   :  { %5740 = vmatpush3.msra.mxu0 %v7649_v54 }
0x180e   :  { %5741 = vmatprep.subr.mxu0 %v6626_v1 }
0x185e   :  { %v2336_v36 = vpop.permute.xlu1 %2335 }
0x185f   :  { %v7565_v30 = vadd.f32 %v2336_v36, %v2328_v9  ;;  %v7653_v9 = vld [vmem:[#allocation9 + $0xa8] sm:$0xff]  ;;  %v7657_v36 = vld [vmem:[#allocation9 + $0xa0] sm:$0xff] }
0x1860   :  { %5742 = vmatpush3.msra.mxu0 %v7653_v9 }
0x1861   :  { %6283 = vtanh.f32 %v7565_v30  ;;  %5743 = vmatprep.subr.mxu0 %v6626_v1 }
0x1862   :  { %5744 = vmatpush3.msra.mxu0 %v7657_v36 }
0x1863   :  { %5745 = vmatprep.subr.mxu0 %v6626_v1 }
0x186e   :  { %v6284_v48 = vpop.eup %6283  ;;  %v2547_v57 = vpop.permute.xlu0 %2546 }
0x186f   :  { %v7569_v17 = vadd.f32 %v2547_v57, %v2539_v44  ;;  %2341 = vrot.lane.b32.xlu0 %v6284_v48, %s6629_s10  ;;  %v7665_v44 = vld [vmem:[#allocation9 + $0x90] sm:$0xff]  ;;  %v7669_v48 = vld [vmem:[#allocation9 + $0x88] sm:$0xff] }
0x1871   :  { %6285 = vtanh.f32 %v7569_v17 }
0x187e   :  { %v6286_v8 = vpop.eup %6285  ;;  %v2809_v62 = vpop.permute.xlu1 %2808 }
0x187f   :  { %v7574_v51 = vadd.f32 %v2809_v62, %v2801_v61  ;;  %2552 = vrot.lane.b32.xlu1 %v6286_v8, %s6629_s10  ;;  %v7676_v61 = vld [vmem:[#allocation9 + $0x80] sm:$0xff] }
0x1881   :  { %6287 = vtanh.f32 %v7574_v51 }
0x188e   :  { %v6288_v41 = vpop.eup %6287 }
0x188f   :  { %2814 = vrot.lane.b32.xlu0 %v6288_v41, %s6629_s10 }
0x18e1   :  { %v2342_v27 = vpop.permute.xlu0 %2341 }
0x18e2   :  { %v2344_v23 = vmul.f32 %v6276_v16, %v2342_v27 }
0x18e4   :  { %2557 = vrot.lane.b32.xlu1 %v2344_v23, %s6628_s3 }
0x18f1   :  { %v2553_v32 = vpop.permute.xlu1 %2552 }
0x18f2   :  { %v2555_v33 = vmul.f32 %v6280_v56, %v2553_v32  ;;  %v7707_v32 = vld [vmem:[%s8331_s6 + $0x2] sm:$0x1] }
0x18f4   :  { %2818 = vrot.lane.b32.xlu1 %v2555_v33, %s6628_s3  ;;  %2561 = vrot.lane.b32.xlu0 %v2555_v33, %s6629_s10 }
0x1901   :  { %v2815_v39 = vpop.permute.xlu0 %2814 }
0x1902   :  { %v7582_v28 = vmul.f32 %v6282_v53, %v2815_v39 }
0x1904   :  { %2822 = vrot.lane.b32.xlu0 %v7582_v28, %s6629_s10 }
0x1956   :  { %v2558_v29 = vpop.permute.xlu1 %2557 }
0x1966   :  { %v2562_v3 = vpop.permute.xlu0 %2561  ;;  %v2819_v21 = vpop.permute.xlu1 %2818 }
0x1967   :  { %v2564_v4 = vsel %vm139_vm1, %v2558_v29, %v2562_v3 }
0x1968   :  { %5697 = vmatmul.mubr.msk.f32.vlgmr.msra.gmra.mxu1 %vm141_vm2, %v2564_v4 }
0x1969   :  { %5719 = vmatpush3.msra.mxu1 %v7586_v34  ;;  %5734 = vmatprep.mubr.msk.f32.mxu1 %vm6627_vm0, %v6626_v1 }
0x196a   :  { %5720 = vmatprep.subr.mxu1 %v6626_v1 }
0x196b   :  { %5721 = vmatpush3.msra.mxu1 %v7590_v5 }
0x196c   :  { %5722 = vmatprep.subr.mxu1 %v6626_v1 }
0x196d   :  { %5723 = vmatpush3.msra.mxu1 %v7596_v6 }
0x196e   :  { %5724 = vmatprep.subr.mxu1 %v6626_v1 }
0x196f   :  { %5725 = vmatpush3.msra.mxu1 %v7600_v7 }
0x1970   :  { %5726 = vmatprep.subr.mxu1 %v6626_v1 }
0x1971   :  { %5727 = vmatpush3.msra.mxu1 %v7604_v10 }
0x1972   :  { %5728 = vmatprep.subr.mxu1 %v6626_v1 }
0x1973   :  { %5729 = vmatpush3.msra.mxu1 %v7608_v18 }
0x1974   :  { %5730 = vmatprep.subr.mxu1 %v6626_v1 }
0x1975   :  { %5731 = vmatpush3.msra.mxu1 %v7612_v19 }
0x1976   :  { %5732 = vmatprep.subr.mxu1 %v6626_v1  ;;  %v2823_v12 = vpop.permute.xlu0 %2822 }
0x1977   :  { %v2825_v58 = vsel %vm139_vm1, %v2819_v21, %v2823_v12  ;;  %5733 = vmatpush3.msra.mxu1 %v7616_v20 }
0x1978   :  { %5735 = vmatmul.mubr.msk.f32.vlgmr.msra.gmra.mxu1 %vm141_vm2, %v2825_v58  ;;  %5756 = vmatprep.subr.mxu1 %v6626_v1 }
0x1979   :  { %5780 = vmatprep.mubr.msk.f32.mxu1 %vm6627_vm0, %v6626_v1 }
0x1a28   :  { %v2634_v59 = vpop.f32.mrf.mxu1 }
0x1a29   :  { %v2635_v13 = vadd.f32 %v7392_v38, %v2634_v59 }
0x1a2a   :  { %v5698_v60 = vpop.f32.mrf.mxu1 }
0x1a2b   :  { %6289 = vtanh.f32 %v2635_v13  ;;  %v4806_v22 = vmul.f32 -1.442695, %v2635_v13 }
0x1a38   :  { %v6290_v42 = vpop.eup %6289  ;;  %v2895_v52 = vpop.f32.mrf.mxu1 }
0x1a39   :  { %v2896_v43 = vadd.f32 %v2895_v52, %v7630_v40  ;;  %2647 = vrot.lane.b32.xlu1 %v6290_v42, %s6629_s10 }
0x1a3a   :  { %v5736_v63 = vpop.f32.mrf.mxu1 }
0x1a3b   :  { %6291 = vtanh.f32 %v2896_v43  ;;  %v4811_v38 = vmul.f32 -1.442695, %v2896_v43  ;;  %v7718_v43 = vld [vmem:[#allocation11 + $0x58] sm:$0xff]  ;;  %v7720_v63 = vld [vmem:[#allocation11 + $0x50] sm:$0xff] }
0x1a3c   :  { %6293 = vpow2.f32 %v4806_v22  ;;  %5757 = vmatpush3.msra.mxu1 %v7718_v43  ;;  %v7732_v22 = vld [vmem:[#allocation11 + $0x38] sm:$0xff] }
0x1a3d   :  { %6295 = vpow2.f32 %v4811_v38  ;;  %5758 = vmatprep.subr.mxu1 %v6626_v1 }
0x1a3e   :  { %5759 = vmatpush3.msra.mxu1 %v7720_v63 }
0x1a3f   :  { %5760 = vmatprep.subr.mxu1 %v6626_v1 }
0x1a48   :  { %v6292_v25 = vpop.eup %6291 }
0x1a49   :  { %2908 = vrot.lane.b32.xlu0 %v6292_v25, %s6629_s10  ;;  %v6294_v0 = vpop.eup %6293  ;;  %v7724_v25 = vld [vmem:[#allocation11 + $0x48] sm:$0xff] }
0x1a4a   :  { %v2641_v26 = vadd.f32 1.0, %v6294_v0  ;;  %v6296_v2 = vpop.eup %6295  ;;  %5761 = vmatpush3.msra.mxu1 %v7724_v25  ;;  %v7736_v0 = vld [vmem:[#allocation11 + $0x30] sm:$0xff] }
0x1a4b   :  { %v2902_v24 = vadd.f32 1.0, %v6296_v2  ;;  %5762 = vmatprep.subr.mxu1 %v6626_v1  ;;  %v7741_v2 = vld [vmem:[#allocation11 + $0x28] sm:$0xff] }
0x1a4c   :  { %6297 = vrcp.f32 %v2641_v26  ;;  %v3054_v26 = vld [vmem:[#allocation6 + $0x1] sm:$0x1] }
0x1a4d   :  { %6299 = vrcp.f32 %v2902_v24  ;;  %v7745_v24 = vld [vmem:[#allocation11 + $0x20] sm:$0xff] }
0x1a59   :  { %v6298_v11 = vpop.eup %6297 }
0x1a5a   :  { %v6300_v14 = vpop.eup %6299  ;;  %v2645_v31 = vmul.f32 %v6298_v11, %v7565_v30  ;;  %v7661_v30 = vld [vmem:[#allocation9 + $0x98] sm:$0xff] }
0x1a5b   :  { %v2906_v46 = vmul.f32 %v6300_v14, %v7569_v17  ;;  %5746 = vmatpush3.msra.mxu0 %v7661_v30 }
0x1a5c   :  { %5747 = vmatprep.subr.mxu0 %v6626_v1 }
0x1a5d   :  { %5748 = vmatpush3.msra.mxu0 %v7665_v44 }
0x1a5e   :  { %5749 = vmatprep.subr.mxu0 %v6626_v1 }
0x1a5f   :  { %5750 = vmatpush3.msra.mxu0 %v7669_v48 }
0x1a60   :  { %5751 = vmatprep.subr.mxu0 %v6626_v1 }
0x1a61   :  { %5752 = vmatpush3.msra.mxu0 %v7676_v61 }
0x1a62   :  { %5783 = vmatprep.subr.mxu0 %v6626_v1 }
0x1aab   :  { %v2648_v35 = vpop.permute.xlu1 %2647 }
0x1aac   :  { %v2650_v49 = vmul.f32 %v6298_v11, %v2648_v35  ;;  %v7754_v35 = vld [vmem:[#allocation11 + $0x10] sm:$0xff] }
0x1aae   :  { %2652 = vrot.lane.b32.xlu1 %v2650_v49, %s6628_s3  ;;  %v7758_v49 = vld [vmem:[#allocation11 + $0x8] sm:$0xff] }
0x1abb   :  { %v2909_v15 = vpop.permute.xlu0 %2908 }
0x1abc   :  { %v2911_v16 = vmul.f32 %v6300_v14, %v2909_v15 }
0x1abe   :  { %2913 = vrot.lane.b32.xlu0 %v2911_v16, %s6628_s3 }
0x1b20   :  { %v2653_v37 = vpop.permute.xlu1 %2652 }
0x1b21   :  { %v7638_v45 = vadd.f32 %v2653_v37, %v2645_v31 }
0x1b23   :  { %6301 = vtanh.f32 %v7638_v45 }
0x1b30   :  { %v6302_v56 = vpop.eup %6301  ;;  %v2914_v47 = vpop.permute.xlu0 %2913 }
0x1b31   :  { %v7642_v50 = vadd.f32 %v2914_v47, %v2906_v46  ;;  %2658 = vrot.lane.b32.xlu1 %v6302_v56, %s6629_s10  ;;  %v7796_v47 = vld [vmem:[%s8333_s8] sm:$0x1] }
0x1b33   :  { %6303 = vtanh.f32 %v7642_v50 }
0x1b40   :  { %v6304_v53 = vpop.eup %6303 }
0x1b41   :  { %2919 = vrot.lane.b32.xlu0 %v6304_v53, %s6629_s10 }
0x1ba3   :  { %v2659_v57 = vpop.permute.xlu1 %2658 }
0x1ba4   :  { %v2661_v17 = vmul.f32 %v6298_v11, %v2659_v57  ;;  %v7750_v11 = vld [vmem:[#allocation11 + $0x18] sm:$0xff] }
0x1ba6   :  { %2924 = vrot.lane.b32.xlu1 %v2661_v17, %s6628_s3 }
0x1bb3   :  { %v2920_v8 = vpop.permute.xlu0 %2919 }
0x1bb4   :  { %v7680_v62 = vmul.f32 %v6300_v14, %v2920_v8  ;;  %v7764_v14 = vld [vmem:[#allocation11] sm:$0xff] }
0x1bb6   :  { %2928 = vrot.lane.b32.xlu0 %v7680_v62, %s6629_s10 }
0x1c18   :  { %v2925_v41 = vpop.permute.xlu1 %2924 }
0x1c28   :  { %v2929_v27 = vpop.permute.xlu0 %2928 }
0x1c29   :  { %v2931_v23 = vsel %vm139_vm1, %v2925_v41, %v2929_v27 }
0x1c2a   :  { %5754 = vmatmul.mubr.msk.f32.vlgmr.msra.gmra.mxu0 %vm141_vm2, %v2931_v23 }
0x1c2b   :  { %5784 = vmatpush3.msra.mxu0 %v7586_v34  ;;  %5799 = vmatprep.mubr.msk.f32.mxu0 %vm6627_vm0, %v6626_v1 }
0x1c2c   :  { %5785 = vmatprep.subr.mxu0 %v6626_v1 }
0x1c2d   :  { %5786 = vmatpush3.msra.mxu0 %v7590_v5 }
0x1c2e   :  { %5787 = vmatprep.subr.mxu0 %v6626_v1 }
0x1c2f   :  { %5788 = vmatpush3.msra.mxu0 %v7596_v6 }
0x1c30   :  { %5789 = vmatprep.subr.mxu0 %v6626_v1 }
0x1c31   :  { %5790 = vmatpush3.msra.mxu0 %v7600_v7 }
0x1c32   :  { %5791 = vmatprep.subr.mxu0 %v6626_v1 }
0x1c33   :  { %5792 = vmatpush3.msra.mxu0 %v7604_v10 }
0x1c34   :  { %5793 = vmatprep.subr.mxu0 %v6626_v1 }
0x1c35   :  { %5794 = vmatpush3.msra.mxu0 %v7608_v18 }
0x1c36   :  { %5795 = vmatprep.subr.mxu0 %v6626_v1 }
0x1c37   :  { %5796 = vmatpush3.msra.mxu0 %v7612_v19 }
0x1c38   :  { %5797 = vmatprep.subr.mxu0 %v6626_v1 }
0x1c39   :  { %5798 = vmatpush3.msra.mxu0 %v7616_v20 }
0x1c3a   :  { %5821 = vmatprep.subr.mxu0 %v6626_v1 }
0x1cea   :  { %v3001_v33 = vpop.f32.mrf.mxu0 }
0x1ceb   :  { %v3002_v39 = vadd.f32 %v3001_v33, %v7707_v32 }
0x1cec   :  { %v5755_v29 = vpop.f32.mrf.mxu0 }
0x1ced   :  { %6305 = vtanh.f32 %v3002_v39  ;;  %v4813_v4 = vmul.f32 -1.442695, %v3002_v39 }
0x1cef   :  { %6307 = vpow2.f32 %v4813_v4 }
0x1cfa   :  { %v6306_v3 = vpop.eup %6305 }
0x1cfb   :  { %3014 = vrot.lane.b32.xlu1 %v6306_v3, %s6629_s10 }
0x1cfc   :  { %v6308_v21 = vpop.eup %6307 }
0x1cfd   :  { %v3008_v12 = vadd.f32 1.0, %v6308_v21 }
0x1cff   :  { %6309 = vrcp.f32 %v3008_v12 }
0x1d0c   :  { %v6310_v58 = vpop.eup %6309 }
0x1d0d   :  { %v3012_v60 = vmul.f32 %v6310_v58, %v7638_v45 }
0x1d6d   :  { %v3015_v59 = vpop.permute.xlu1 %3014 }
0x1d6e   :  { %v3017_v13 = vmul.f32 %v6310_v58, %v3015_v59 }
0x1d70   :  { %3019 = vrot.lane.b32.xlu0 %v3017_v13, %s6628_s3 }
0x1d74   :  { %3055 = vrot.lane.b32.xlu0 %v7582_v28, %s6628_s3  ;;  %v7728_v28 = vld [vmem:[#allocation11 + $0x40] sm:$0xff] }
0x1d75   :  { %5763 = vmatpush3.msra.mxu1 %v7728_v28 }
0x1d76   :  { %5764 = vmatprep.subr.mxu1 %v6626_v1 }
0x1d77   :  { %5765 = vmatpush3.msra.mxu1 %v7732_v22 }
0x1d78   :  { %5766 = vmatprep.subr.mxu1 %v6626_v1 }
0x1d79   :  { %5767 = vmatpush3.msra.mxu1 %v7736_v0 }
0x1d7a   :  { %5768 = vmatprep.subr.mxu1 %v6626_v1 }
0x1d7b   :  { %5769 = vmatpush3.msra.mxu1 %v7741_v2 }
0x1d7c   :  { %5770 = vmatprep.subr.mxu1 %v6626_v1 }
0x1d7d   :  { %5771 = vmatpush3.msra.mxu1 %v7745_v24 }
0x1d7e   :  { %5772 = vmatprep.subr.mxu1 %v6626_v1 }
0x1d7f   :  { %5773 = vmatpush3.msra.mxu1 %v7750_v11 }
0x1d80   :  { %5774 = vmatprep.subr.mxu1 %v6626_v1 }
0x1d81   :  { %5775 = vmatpush3.msra.mxu1 %v7754_v35 }
0x1d82   :  { %5776 = vmatprep.subr.mxu1 %v6626_v1 }
0x1d83   :  { %5777 = vmatpush3.msra.mxu1 %v7758_v49 }
0x1d84   :  { %5778 = vmatprep.subr.mxu1 %v6626_v1 }
0x1d85   :  { %5779 = vmatpush3.msra.mxu1 %v7764_v14 }
0x1d86   :  { %5802 = vmatprep.subr.mxu1 %v6626_v1 }
0x1de2   :  { %v3020_v42 = vpop.permute.xlu0 %3019 }
0x1de3   :  { %v7715_v52 = vadd.f32 %v3020_v42, %v3012_v60 }
0x1de5   :  { %6311 = vtanh.f32 %v7715_v52 }
0x1de6   :  { %v3056_v31 = vpop.permute.xlu0 %3055 }
0x1df2   :  { %v6312_v38 = vpop.eup %6311 }
0x1df3   :  { %3025 = vrot.lane.b32.xlu1 %v6312_v38, %s6629_s10 }
0x1df7   :  { %3059 = vrot.lane.b32.xlu1 %v3054_v26, %s6628_s3 }
0x1e65   :  { %v3026_v15 = vpop.permute.xlu1 %3025 }
0x1e66   :  { %v7768_v16 = vmul.f32 %v6310_v58, %v3026_v15 }
0x1e68   :  { %3063 = vrot.lane.b32.xlu0 %v7768_v16, %s6630_s5 }
0x1e69   :  { %v3060_v37 = vpop.permute.xlu1 %3059 }
0x1e6a   :  { %v3066_v45 = vsel %vm139_vm1, %v3056_v31, %v3060_v37 }
0x1eda   :  { %v3064_v46 = vpop.permute.xlu0 %3063 }
0x1edb   :  { %v3067_v56 = vsel %vm141_vm2, %v3066_v45, %v3064_v46 }
0x1edc   :  { %5781 = vmatmul.mubr.msk.f32.vlgmr.msra.gmra.mxu1 %vm3068_vm3, %v3067_v56 }
0x1edd   :  { %5803 = vmatpush3.msra.mxu1 %v7647_v55  ;;  %5818 = vmatprep.mubr.msk.f32.mxu1 %vm6627_vm0, %v6626_v1 }
0x1ede   :  { %5804 = vmatprep.subr.mxu1 %v6626_v1 }
0x1edf   :  { %5805 = vmatpush3.msra.mxu1 %v7649_v54 }
0x1ee0   :  { %5806 = vmatprep.subr.mxu1 %v6626_v1 }
0x1ee1   :  { %5807 = vmatpush3.msra.mxu1 %v7653_v9 }
0x1ee2   :  { %5808 = vmatprep.subr.mxu1 %v6626_v1 }
0x1ee3   :  { %5809 = vmatpush3.msra.mxu1 %v7657_v36 }
0x1ee4   :  { %5810 = vmatprep.subr.mxu1 %v6626_v1 }
0x1ee5   :  { %5811 = vmatpush3.msra.mxu1 %v7661_v30 }
0x1ee6   :  { %5812 = vmatprep.subr.mxu1 %v6626_v1 }
0x1ee7   :  { %5813 = vmatpush3.msra.mxu1 %v7665_v44 }
0x1ee8   :  { %5814 = vmatprep.subr.mxu1 %v6626_v1 }
0x1ee9   :  { %5815 = vmatpush3.msra.mxu1 %v7669_v48 }
0x1eea   :  { %5816 = vmatprep.subr.mxu1 %v6626_v1 }
0x1eeb   :  { %5817 = vmatpush3.msra.mxu1 %v7676_v61 }
0x1eec   :  { %5848 = vmatprep.subr.mxu1 %v6626_v1 }
0x1f9c   :  { %v3138_v53 = vpop.f32.mrf.mxu1 }
0x1f9d   :  { %v3139_v57 = vadd.f32 %v3138_v53, %v7796_v47 }
0x1f9e   :  { %v5782_v17 = vpop.f32.mrf.mxu1 }
0x1f9f   :  { %6313 = vtanh.f32 %v3139_v57  ;;  %v4816_v41 = vmul.f32 -1.442695, %v3139_v57 }
0x1fa1   :  { %6315 = vpow2.f32 %v4816_v41 }
0x1fac   :  { %v6314_v8 = vpop.eup %6313 }
0x1fad   :  { %3151 = vrot.lane.b32.xlu1 %v6314_v8, %s6629_s10 }
0x1fae   :  { %v6316_v27 = vpop.eup %6315 }
0x1faf   :  { %v3145_v23 = vadd.f32 1.0, %v6316_v27 }
0x1fb1   :  { %6317 = vrcp.f32 %v3145_v23 }
0x1fbe   :  { %v6318_v33 = vpop.eup %6317 }
0x1fbf   :  { %v3149_v3 = vmul.f32 %v6318_v33, %v7574_v51 }
0x201f   :  { %v3152_v39 = vpop.permute.xlu1 %3151 }
0x2020   :  { %v3154_v29 = vmul.f32 %v6318_v33, %v3152_v39 }
0x2022   :  { %3156 = vrot.lane.b32.xlu0 %v3154_v29, %s6628_s3 }
0x2026   :  { %3166 = vrot.lane.b32.xlu0 %v7680_v62, %s6628_s3 }
0x2094   :  { %v3157_v4 = vpop.permute.xlu0 %3156 }
0x2095   :  { %v7804_v21 = vadd.f32 %v3157_v4, %v3149_v3 }
0x2097   :  { %6319 = vtanh.f32 %v7804_v21 }
0x2098   :  { %v3167_v13 = vpop.permute.xlu0 %3166 }
0x20a4   :  { %v6320_v12 = vpop.eup %6319 }
0x20a5   :  { %3162 = vrot.lane.b32.xlu1 %v6320_v12, %s6629_s10 }
0x2117   :  { %v3163_v58 = vpop.permute.xlu1 %3162 }
0x2118   :  { %v7808_v59 = vmul.f32 %v6318_v33, %v3163_v58 }
0x211a   :  { %3170 = vrot.lane.b32.xlu1 %v7808_v59, %s6629_s10 }
0x218c   :  { %v3171_v60 = vpop.permute.xlu1 %3170 }
0x218d   :  { %v3173_v62 = vsel %vm139_vm1, %v3167_v13, %v3171_v60 }
0x218e   :  { %5800 = vmatmul.mubr.msk.f32.vlgmr.msra.gmra.mxu0 %vm141_vm2, %v3173_v62 }
0x218f   :  { %5822 = vmatpush3.msra.mxu0 %v7718_v43  ;;  %5845 = vmatprep.mubr.msk.f32.mxu0 %vm6627_vm0, %v6626_v1 }
0x2190   :  { %5823 = vmatprep.subr.mxu0 %v6626_v1 }
0x2191   :  { %5824 = vmatpush3.msra.mxu0 %v7720_v63 }
0x2192   :  { %5825 = vmatprep.subr.mxu0 %v6626_v1 }
0x2193   :  { %5826 = vmatpush3.msra.mxu0 %v7724_v25 }
0x2194   :  { %5827 = vmatprep.subr.mxu0 %v6626_v1 }
0x2195   :  { %5828 = vmatpush3.msra.mxu0 %v7728_v28 }
0x2196   :  { %5829 = vmatprep.subr.mxu0 %v6626_v1 }
0x2197   :  { %5830 = vmatpush3.msra.mxu0 %v7732_v22 }
0x2198   :  { %5831 = vmatprep.subr.mxu0 %v6626_v1 }
0x2199   :  { %5832 = vmatpush3.msra.mxu0 %v7736_v0 }
0x219a   :  { %5833 = vmatprep.subr.mxu0 %v6626_v1 }
0x219b   :  { %5834 = vmatpush3.msra.mxu0 %v7741_v2 }
0x219c   :  { %5835 = vmatprep.subr.mxu0 %v6626_v1 }
0x219d   :  { %5836 = vmatpush3.msra.mxu0 %v7745_v24 }
0x219e   :  { %5837 = vmatprep.subr.mxu0 %v6626_v1 }
0x219f   :  { %5838 = vmatpush3.msra.mxu0 %v7750_v11 }
0x21a0   :  { %5839 = vmatprep.subr.mxu0 %v6626_v1 }
0x21a1   :  { %5840 = vmatpush3.msra.mxu0 %v7754_v35 }
0x21a2   :  { %5841 = vmatprep.subr.mxu0 %v6626_v1 }
0x21a3   :  { %5842 = vmatpush3.msra.mxu0 %v7758_v49 }
0x21a4   :  { %5843 = vmatprep.subr.mxu0 %v6626_v1 }
0x21a5   :  { %5844 = vmatpush3.msra.mxu0 %v7764_v14 }
0x21a6   :  { %5867 = vmatprep.subr.mxu0 %v6626_v1 }
0x224e   :  { %v3243_v51 = vpop.f32.mrf.mxu0 }
0x224f   :  { %v3244_v42 = vadd.f32 %v3243_v51, %v7630_v40 }
0x2250   :  { %v5801_v38 = vpop.f32.mrf.mxu0 }
0x2251   :  { %6321 = vtanh.f32 %v3244_v42  ;;  %v4818_v15 = vmul.f32 -1.442695, %v3244_v42 }
0x2253   :  { %6323 = vpow2.f32 %v4818_v15 }
0x225e   :  { %v6322_v26 = vpop.eup %6321 }
0x225f   :  { %3256 = vrot.lane.b32.xlu0 %v6322_v26, %s6629_s10 }
0x2260   :  { %v6324_v31 = vpop.eup %6323 }
0x2261   :  { %v3250_v37 = vadd.f32 1.0, %v6324_v31  ;;  %v3392_v31 = vld [vmem:[#allocation6 + $0x2] sm:$0x1] }
0x2263   :  { %6325 = vrcp.f32 %v3250_v37 }
0x2270   :  { %v6326_v45 = vpop.eup %6325 }
0x2271   :  { %v3254_v53 = vmul.f32 %v6326_v45, %v7642_v50 }
0x22d1   :  { %v3257_v46 = vpop.permute.xlu0 %3256 }
0x22d2   :  { %v3259_v56 = vmul.f32 %v6326_v45, %v3257_v46 }
0x22d4   :  { %3261 = vrot.lane.b32.xlu1 %v3259_v56, %s6628_s3 }
0x22d8   :  { %3271 = vrot.lane.b32.xlu1 %v7768_v16, %s6628_s3 }
0x2346   :  { %v3262_v57 = vpop.permute.xlu1 %3261 }
0x2347   :  { %v7846_v17 = vadd.f32 %v3262_v57, %v3254_v53 }
0x2349   :  { %6327 = vtanh.f32 %v7846_v17 }
0x234a   :  { %v3272_v23 = vpop.permute.xlu1 %3271 }
0x2356   :  { %v6328_v8 = vpop.eup %6327 }
0x2357   :  { %3267 = vrot.lane.b32.xlu0 %v6328_v8, %s6629_s10 }
0x23c9   :  { %v3268_v41 = vpop.permute.xlu0 %3267 }
0x23ca   :  { %v7850_v27 = vmul.f32 %v6326_v45, %v3268_v41 }
0x23cc   :  { %3275 = vrot.lane.b32.xlu0 %v7850_v27, %s6629_s10 }
0x243e   :  { %v3276_v33 = vpop.permute.xlu0 %3275 }
0x243f   :  { %v3278_v39 = vsel %vm139_vm1, %v3272_v23, %v3276_v33 }
0x2440   :  { %5819 = vmatmul.mubr.msk.f32.vlgmr.msra.gmra.mxu1 %vm141_vm2, %v3278_v39 }
0x2441   :  { %5849 = vmatpush3.msra.mxu1 %v7586_v34  ;;  %5864 = vmatprep.mubr.msk.f32.mxu1 %vm6627_vm0, %v6626_v1 }
0x2442   :  { %5850 = vmatprep.subr.mxu1 %v6626_v1 }
0x2443   :  { %5851 = vmatpush3.msra.mxu1 %v7590_v5 }
0x2444   :  { %5852 = vmatprep.subr.mxu1 %v6626_v1 }
0x2445   :  { %5853 = vmatpush3.msra.mxu1 %v7596_v6 }
0x2446   :  { %5854 = vmatprep.subr.mxu1 %v6626_v1 }
0x2447   :  { %5855 = vmatpush3.msra.mxu1 %v7600_v7 }
0x2448   :  { %5856 = vmatprep.subr.mxu1 %v6626_v1 }
0x2449   :  { %5857 = vmatpush3.msra.mxu1 %v7604_v10 }
0x244a   :  { %5858 = vmatprep.subr.mxu1 %v6626_v1 }
0x244b   :  { %5859 = vmatpush3.msra.mxu1 %v7608_v18 }
0x244c   :  { %5860 = vmatprep.subr.mxu1 %v6626_v1 }
0x244d   :  { %5861 = vmatpush3.msra.mxu1 %v7612_v19 }
0x244e   :  { %5862 = vmatprep.subr.mxu1 %v6626_v1 }
0x244f   :  { %5863 = vmatpush3.msra.mxu1 %v7616_v20 }
0x2450   :  { %5886 = vmatprep.subr.mxu1 %v6626_v1 }
0x2500   :  { %v3348_v50 = vpop.f32.mrf.mxu1 }
0x2501   :  { %v3349_v29 = vadd.f32 %v3348_v50, %v7707_v32 }
0x2502   :  { %v5820_v3 = vpop.f32.mrf.mxu1 }
0x2503   :  { %6329 = vtanh.f32 %v3349_v29  ;;  %v4820_v12 = vmul.f32 -1.442695, %v3349_v29 }
0x2505   :  { %6331 = vpow2.f32 %v4820_v12 }
0x2510   :  { %v6330_v4 = vpop.eup %6329 }
0x2511   :  { %3361 = vrot.lane.b32.xlu1 %v6330_v4, %s6629_s10 }
0x2512   :  { %v6332_v58 = vpop.eup %6331 }
0x2513   :  { %v3355_v13 = vadd.f32 1.0, %v6332_v58 }
0x2515   :  { %6333 = vrcp.f32 %v3355_v13 }
0x2522   :  { %v6334_v60 = vpop.eup %6333 }
0x2523   :  { %v3359_v42 = vmul.f32 %v6334_v60, %v7715_v52 }
0x2583   :  { %v3362_v62 = vpop.permute.xlu1 %3361 }
0x2584   :  { %v3364_v51 = vmul.f32 %v6334_v60, %v3362_v62 }
0x2586   :  { %3366 = vrot.lane.b32.xlu0 %v3364_v51, %s6628_s3 }
0x258a   :  { %3393 = vrot.lane.b32.xlu0 %v7808_v59, %s6628_s3 }
0x25f8   :  { %v3367_v38 = vpop.permute.xlu0 %3366 }
0x25f9   :  { %v7880_v26 = vadd.f32 %v3367_v38, %v3359_v42 }
0x25fb   :  { %6335 = vtanh.f32 %v7880_v26 }
0x25fc   :  { %v3394_v59 = vpop.permute.xlu0 %3393 }
0x2608   :  { %v6336_v15 = vpop.eup %6335 }
0x2609   :  { %3372 = vrot.lane.b32.xlu1 %v6336_v15, %s6629_s10 }
0x260d   :  { %3397 = vrot.lane.b32.xlu1 %v3392_v31, %s6628_s3 }
0x267b   :  { %v3373_v37 = vpop.permute.xlu1 %3372 }
0x267c   :  { %v7885_v45 = vmul.f32 %v6334_v60, %v3373_v37 }
0x267e   :  { %3401 = vrot.lane.b32.xlu0 %v7885_v45, %s6630_s5 }
0x267f   :  { %v3398_v46 = vpop.permute.xlu1 %3397 }
0x2680   :  { %v3404_v52 = vsel %vm139_vm1, %v3394_v59, %v3398_v46 }
0x26f0   :  { %v3402_v56 = vpop.permute.xlu0 %3401 }
0x26f1   :  { %v3405_v53 = vsel %vm141_vm2, %v3404_v52, %v3402_v56 }
0x26f2   :  { %5846 = vmatmul.mubr.msk.f32.vlgmr.msra.gmra.mxu0 %vm3068_vm3, %v3405_v53 }
0x26f3   :  { %5868 = vmatpush3.msra.mxu0 %v7647_v55  ;;  %5883 = vmatprep.mubr.msk.f32.mxu0 %vm6627_vm0, %v6626_v1 }
0x26f4   :  { %5869 = vmatprep.subr.mxu0 %v6626_v1 }
0x26f5   :  { %5870 = vmatpush3.msra.mxu0 %v7649_v54 }
0x26f6   :  { %5871 = vmatprep.subr.mxu0 %v6626_v1 }
0x26f7   :  { %5872 = vmatpush3.msra.mxu0 %v7653_v9 }
0x26f8   :  { %5873 = vmatprep.subr.mxu0 %v6626_v1 }
0x26f9   :  { %5874 = vmatpush3.msra.mxu0 %v7657_v36 }
0x26fa   :  { %5875 = vmatprep.subr.mxu0 %v6626_v1 }
0x26fb   :  { %5876 = vmatpush3.msra.mxu0 %v7661_v30 }
0x26fc   :  { %5877 = vmatprep.subr.mxu0 %v6626_v1 }
0x26fd   :  { %5878 = vmatpush3.msra.mxu0 %v7665_v44 }
0x26fe   :  { %5879 = vmatprep.subr.mxu0 %v6626_v1 }
0x26ff   :  { %5880 = vmatpush3.msra.mxu0 %v7669_v48 }
0x2700   :  { %5881 = vmatprep.subr.mxu0 %v6626_v1 }
0x2701   :  { %5882 = vmatpush3.msra.mxu0 %v7676_v61 }
0x2702   :  { %5913 = vmatprep.subr.mxu0 %v6626_v1 }
0x27b2   :  { %v3475_v57 = vpop.f32.mrf.mxu0 }
0x27b3   :  { %v3476_v8 = vadd.f32 %v3475_v57, %v7796_v47 }
0x27b4   :  { %v5847_v41 = vpop.f32.mrf.mxu0 }
0x27b5   :  { %6337 = vtanh.f32 %v3476_v8  ;;  %v4822_v33 = vmul.f32 -1.442695, %v3476_v8 }
0x27b7   :  { %6339 = vpow2.f32 %v4822_v33 }
0x27c2   :  { %v6338_v23 = vpop.eup %6337 }
0x27c3   :  { %3488 = vrot.lane.b32.xlu1 %v6338_v23, %s6629_s10 }
0x27c4   :  { %v6340_v39 = vpop.eup %6339 }
0x27c5   :  { %v3482_v50 = vadd.f32 1.0, %v6340_v39 }
0x27c7   :  { %6341 = vrcp.f32 %v3482_v50 }
0x27d4   :  { %v6342_v29 = vpop.eup %6341 }
0x27d5   :  { %v3486_v12 = vmul.f32 %v6342_v29, %v7804_v21 }
0x2835   :  { %v3489_v3 = vpop.permute.xlu1 %3488 }
0x2836   :  { %v3491_v4 = vmul.f32 %v6342_v29, %v3489_v3 }
0x2838   :  { %3493 = vrot.lane.b32.xlu0 %v3491_v4, %s6628_s3 }
0x283c   :  { %3503 = vrot.lane.b32.xlu0 %v7850_v27, %s6628_s3 }
0x28aa   :  { %v3494_v58 = vpop.permute.xlu0 %3493 }
0x28ab   :  { %v7916_v13 = vadd.f32 %v3494_v58, %v3486_v12 }
0x28ad   :  { %6343 = vtanh.f32 %v7916_v13 }
0x28ae   :  { %v3504_v42 = vpop.permute.xlu0 %3503 }
0x28ba   :  { %v6344_v60 = vpop.eup %6343 }
0x28bb   :  { %3499 = vrot.lane.b32.xlu1 %v6344_v60, %s6629_s10 }
0x292d   :  { %v3500_v62 = vpop.permute.xlu1 %3499 }
0x292e   :  { %v7920_v51 = vmul.f32 %v6342_v29, %v3500_v62 }
0x2930   :  { %3507 = vrot.lane.b32.xlu1 %v7920_v51, %s6629_s10 }
0x29a2   :  { %v3508_v38 = vpop.permute.xlu1 %3507 }
0x29a3   :  { %v3510_v27 = vsel %vm139_vm1, %v3504_v42, %v3508_v38  ;;  %v3729_v42 = vld [vmem:[#allocation6 + $0x3] sm:$0x1] }
0x29a4   :  { %5865 = vmatmul.mubr.msk.f32.vlgmr.msra.gmra.mxu1 %vm141_vm2, %v3510_v27 }
0x29a5   :  { %5887 = vmatpush3.msra.mxu1 %v7718_v43  ;;  %5910 = vmatprep.mubr.msk.f32.mxu1 %vm6627_vm0, %v6626_v1 }
0x29a6   :  { %5888 = vmatprep.subr.mxu1 %v6626_v1 }
0x29a7   :  { %5889 = vmatpush3.msra.mxu1 %v7720_v63 }
0x29a8   :  { %5890 = vmatprep.subr.mxu1 %v6626_v1 }
0x29a9   :  { %5891 = vmatpush3.msra.mxu1 %v7724_v25 }
0x29aa   :  { %5892 = vmatprep.subr.mxu1 %v6626_v1 }
0x29ab   :  { %5893 = vmatpush3.msra.mxu1 %v7728_v28 }
0x29ac   :  { %5894 = vmatprep.subr.mxu1 %v6626_v1 }
0x29ad   :  { %5895 = vmatpush3.msra.mxu1 %v7732_v22 }
0x29ae   :  { %5896 = vmatprep.subr.mxu1 %v6626_v1 }
0x29af   :  { %5897 = vmatpush3.msra.mxu1 %v7736_v0 }
0x29b0   :  { %5898 = vmatprep.subr.mxu1 %v6626_v1 }
0x29b1   :  { %5899 = vmatpush3.msra.mxu1 %v7741_v2 }
0x29b2   :  { %5900 = vmatprep.subr.mxu1 %v6626_v1 }
0x29b3   :  { %5901 = vmatpush3.msra.mxu1 %v7745_v24 }
0x29b4   :  { %5902 = vmatprep.subr.mxu1 %v6626_v1 }
0x29b5   :  { %5903 = vmatpush3.msra.mxu1 %v7750_v11 }
0x29b6   :  { %5904 = vmatprep.subr.mxu1 %v6626_v1 }
0x29b7   :  { %5905 = vmatpush3.msra.mxu1 %v7754_v35 }
0x29b8   :  { %5906 = vmatprep.subr.mxu1 %v6626_v1 }
0x29b9   :  { %5907 = vmatpush3.msra.mxu1 %v7758_v49 }
0x29ba   :  { %5908 = vmatprep.subr.mxu1 %v6626_v1 }
0x29bb   :  { %5909 = vmatpush3.msra.mxu1 %v7764_v14 }
0x29bc   :  { %5932 = vmatprep.subr.mxu1 %v6626_v1 }
0x2a64   :  { %v3580_v21 = vpop.f32.mrf.mxu1 }
0x2a65   :  { %v3581_v15 = vadd.f32 %v3580_v21, %v7630_v40 }
0x2a66   :  { %v5866_v31 = vpop.f32.mrf.mxu1 }
0x2a67   :  { %6345 = vtanh.f32 %v3581_v15  ;;  %v4824_v59 = vmul.f32 -1.442695, %v3581_v15 }
0x2a69   :  { %6347 = vpow2.f32 %v4824_v59 }
0x2a74   :  { %v6346_v37 = vpop.eup %6345 }
0x2a75   :  { %3593 = vrot.lane.b32.xlu0 %v6346_v37, %s6629_s10 }
0x2a76   :  { %v6348_v46 = vpop.eup %6347 }
0x2a77   :  { %v3587_v52 = vadd.f32 1.0, %v6348_v46 }
0x2a79   :  { %6349 = vrcp.f32 %v3587_v52 }
0x2a86   :  { %v6350_v56 = vpop.eup %6349 }
0x2a87   :  { %v3591_v40 = vmul.f32 %v6350_v56, %v7846_v17 }
0x2ae7   :  { %v3594_v53 = vpop.permute.xlu0 %3593 }
0x2ae8   :  { %v3596_v57 = vmul.f32 %v6350_v56, %v3594_v53 }
0x2aea   :  { %3598 = vrot.lane.b32.xlu1 %v3596_v57, %s6628_s3 }
0x2aee   :  { %3608 = vrot.lane.b32.xlu1 %v7885_v45, %s6628_s3 }
0x2b5c   :  { %v3599_v8 = vpop.permute.xlu1 %3598 }
0x2b5d   :  { %v7958_v41 = vadd.f32 %v3599_v8, %v3591_v40 }
0x2b5f   :  { %6351 = vtanh.f32 %v7958_v41 }
0x2b60   :  { %v3609_v50 = vpop.permute.xlu1 %3608 }
0x2b6c   :  { %v6352_v23 = vpop.eup %6351 }
0x2b6d   :  { %3604 = vrot.lane.b32.xlu0 %v6352_v23, %s6629_s10 }
0x2bdf   :  { %v3605_v33 = vpop.permute.xlu0 %3604 }
0x2be0   :  { %v7962_v39 = vmul.f32 %v6350_v56, %v3605_v33 }
0x2be2   :  { %3612 = vrot.lane.b32.xlu0 %v7962_v39, %s6629_s10 }
0x2c54   :  { %v3613_v29 = vpop.permute.xlu0 %3612 }
0x2c55   :  { %v3615_v3 = vsel %vm139_vm1, %v3609_v50, %v3613_v29 }
0x2c56   :  { %5884 = vmatmul.mubr.msk.f32.vlgmr.msra.gmra.mxu0 %vm141_vm2, %v3615_v3 }
0x2c57   :  { %5914 = vmatpush3.msra.mxu0 %v7586_v34  ;;  %5929 = vmatprep.mubr.msk.f32.mxu0 %vm6627_vm0, %v6626_v1 }
0x2c58   :  { %5915 = vmatprep.subr.mxu0 %v6626_v1 }
0x2c59   :  { %5916 = vmatpush3.msra.mxu0 %v7590_v5 }
0x2c5a   :  { %5917 = vmatprep.subr.mxu0 %v6626_v1 }
0x2c5b   :  { %5918 = vmatpush3.msra.mxu0 %v7596_v6 }
0x2c5c   :  { %5919 = vmatprep.subr.mxu0 %v6626_v1 }
0x2c5d   :  { %5920 = vmatpush3.msra.mxu0 %v7600_v7 }
0x2c5e   :  { %5921 = vmatprep.subr.mxu0 %v6626_v1 }
0x2c5f   :  { %5922 = vmatpush3.msra.mxu0 %v7604_v10 }
0x2c60   :  { %5923 = vmatprep.subr.mxu0 %v6626_v1 }
0x2c61   :  { %5924 = vmatpush3.msra.mxu0 %v7608_v18 }
0x2c62   :  { %5925 = vmatprep.subr.mxu0 %v6626_v1 }
0x2c63   :  { %5926 = vmatpush3.msra.mxu0 %v7612_v19 }
0x2c64   :  { %5927 = vmatprep.subr.mxu0 %v6626_v1 }
0x2c65   :  { %5928 = vmatpush3.msra.mxu0 %v7616_v20 }
0x2c66   :  { %5951 = vmatprep.subr.mxu0 %v6626_v1 }
0x2d16   :  { %v3685_v34 = vpop.f32.mrf.mxu0 }
0x2d17   :  { %v3686_v5 = vadd.f32 %v3685_v34, %v7707_v32 }
0x2d18   :  { %v5885_v6 = vpop.f32.mrf.mxu0 }
0x2d19   :  { %6353 = vtanh.f32 %v3686_v5  ;;  %v4826_v10 = vmul.f32 -1.442695, %v3686_v5 }
0x2d1b   :  { %6355 = vpow2.f32 %v4826_v10  ;;  %v8095_v10 = vld [vmem:[#allocation9 + $0x68] sm:$0xff] }
0x2d26   :  { %v6354_v7 = vpop.eup %6353 }
0x2d27   :  { %3698 = vrot.lane.b32.xlu1 %v6354_v7, %s6629_s10  ;;  %v8091_v7 = vld [vmem:[#allocation9 + $0x70] sm:$0xff] }
0x2d28   :  { %v6356_v18 = vpop.eup %6355 }
0x2d29   :  { %v3692_v17 = vadd.f32 1.0, %v6356_v18  ;;  %v8099_v18 = vld [vmem:[#allocation9 + $0x60] sm:$0xff] }
0x2d2b   :  { %6357 = vrcp.f32 %v3692_v17  ;;  %v8103_v17 = vld [vmem:[#allocation9 + $0x58] sm:$0xff] }
0x2d38   :  { %v6358_v19 = vpop.eup %6357 }
0x2d39   :  { %v3696_v20 = vmul.f32 %v6358_v19, %v7880_v26 }
0x2d99   :  { %v3699_v4 = vpop.permute.xlu1 %3698 }
0x2d9a   :  { %v3701_v12 = vmul.f32 %v6358_v19, %v3699_v4  ;;  %v8111_v4 = vld [vmem:[#allocation9 + $0x48] sm:$0xff] }
0x2d9c   :  { %3703 = vrot.lane.b32.xlu0 %v3701_v12, %s6628_s3  ;;  %v8115_v12 = vld [vmem:[#allocation9 + $0x40] sm:$0xff] }
0x2da0   :  { %3730 = vrot.lane.b32.xlu0 %v7920_v51, %s6628_s3 }
0x2e0e   :  { %v3704_v58 = vpop.permute.xlu0 %3703 }
0x2e0f   :  { %v7992_v60 = vadd.f32 %v3704_v58, %v3696_v20 }
0x2e11   :  { %6359 = vtanh.f32 %v7992_v60 }
0x2e12   :  { %v3731_v51 = vpop.permute.xlu0 %3730 }
0x2e1e   :  { %v6360_v62 = vpop.eup %6359 }
0x2e1f   :  { %3709 = vrot.lane.b32.xlu1 %v6360_v62, %s6629_s10 }
0x2e23   :  { %3734 = vrot.lane.b32.xlu1 %v3729_v42, %s6628_s3 }
0x2e91   :  { %v3710_v38 = vpop.permute.xlu1 %3709 }
0x2e92   :  { %v7997_v27 = vmul.f32 %v6358_v19, %v3710_v38  ;;  %v8107_v19 = vld [vmem:[#allocation9 + $0x50] sm:$0xff] }
0x2e94   :  { %3738 = vrot.lane.b32.xlu0 %v7997_v27, %s6630_s5 }
0x2e95   :  { %v3735_v21 = vpop.permute.xlu1 %3734 }
0x2e96   :  { %v3741_v26 = vsel %vm139_vm1, %v3731_v51, %v3735_v21 }
0x2f06   :  { %v3739_v15 = vpop.permute.xlu0 %3738 }
0x2f07   :  { %v3742_v31 = vsel %vm141_vm2, %v3741_v26, %v3739_v15 }
0x2f08   :  { %5911 = vmatmul.mubr.msk.f32.vlgmr.msra.gmra.mxu1 %vm3068_vm3, %v3742_v31 }
0x2f09   :  { %5933 = vmatpush3.msra.mxu1 %v7647_v55  ;;  %5948 = vmatprep.mubr.msk.f32.mxu1 %vm6627_vm0, %v6626_v1 }
0x2f0a   :  { %5934 = vmatprep.subr.mxu1 %v6626_v1 }
0x2f0b   :  { %5935 = vmatpush3.msra.mxu1 %v7649_v54 }
0x2f0c   :  { %5936 = vmatprep.subr.mxu1 %v6626_v1 }
0x2f0d   :  { %5937 = vmatpush3.msra.mxu1 %v7653_v9 }
0x2f0e   :  { %5938 = vmatprep.subr.mxu1 %v6626_v1 }
0x2f0f   :  { %5939 = vmatpush3.msra.mxu1 %v7657_v36 }
0x2f10   :  { %5940 = vmatprep.subr.mxu1 %v6626_v1 }
0x2f11   :  { %5941 = vmatpush3.msra.mxu1 %v7661_v30 }
0x2f12   :  { %5942 = vmatprep.subr.mxu1 %v6626_v1 }
0x2f13   :  { %5943 = vmatpush3.msra.mxu1 %v7665_v44 }
0x2f14   :  { %5944 = vmatprep.subr.mxu1 %v6626_v1 }
0x2f15   :  { %5945 = vmatpush3.msra.mxu1 %v7669_v48 }
0x2f16   :  { %5946 = vmatprep.subr.mxu1 %v6626_v1 }
0x2f17   :  { %5947 = vmatpush3.msra.mxu1 %v7676_v61 }
0x2f18   :  { %5978 = vmatprep.subr.mxu1 %v6626_v1 }
0x2fc8   :  { %v3812_v55 = vpop.f32.mrf.mxu1 }
0x2fc9   :  { %v3813_v54 = vadd.f32 %v3812_v55, %v7796_v47 }
0x2fca   :  { %v5912_v9 = vpop.f32.mrf.mxu1 }
0x2fcb   :  { %6361 = vtanh.f32 %v3813_v54  ;;  %v4828_v30 = vmul.f32 -1.442695, %v3813_v54 }
0x2fcd   :  { %6363 = vpow2.f32 %v4828_v30 }
0x2fd8   :  { %v6362_v36 = vpop.eup %6361 }
0x2fd9   :  { %3825 = vrot.lane.b32.xlu1 %v6362_v36, %s6629_s10  ;;  %v4066_v36 = vld [vmem:[#allocation6 + $0x4] sm:$0x1] }
0x2fda   :  { %v6364_v44 = vpop.eup %6363 }
0x2fdb   :  { %v3819_v37 = vadd.f32 1.0, %v6364_v44 }
0x2fdd   :  { %6365 = vrcp.f32 %v3819_v37 }
0x2fea   :  { %v6366_v48 = vpop.eup %6365 }
0x2feb   :  { %v3823_v61 = vmul.f32 %v6366_v48, %v7916_v13 }
0x304b   :  { %v3826_v59 = vpop.permute.xlu1 %3825 }
0x304c   :  { %v3828_v46 = vmul.f32 %v6366_v48, %v3826_v59 }
0x304e   :  { %3830 = vrot.lane.b32.xlu0 %v3828_v46, %s6628_s3 }
0x3052   :  { %3840 = vrot.lane.b32.xlu0 %v7962_v39, %s6628_s3 }
0x30c0   :  { %v3831_v52 = vpop.permute.xlu0 %3830 }
0x30c1   :  { %v8028_v56 = vadd.f32 %v3831_v52, %v3823_v61  ;;  %v8137_v61 = vld [vmem:[#allocation9 + $0xb8] sm:$0xff]  ;;  %v8143_v52 = vld [vmem:[#allocation9 + $0xb0] sm:$0xff] }
0x30c3   :  { %6367 = vtanh.f32 %v8028_v56 }
0x30c4   :  { %v3841_v8 = vpop.permute.xlu0 %3840 }
0x30d0   :  { %v6368_v53 = vpop.eup %6367 }
0x30d1   :  { %3836 = vrot.lane.b32.xlu1 %v6368_v53, %s6629_s10  ;;  %v8147_v53 = vld [vmem:[#allocation9 + $0xa8] sm:$0xff] }
0x3143   :  { %v3837_v57 = vpop.permute.xlu1 %3836 }
0x3144   :  { %v8032_v40 = vmul.f32 %v6366_v48, %v3837_v57  ;;  %v8151_v57 = vld [vmem:[#allocation9 + $0xa0] sm:$0xff] }
0x3146   :  { %3844 = vrot.lane.b32.xlu1 %v8032_v40, %s6629_s10 }
0x31b8   :  { %v3845_v23 = vpop.permute.xlu1 %3844 }
0x31b9   :  { %v3847_v33 = vsel %vm139_vm1, %v3841_v8, %v3845_v23  ;;  %v8159_v8 = vld [vmem:[#allocation9 + $0x90] sm:$0xff]  ;;  %v8163_v23 = vld [vmem:[#allocation9 + $0x88] sm:$0xff] }
0x31ba   :  { %5930 = vmatmul.mubr.msk.f32.vlgmr.msra.gmra.mxu0 %vm141_vm2, %v3847_v33  ;;  %v8167_v33 = vld [vmem:[#allocation9 + $0x80] sm:$0xff] }
0x31bb   :  { %5952 = vmatpush3.msra.mxu0 %v7718_v43  ;;  %5975 = vmatprep.mubr.msk.f32.mxu0 %vm6627_vm0, %v6626_v1 }
0x31bc   :  { %5953 = vmatprep.subr.mxu0 %v6626_v1 }
0x31bd   :  { %5954 = vmatpush3.msra.mxu0 %v7720_v63  ;;  %v8067_v63 = vld [vmem:[%s8331_s6 + $0x1] sm:$0x1] }
0x31be   :  { %5955 = vmatprep.subr.mxu0 %v6626_v1 }
0x31bf   :  { %5956 = vmatpush3.msra.mxu0 %v7724_v25 }
0x31c0   :  { %5957 = vmatprep.subr.mxu0 %v6626_v1 }
0x31c1   :  { %5958 = vmatpush3.msra.mxu0 %v7728_v28 }
0x31c2   :  { %5959 = vmatprep.subr.mxu0 %v6626_v1 }
0x31c3   :  { %5960 = vmatpush3.msra.mxu0 %v7732_v22 }
0x31c4   :  { %5961 = vmatprep.subr.mxu0 %v6626_v1 }
0x31c5   :  { %5962 = vmatpush3.msra.mxu0 %v7736_v0 }
0x31c6   :  { %5963 = vmatprep.subr.mxu0 %v6626_v1 }
0x31c7   :  { %5964 = vmatpush3.msra.mxu0 %v7741_v2 }
0x31c8   :  { %5965 = vmatprep.subr.mxu0 %v6626_v1 }
0x31c9   :  { %5966 = vmatpush3.msra.mxu0 %v7745_v24 }
0x31ca   :  { %5967 = vmatprep.subr.mxu0 %v6626_v1 }
0x31cb   :  { %5968 = vmatpush3.msra.mxu0 %v7750_v11 }
0x31cc   :  { %5969 = vmatprep.subr.mxu0 %v6626_v1 }
0x31cd   :  { %5970 = vmatpush3.msra.mxu0 %v7754_v35 }
0x31ce   :  { %5971 = vmatprep.subr.mxu0 %v6626_v1 }
0x31cf   :  { %5972 = vmatpush3.msra.mxu0 %v7758_v49 }
0x31d0   :  { %5973 = vmatprep.subr.mxu0 %v6626_v1 }
0x31d1   :  { %5974 = vmatpush3.msra.mxu0 %v7764_v14 }
0x31d2   :  { %5997 = vmatprep.subr.mxu0 %v6626_v1 }
0x327a   :  { %v3917_v43 = vpop.f32.mrf.mxu0 }
0x327b   :  { %v3918_v25 = vadd.f32 %v8067_v63, %v3917_v43 }
0x327c   :  { %v5931_v28 = vpop.f32.mrf.mxu0 }
0x327d   :  { %6369 = vtanh.f32 %v3918_v25  ;;  %v4830_v0 = vmul.f32 -1.442695, %v3918_v25 }
0x327f   :  { %6371 = vpow2.f32 %v4830_v0 }
0x328a   :  { %v6370_v22 = vpop.eup %6369 }
0x328b   :  { %3930 = vrot.lane.b32.xlu0 %v6370_v22, %s6629_s10 }
0x328c   :  { %v6372_v2 = vpop.eup %6371 }
0x328d   :  { %v3924_v24 = vadd.f32 1.0, %v6372_v2 }
0x328f   :  { %6373 = vrcp.f32 %v3924_v24 }
0x329c   :  { %v6374_v11 = vpop.eup %6373 }
0x329d   :  { %v3928_v14 = vmul.f32 %v6374_v11, %v7958_v41  ;;  %v8085_v41 = vld [vmem:[#allocation9 + $0x78] sm:$0xff] }
0x32fd   :  { %v3931_v35 = vpop.permute.xlu0 %3930 }
0x32fe   :  { %v3933_v49 = vmul.f32 %v6374_v11, %v3931_v35 }
0x3300   :  { %3935 = vrot.lane.b32.xlu1 %v3933_v49, %s6628_s3 }
0x3304   :  { %3945 = vrot.lane.b32.xlu1 %v7997_v27, %s6628_s3 }
0x3372   :  { %v3936_v13 = vpop.permute.xlu1 %3935 }
0x3373   :  { %v8075_v39 = vadd.f32 %v3936_v13, %v3928_v14 }
0x3375   :  { %6375 = vtanh.f32 %v8075_v39 }
0x3376   :  { %v3946_v34 = vpop.permute.xlu1 %3945 }
0x3382   :  { %v6376_v50 = vpop.eup %6375 }
0x3383   :  { %3941 = vrot.lane.b32.xlu0 %v6376_v50, %s6629_s10 }
0x33f5   :  { %v3942_v29 = vpop.permute.xlu0 %3941 }
0x33f6   :  { %v8079_v3 = vmul.f32 %v6374_v11, %v3942_v29 }
0x33f8   :  { %3949 = vrot.lane.b32.xlu0 %v8079_v3, %s6629_s10 }
0x346a   :  { %v3950_v5 = vpop.permute.xlu0 %3949 }
0x346b   :  { %v3952_v6 = vsel %vm139_vm1, %v3946_v34, %v3950_v5 }
0x346c   :  { %5949 = vmatmul.mubr.msk.f32.vlgmr.msra.gmra.mxu1 %vm141_vm2, %v3952_v6 }
0x346d   :  { %5979 = vmatpush3.msra.mxu1 %v8085_v41  ;;  %5994 = vmatprep.mubr.msk.f32.mxu1 %vm6627_vm0, %v6626_v1 }
0x346e   :  { %5980 = vmatprep.subr.mxu1 %v6626_v1 }
0x346f   :  { %5981 = vmatpush3.msra.mxu1 %v8091_v7 }
0x3470   :  { %5982 = vmatprep.subr.mxu1 %v6626_v1 }
0x3471   :  { %5983 = vmatpush3.msra.mxu1 %v8095_v10 }
0x3472   :  { %5984 = vmatprep.subr.mxu1 %v6626_v1 }
0x3473   :  { %5985 = vmatpush3.msra.mxu1 %v8099_v18 }
0x3474   :  { %5986 = vmatprep.subr.mxu1 %v6626_v1 }
0x3475   :  { %5987 = vmatpush3.msra.mxu1 %v8103_v17 }
0x3476   :  { %5988 = vmatprep.subr.mxu1 %v6626_v1 }
0x3477   :  { %5989 = vmatpush3.msra.mxu1 %v8107_v19 }
0x3478   :  { %5990 = vmatprep.subr.mxu1 %v6626_v1 }
0x3479   :  { %5991 = vmatpush3.msra.mxu1 %v8111_v4 }
0x347a   :  { %5992 = vmatprep.subr.mxu1 %v6626_v1 }
0x347b   :  { %5993 = vmatpush3.msra.mxu1 %v8115_v12 }
0x347c   :  { %6016 = vmatprep.subr.mxu1 %v6626_v1 }
0x352c   :  { %v4022_v20 = vpop.f32.mrf.mxu1 }
0x352d   :  { %v4023_v58 = vadd.f32 %v4022_v20, %v7707_v32  ;;  %v6478_v20 = vld [vmem:[#allocation11 + $0x50] sm:$0xff] }
0x352e   :  { %v5950_v62 = vpop.f32.mrf.mxu1 }
0x352f   :  { %6377 = vtanh.f32 %v4023_v58  ;;  %v4832_v38 = vmul.f32 -1.442695, %v4023_v58  ;;  %v6479_v58 = vld [vmem:[#allocation11 + $0x48] sm:$0xff]  ;;  %v6480_v62 = vld [vmem:[#allocation11 + $0x40] sm:$0xff] }
0x3531   :  { %6379 = vpow2.f32 %v4832_v38  ;;  %v6482_v38 = vld [vmem:[#allocation11 + $0x30] sm:$0xff] }
0x353c   :  { %v6378_v42 = vpop.eup %6377 }
0x353d   :  { %4035 = vrot.lane.b32.xlu1 %v6378_v42, %s6629_s10  ;;  %v6481_v42 = vld [vmem:[#allocation11 + $0x38] sm:$0xff] }
0x353e   :  { %v6380_v51 = vpop.eup %6379 }
0x353f   :  { %v4029_v21 = vadd.f32 1.0, %v6380_v51  ;;  %v6483_v51 = vld [vmem:[#allocation11 + $0x28] sm:$0xff] }
0x3541   :  { %6381 = vrcp.f32 %v4029_v21  ;;  %v6484_v21 = vld [vmem:[#allocation11 + $0x20] sm:$0xff] }
0x354e   :  { %v6382_v26 = vpop.eup %6381 }
0x354f   :  { %v4033_v32 = vmul.f32 %v6382_v26, %v7992_v60 }
0x35af   :  { %v4036_v15 = vpop.permute.xlu1 %4035 }
0x35b0   :  { %v4038_v31 = vmul.f32 %v6382_v26, %v4036_v15  ;;  %v6486_v15 = vld [vmem:[#allocation11 + $0x10] sm:$0xff] }
0x35b2   :  { %4040 = vrot.lane.b32.xlu0 %v4038_v31, %s6628_s3  ;;  %v6487_v31 = vld [vmem:[#allocation11 + $0x8] sm:$0xff] }
0x35b6   :  { %4067 = vrot.lane.b32.xlu0 %v8032_v40, %s6628_s3  ;;  %v8155_v40 = vld [vmem:[#allocation9 + $0x98] sm:$0xff] }
0x3624   :  { %v4041_v55 = vpop.permute.xlu0 %4040 }
0x3625   :  { %v8125_v54 = vadd.f32 %v4041_v55, %v4033_v32  ;;  %v6488_v32 = vld [vmem:[#allocation11] sm:$0xff] }
0x3627   :  { %6383 = vtanh.f32 %v8125_v54 }
0x3628   :  { %v4068_v37 = vpop.permute.xlu0 %4067 }
0x3634   :  { %v6384_v9 = vpop.eup %6383 }
0x3635   :  { %4046 = vrot.lane.b32.xlu1 %v6384_v9, %s6629_s10 }
0x3639   :  { %4071 = vrot.lane.b32.xlu1 %v4066_v36, %s6628_s3 }
0x36a7   :  { %v4047_v30 = vpop.permute.xlu1 %4046 }
0x36a8   :  { %v8130_v44 = vmul.f32 %v6382_v26, %v4047_v30  ;;  %v6485_v26 = vld [vmem:[#allocation11 + $0x18] sm:$0xff] }
0x36aa   :  { %4075 = vrot.lane.b32.xlu0 %v8130_v44, %s6630_s5 }
0x36ab   :  { %v4072_v48 = vpop.permute.xlu1 %4071 }
0x36ac   :  { %v4078_v60 = vsel %vm139_vm1, %v4068_v37, %v4072_v48 }
0x371c   :  { %v4076_v59 = vpop.permute.xlu0 %4075 }
0x371d   :  { %v4079_v46 = vsel %vm141_vm2, %v4078_v60, %v4076_v59 }
0x371e   :  { %5976 = vmatmul.mubr.msk.f32.vlgmr.msra.gmra.mxu0 %vm3068_vm3, %v4079_v46 }
0x371f   :  { %5998 = vmatpush3.msra.mxu0 %v8137_v61  ;;  %6013 = vmatprep.mubr.msk.f32.mxu0 %vm6627_vm0, %v6626_v1 }
0x3720   :  { %5999 = vmatprep.subr.mxu0 %v6626_v1 }
0x3721   :  { %6000 = vmatpush3.msra.mxu0 %v8143_v52 }
0x3722   :  { %6001 = vmatprep.subr.mxu0 %v6626_v1 }
0x3723   :  { %6002 = vmatpush3.msra.mxu0 %v8147_v53 }
0x3724   :  { %6003 = vmatprep.subr.mxu0 %v6626_v1 }
0x3725   :  { %6004 = vmatpush3.msra.mxu0 %v8151_v57 }
0x3726   :  { %6005 = vmatprep.subr.mxu0 %v6626_v1 }
0x3727   :  { %6006 = vmatpush3.msra.mxu0 %v8155_v40 }
0x3728   :  { %6007 = vmatprep.subr.mxu0 %v6626_v1 }
0x3729   :  { %6008 = vmatpush3.msra.mxu0 %v8159_v8 }
0x372a   :  { %6009 = vmatprep.subr.mxu0 %v6626_v1 }
0x372b   :  { %6010 = vmatpush3.msra.mxu0 %v8163_v23 }
0x372c   :  { %6011 = vmatprep.subr.mxu0 %v6626_v1 }
0x372d   :  { %6012 = vmatpush3.msra.mxu0 %v8167_v33 }
0x372e   :  { %6043 = vmatprep.subr.mxu0 %v6626_v1 }
0x37de   :  { %v4149_v43 = vpop.f32.mrf.mxu0 }
0x37df   :  { %v4150_v25 = vadd.f32 %v4149_v43, %v7796_v47 }
0x37e0   :  { %v5977_v28 = vpop.f32.mrf.mxu0 }
0x37e1   :  { %6385 = vtanh.f32 %v4150_v25  ;;  %v4834_v0 = vmul.f32 -1.442695, %v4150_v25 }
0x37e3   :  { %6387 = vpow2.f32 %v4834_v0 }
0x37ee   :  { %v6386_v22 = vpop.eup %6385 }
0x37ef   :  { %4162 = vrot.lane.b32.xlu1 %v6386_v22, %s6629_s10 }
0x37f0   :  { %v6388_v2 = vpop.eup %6387 }
0x37f1   :  { %v4156_v24 = vadd.f32 1.0, %v6388_v2 }
0x37f3   :  { %6389 = vrcp.f32 %v4156_v24 }
0x3800   :  { %v6390_v11 = vpop.eup %6389 }
0x3801   :  { %v4160_v47 = vmul.f32 %v6390_v11, %v8028_v56  ;;  %v6477_v56 = vld [vmem:[#allocation11 + $0x58] sm:$0xff] }
0x3861   :  { %v4163_v35 = vpop.permute.xlu1 %4162 }
0x3862   :  { %v4165_v49 = vmul.f32 %v6390_v11, %v4163_v35 }
0x3864   :  { %4167 = vrot.lane.b32.xlu0 %v4165_v49, %s6628_s3 }
0x3868   :  { %4177 = vrot.lane.b32.xlu0 %v8079_v3, %s6628_s3 }
0x38d6   :  { %v4168_v14 = vpop.permute.xlu0 %4167 }
0x38d7   :  { %v8177_v13 = vadd.f32 %v4168_v14, %v4160_v47 }
0x38d9   :  { %6391 = vtanh.f32 %v8177_v13 }
0x38da   :  { %v4178_v5 = vpop.permute.xlu0 %4177 }
0x38e6   :  { %v6392_v50 = vpop.eup %6391 }
0x38e7   :  { %4173 = vrot.lane.b32.xlu1 %v6392_v50, %s6629_s10 }
0x3959   :  { %v4174_v29 = vpop.permute.xlu1 %4173 }
0x395a   :  { %v8181_v34 = vmul.f32 %v6390_v11, %v4174_v29 }
0x395c   :  { %4181 = vrot.lane.b32.xlu1 %v8181_v34, %s6629_s10 }
0x39ce   :  { %v4182_v6 = vpop.permute.xlu1 %4181 }
0x39cf   :  { %v4184_v3 = vsel %vm139_vm1, %v4178_v5, %v4182_v6 }
0x39d0   :  { %5995 = vmatmul.mubr.msk.f32.vlgmr.msra.gmra.mxu1 %vm141_vm2, %v4184_v3  ;;  %v4403_v3 = vld [vmem:[#allocation6 + $0x5] sm:$0x1] }
0x39d1   :  { %6017 = vmatpush3.msra.mxu1 %v6477_v56  ;;  %6040 = vmatprep.mubr.msk.f32.mxu1 %vm6627_vm0, %v6626_v1 }
0x39d2   :  { %6018 = vmatprep.subr.mxu1 %v6626_v1 }
0x39d3   :  { %6019 = vmatpush3.msra.mxu1 %v6478_v20 }
0x39d4   :  { %6020 = vmatprep.subr.mxu1 %v6626_v1 }
0x39d5   :  { %6021 = vmatpush3.msra.mxu1 %v6479_v58 }
0x39d6   :  { %6022 = vmatprep.subr.mxu1 %v6626_v1 }
0x39d7   :  { %6023 = vmatpush3.msra.mxu1 %v6480_v62 }
0x39d8   :  { %6024 = vmatprep.subr.mxu1 %v6626_v1 }
0x39d9   :  { %6025 = vmatpush3.msra.mxu1 %v6481_v42 }
0x39da   :  { %6026 = vmatprep.subr.mxu1 %v6626_v1 }
0x39db   :  { %6027 = vmatpush3.msra.mxu1 %v6482_v38 }
0x39dc   :  { %6028 = vmatprep.subr.mxu1 %v6626_v1 }
0x39dd   :  { %6029 = vmatpush3.msra.mxu1 %v6483_v51 }
0x39de   :  { %6030 = vmatprep.subr.mxu1 %v6626_v1 }
0x39df   :  { %6031 = vmatpush3.msra.mxu1 %v6484_v21 }
0x39e0   :  { %6032 = vmatprep.subr.mxu1 %v6626_v1 }
0x39e1   :  { %6033 = vmatpush3.msra.mxu1 %v6485_v26 }
0x39e2   :  { %6034 = vmatprep.subr.mxu1 %v6626_v1 }
0x39e3   :  { %6035 = vmatpush3.msra.mxu1 %v6486_v15 }
0x39e4   :  { %6036 = vmatprep.subr.mxu1 %v6626_v1 }
0x39e5   :  { %6037 = vmatpush3.msra.mxu1 %v6487_v31 }
0x39e6   :  { %6038 = vmatprep.subr.mxu1 %v6626_v1 }
0x39e7   :  { %6039 = vmatpush3.msra.mxu1 %v6488_v32 }
0x39e8   :  { %6062 = vmatprep.subr.mxu1 %v6626_v1 }
0x3a90   :  { %v4254_v55 = vpop.f32.mrf.mxu1 }
0x3a91   :  { %v4255_v9 = vadd.f32 %v8067_v63, %v4254_v55 }
0x3a92   :  { %v5996_v36 = vpop.f32.mrf.mxu1 }
0x3a93   :  { %6393 = vtanh.f32 %v4255_v9  ;;  %v4836_v37 = vmul.f32 -1.442695, %v4255_v9 }
0x3a95   :  { %6395 = vpow2.f32 %v4836_v37 }
0x3aa0   :  { %v6394_v30 = vpop.eup %6393 }
0x3aa1   :  { %4267 = vrot.lane.b32.xlu0 %v6394_v30, %s6629_s10 }
0x3aa2   :  { %v6396_v48 = vpop.eup %6395 }
0x3aa3   :  { %v4261_v60 = vadd.f32 1.0, %v6396_v48 }
0x3aa5   :  { %6397 = vrcp.f32 %v4261_v60 }
0x3ab2   :  { %v6398_v59 = vpop.eup %6397 }
0x3ab3   :  { %v4265_v25 = vmul.f32 %v6398_v59, %v8075_v39 }
0x3b13   :  { %v4268_v46 = vpop.permute.xlu0 %4267 }
0x3b14   :  { %v4270_v43 = vmul.f32 %v6398_v59, %v4268_v46 }
0x3b16   :  { %4272 = vrot.lane.b32.xlu1 %v4270_v43, %s6628_s3 }
0x3b1a   :  { %4282 = vrot.lane.b32.xlu1 %v8130_v44, %s6628_s3 }
0x3b88   :  { %v4273_v28 = vpop.permute.xlu1 %4272 }
0x3b89   :  { %v8207_v22 = vadd.f32 %v4273_v28, %v4265_v25 }
0x3b8b   :  { %6399 = vtanh.f32 %v8207_v22 }
0x3b8c   :  { %v4283_v11 = vpop.permute.xlu1 %4282 }
0x3b98   :  { %v6400_v0 = vpop.eup %6399 }
0x3b99   :  { %4278 = vrot.lane.b32.xlu0 %v6400_v0, %s6629_s10 }
0x3c0b   :  { %v4279_v2 = vpop.permute.xlu0 %4278 }
0x3c0c   :  { %v8211_v24 = vmul.f32 %v6398_v59, %v4279_v2 }
0x3c0e   :  { %4286 = vrot.lane.b32.xlu0 %v8211_v24, %s6629_s10 }
0x3c80   :  { %v4287_v35 = vpop.permute.xlu0 %4286 }
0x3c81   :  { %v4289_v49 = vsel %vm139_vm1, %v4283_v11, %v4287_v35 }
0x3c82   :  { %6014 = vmatmul.mubr.msk.f32.vlgmr.msra.gmra.mxu0 %vm141_vm2, %v4289_v49 }
0x3c83   :  { %6044 = vmatpush3.msra.mxu0 %v8085_v41  ;;  %6059 = vmatprep.mubr.msk.f32.mxu0 %vm6627_vm0, %v6626_v1  ;;  %v8237_v41 = vld [vmem:[%s8331_s6 + $0x2] sm:$0x1] }
0x3c84   :  { %6045 = vmatprep.subr.mxu0 %v6626_v1 }
0x3c85   :  { %6046 = vmatpush3.msra.mxu0 %v8091_v7 }
0x3c86   :  { %6047 = vmatprep.subr.mxu0 %v6626_v1 }
0x3c87   :  { %6048 = vmatpush3.msra.mxu0 %v8095_v10 }
0x3c88   :  { %6049 = vmatprep.subr.mxu0 %v6626_v1 }
0x3c89   :  { %6050 = vmatpush3.msra.mxu0 %v8099_v18 }
0x3c8a   :  { %6051 = vmatprep.subr.mxu0 %v6626_v1 }
0x3c8b   :  { %6052 = vmatpush3.msra.mxu0 %v8103_v17 }
0x3c8c   :  { %6053 = vmatprep.subr.mxu0 %v6626_v1 }
0x3c8d   :  { %6054 = vmatpush3.msra.mxu0 %v8107_v19 }
0x3c8e   :  { %6055 = vmatprep.subr.mxu0 %v6626_v1 }
0x3c8f   :  { %6056 = vmatpush3.msra.mxu0 %v8111_v4 }
0x3c90   :  { %6057 = vmatprep.subr.mxu0 %v6626_v1 }
0x3c91   :  { %6058 = vmatpush3.msra.mxu0 %v8115_v12 }
0x3d42   :  { %v4359_v39 = vpop.f32.mrf.mxu0 }
0x3d43   :  { %v4360_v7 = vadd.f32 %v8237_v41, %v4359_v39 }
0x3d44   :  { %v6015_v10 = vpop.f32.mrf.mxu0 }
0x3d45   :  { %6401 = vtanh.f32 %v4360_v7  ;;  %v4838_v17 = vmul.f32 -1.442695, %v4360_v7 }
0x3d47   :  { %6403 = vpow2.f32 %v4838_v17 }
0x3d52   :  { %v6402_v18 = vpop.eup %6401 }
0x3d53   :  { %4372 = vrot.lane.b32.xlu1 %v6402_v18, %s6629_s10 }
0x3d54   :  { %v6404_v19 = vpop.eup %6403 }
0x3d55   :  { %v4366_v4 = vadd.f32 1.0, %v6404_v19 }
0x3d57   :  { %6405 = vrcp.f32 %v4366_v4  ;;  %v4814_v4 = vld [vmem:[%s8334_s9] ss:$0 sm:$0xff]  ;;  %s6632_s9 = smov [#allocation12]  }
0x3d64   :  { %v6406_v47 = vpop.eup %6405 }
0x3d65   :  { %v4370_v50 = vmul.f32 %v6406_v47, %v8125_v54 }
0x3dc5   :  { %v4373_v12 = vpop.permute.xlu1 %4372 }
0x3dc6   :  { %v4375_v14 = vmul.f32 %v6406_v47, %v4373_v12 }
0x3dc8   :  { %4377 = vrot.lane.b32.xlu0 %v4375_v14, %s6628_s3 }
0x3dcc   :  { %4404 = vrot.lane.b32.xlu0 %v8181_v34, %s6628_s3 }
0x3e3a   :  { %v4378_v29 = vpop.permute.xlu0 %4377 }
0x3e3b   :  { %v8245_v5 = vadd.f32 %v4378_v29, %v4370_v50 }
0x3e3d   :  { %6407 = vtanh.f32 %v8245_v5 }
0x3e3e   :  { %v4405_v34 = vpop.permute.xlu0 %4404 }
0x3e4a   :  { %v6408_v6 = vpop.eup %6407 }
0x3e4b   :  { %4383 = vrot.lane.b32.xlu1 %v6408_v6, %s6629_s10 }
0x3e4f   :  { %4408 = vrot.lane.b32.xlu1 %v4403_v3, %s6628_s3 }
0x3ebd   :  { %v4384_v56 = vpop.permute.xlu1 %4383 }
0x3ebe   :  { %v8250_v20 = vmul.f32 %v6406_v47, %v4384_v56 }
0x3ec0   :  { %4412 = vrot.lane.b32.xlu0 %v8250_v20, %s6630_s5 }
0x3ec1   :  { %v4409_v58 = vpop.permute.xlu1 %4408 }
0x3ec2   :  { %v4415_v54 = vsel %vm139_vm1, %v4405_v34, %v4409_v58 }
0x3f32   :  { %v4413_v62 = vpop.permute.xlu0 %4412 }
0x3f33   :  { %v4416_v42 = vsel %vm141_vm2, %v4415_v54, %v4413_v62 }
0x3f34   :  { %6041 = vmatmul.mubr.msk.f32.vlgmr.msra.gmra.mxu1 %vm3068_vm3, %v4416_v42 }
0x3f35   :  { %6063 = vmatpush3.msra.mxu1 %v8137_v61  ;;  %6078 = vmatprep.mubr.msk.f32.mxu1 %vm6627_vm0, %v6626_v1 }
0x3f36   :  { %6064 = vmatprep.subr.mxu1 %v6626_v1 }
0x3f37   :  { %6065 = vmatpush3.msra.mxu1 %v8143_v52  ;;  %v6490_v52 = vld [vmem:[%s8333_s8] sm:$0x1] }
0x3f38   :  { %6066 = vmatprep.subr.mxu1 %v6626_v1 }
0x3f39   :  { %6067 = vmatpush3.msra.mxu1 %v8147_v53 }
0x3f3a   :  { %6068 = vmatprep.subr.mxu1 %v6626_v1 }
0x3f3b   :  { %6069 = vmatpush3.msra.mxu1 %v8151_v57 }
0x3f3c   :  { %6070 = vmatprep.subr.mxu1 %v6626_v1 }
0x3f3d   :  { %6071 = vmatpush3.msra.mxu1 %v8155_v40 }
0x3f3e   :  { %6072 = vmatprep.subr.mxu1 %v6626_v1 }
0x3f3f   :  { %6073 = vmatpush3.msra.mxu1 %v8159_v8 }
0x3f40   :  { %6074 = vmatprep.subr.mxu1 %v6626_v1 }
0x3f41   :  { %6075 = vmatpush3.msra.mxu1 %v8163_v23 }
0x3f42   :  { %6076 = vmatprep.subr.mxu1 %v6626_v1 }
0x3f43   :  { %6077 = vmatpush3.msra.mxu1 %v8167_v33 }
0x3ff4   :  { %v4486_v61 = vpop.f32.mrf.mxu1 }
0x3ff5   :  { %v4487_v53 = vadd.f32 %v6490_v52, %v4486_v61 }
0x3ff6   :  { %v6042_v57 = vpop.f32.mrf.mxu1 }
0x3ff7   :  { %6409 = vtanh.f32 %v4487_v53  ;;  %v4840_v8 = vmul.f32 -1.442695, %v4487_v53 }
0x3ff9   :  { %6411 = vpow2.f32 %v4840_v8 }
0x4004   :  { %v6410_v40 = vpop.eup %6409 }
0x4005   :  { %4499 = vrot.lane.b32.xlu1 %v6410_v40, %s6629_s10 }
0x4006   :  { %v6412_v38 = vpop.eup %6411 }
0x4007   :  { %v4493_v51 = vadd.f32 1.0, %v6412_v38 }
0x4009   :  { %6413 = vrcp.f32 %v4493_v51 }
0x4016   :  { %v6414_v23 = vpop.eup %6413 }
0x4017   :  { %v4497_v33 = vmul.f32 %v6414_v23, %v8177_v13 }
0x4077   :  { %v4500_v1 = vpop.permute.xlu1 %4499 }
0x4078   :  { %v4502_v21 = vmul.f32 %v6414_v23, %v4500_v1 }
0x407a   :  { %4504 = vrot.lane.b32.xlu0 %v4502_v21, %s6628_s3 }
0x407e   :  { %4514 = vrot.lane.b32.xlu0 %v8211_v24, %s6628_s3 }
0x40ec   :  { %v4505_v26 = vpop.permute.xlu0 %4504 }
0x40ed   :  { %v4507_v15 = vadd.f32 %v4505_v26, %v4497_v33  ;;  %v2705_v26 = vld [vmem:[#allocation2] sm:$0x1] }
0x40ef   :  { %6415 = vtanh.f32 %v4507_v15 }
0x40f0   :  { %v4515_v9 = vpop.permute.xlu0 %4514 }
0x40fc   :  { %v6416_v31 = vpop.eup %6415 }
0x40fd   :  { %4510 = vrot.lane.b32.xlu1 %v6416_v31, %s6629_s10 }
0x416f   :  { %v4511_v32 = vpop.permute.xlu1 %4510 }
0x4170   :  { %v4513_v55 = vmul.f32 %v6414_v23, %v4511_v32 }
0x4172   :  { %4518 = vrot.lane.b32.xlu1 %v4513_v55, %s6629_s10 }
0x41e4   :  { %v4519_v36 = vpop.permute.xlu1 %4518 }
0x41e5   :  { %v4521_v30 = vsel %vm139_vm1, %v4515_v9, %v4519_v36 }
0x41e6   :  { %6060 = vmatmul.mubr.msk.f32.vlgmr.msra.gmra.mxu0 %vm141_vm2, %v4521_v30 }
0x42a6   :  { %v4591_v37 = vpop.f32.mrf.mxu0 }
0x42a7   :  { %v4592_v48 = vadd.f32 %v8067_v63, %v4591_v37 }
0x42a8   :  { %v6061_v13 = vpop.f32.mrf.mxu0 }
0x42a9   :  { %6417 = vtanh.f32 %v4592_v48  ;;  %v4842_v59 = vmul.f32 -1.442695, %v4592_v48 }
0x42ab   :  { %6419 = vpow2.f32 %v4842_v59 }
0x42b6   :  { %v6418_v60 = vpop.eup %6417 }
0x42b7   :  { %4604 = vrot.lane.b32.xlu0 %v6418_v60, %s6629_s10 }
0x42b8   :  { %v6420_v46 = vpop.eup %6419 }
0x42b9   :  { %v4598_v43 = vadd.f32 1.0, %v6420_v46  ;;  %v2706_v46 = vlaneseq }
0x42bb   :  { %6421 = vrcp.f32 %v4598_v43 }
0x42c8   :  { %v6422_v25 = vpop.eup %6421 }
0x42c9   :  { %v4602_v63 = vmul.f32 %v6422_v25, %v8207_v22 }
0x4329   :  { %v4605_v28 = vpop.permute.xlu0 %4604 }
0x432a   :  { %v4607_v0 = vmul.f32 %v6422_v25, %v4605_v28 }
0x432c   :  { %4609 = vrot.lane.b32.xlu1 %v4607_v0, %s6628_s3 }
0x4330   :  { %4619 = vrot.lane.b32.xlu1 %v8250_v20, %s6628_s3 }
0x439e   :  { %v4610_v2 = vpop.permute.xlu1 %4609 }
0x439f   :  { %v4612_v24 = vadd.f32 %v4610_v2, %v4602_v63 }
0x43a1   :  { %6423 = vtanh.f32 %v4612_v24 }
0x43a2   :  { %v4620_v39 = vpop.permute.xlu1 %4619 }
0x43ae   :  { %v6424_v11 = vpop.eup %6423 }
0x43af   :  { %4615 = vrot.lane.b32.xlu0 %v6424_v11, %s6629_s10 }
0x4421   :  { %v4616_v35 = vpop.permute.xlu0 %4615 }
0x4422   :  { %v4618_v49 = vmul.f32 %v6422_v25, %v4616_v35  ;;  %v2707_v25 = vand.u32 127, %v2706_v46 }
0x4424   :  { %4623 = vrot.lane.b32.xlu0 %v4618_v49, %s6629_s10  ;;  %vm3047_vm5 = vcmp.eq.s32.totalorder %v2707_v25, 0  ;;  %vm3385_vm6 = vcmp.eq.s32.totalorder %v2707_v25, 1  ;;  %vm3722_vm7 = vcmp.eq.s32.totalorder %v2707_v25, 2  ;;  %vm4059_vm8 = vcmp.eq.s32.totalorder %v2707_v25, 3 }
0x4425   :  { %vm4396_vm9 = vcmp.eq.s32.totalorder %v2707_v25, 4  ;;  %vm4733_vm10 = vcmp.eq.s32.totalorder %v2707_v25, 5 }
0x4496   :  { %v4624_v7 = vpop.permute.xlu0 %4623 }
0x4497   :  { %v4626_v10 = vsel %vm139_vm1, %v4620_v39, %v4624_v7 }
0x4498   :  { %6079 = vmatmul.mubr.msk.f32.vlgmr.msra.gmra.mxu1 %vm141_vm2, %v4626_v10 }
0x4558   :  { %v4696_v18 = vpop.f32.mrf.mxu1 }
0x4559   :  { %v4697_v17 = vadd.f32 %v8237_v41, %v4696_v18 }
0x455a   :  { %v6080_v22 = vpop.f32.mrf.mxu1 }
0x455b   :  { %6425 = vtanh.f32 %v4697_v17  ;;  %v4844_v47 = vmul.f32 -1.442695, %v4697_v17 }
0x455d   :  { %6427 = vpow2.f32 %v4844_v47 }
0x4568   :  { %v6426_v19 = vpop.eup %6425 }
0x4569   :  { %4709 = vrot.lane.b32.xlu1 %v6426_v19, %s6629_s10 }
0x456a   :  { %v6428_v12 = vpop.eup %6427 }
0x456b   :  { %v4703_v14 = vadd.f32 1.0, %v6428_v12 }
0x456d   :  { %3034 = vrot.lane.b32.xlu1 %v4814_v4, %s6630_s5  ;;  %6429 = vrcp.f32 %v4703_v14 }
0x457a   :  { %v6430_v50 = vpop.eup %6429 }
0x45db   :  { %v4710_v29 = vpop.permute.xlu1 %4709 }
0x45dc   :  { %v4712_v6 = vmul.f32 %v6430_v50, %v4710_v29 }
0x45de   :  { %4714 = vrot.lane.b32.xlu0 %v4712_v6, %s6628_s3 }
0x45df   :  { %v3035_v41 = vpop.permute.xlu1 %3034 }
0x45e0   :  { %v3037_v3 = vmul.f32 %v3035_v41, %v7768_v16  ;;  %v3376_v56 = vmul.f32 %v7885_v45, %v3035_v41  ;;  %v3713_v34 = vmul.f32 %v7997_v27, %v3035_v41  ;;  %v4050_v58 = vmul.f32 %v8130_v44, %v3035_v41 }
0x45e1   :  { %v4387_v54 = vmul.f32 %v8250_v20, %v3035_v41  ;;  %v4707_v16 = vmul.f32 %v6430_v50, %v8245_v5  ;;  %v6631_v44 = vmov 0  }
0x45e2   :  { %3039 = vrot.lane.b32.xlu1 %v3037_v3, %s6628_s3  ;;  %6095 = vset.pattern.permute.xlu0 %v6631_v44 }
0x45e3   :  { %6096 = vset.pattern.permute.xlu1 %v6631_v44 }
0x45e6   :  { %3378 = vrot.lane.b32.xlu1 %v3376_v56, %s6628_s3 }
0x45ea   :  { %3715 = vrot.lane.b32.xlu1 %v3713_v34, %s6628_s3 }
0x45ee   :  { %4052 = vrot.lane.b32.xlu1 %v4050_v58, %s6628_s3 }
0x45f2   :  { %4389 = vrot.lane.b32.xlu1 %v4387_v54, %s6628_s3 }
0x4650   :  { %v4715_v62 = vpop.permute.xlu0 %4714 }
0x4651   :  { %v4717_v42 = vadd.f32 %v4715_v62, %v4707_v16 }
0x4653   :  { %6431 = vtanh.f32 %v4717_v42 }
0x4654   :  { %v3040_v27 = vpop.permute.xlu1 %3039 }
0x4655   :  { %v3043_v61 = vsel %vm3042_vm4, %v3040_v27, 0.0 }
0x4658   :  { %v3379_v5 = vpop.permute.xlu1 %3378 }
0x4659   :  { %v3381_v40 = vsel %vm3042_vm4, %v3379_v5, 0.0 }
0x465c   :  { %v3716_v57 = vpop.permute.xlu1 %3715 }
0x465d   :  { %v3718_v38 = vsel %vm3042_vm4, %v3716_v57, 0.0 }
0x4660   :  { %v6432_v45 = vpop.eup %6431  ;;  %v4053_v8 = vpop.permute.xlu1 %4052 }
0x4661   :  { %4720 = vrot.lane.b32.xlu0 %v6432_v45, %s6629_s10  ;;  %v4055_v51 = vsel %vm3042_vm4, %v4053_v8, 0.0 }
0x4664   :  { %v4390_v23 = vpop.permute.xlu1 %4389 }
0x4665   :  { %v4392_v1 = vsel %vm3042_vm4, %v4390_v23, 0.0 }
0x4680   :  { %3044 = vadd.xlane.f32.xlu0 %v3043_v61 }
0x46d3   :  { %v4721_v52 = vpop.permute.xlu0 %4720 }
0x46d4   :  { %v4723_v20 = vmul.f32 %v6430_v50, %v4721_v52 }
0x46d6   :  { %v4724_v53 = vmul.f32 %v4723_v20, %v3035_v41 }
0x46d8   :  { %4726 = vrot.lane.b32.xlu1 %v4724_v53, %s6628_s3  ;;  %s4748_s3 = sshll.u32 %s6632_s9, 4  ;;  %s4749_s3 = int_to_ptr.vmem [resolvable:$true] %s4748_s3 }
0x46d9   :  { %s6591_s10 = scalar_lea.vmem %s4749_s3, 16  ;;  %s6595_s26 = scalar_lea.vmem %s4749_s3, 32 }
0x46da   :  { %p6592_p11 = scmp.ne.s32.totalorder %s4749_s3, %s6591_s10  ;;  %p6596_p12 = scmp.lt.s32.totalorder %s4749_s3, %s4749_s3 }
0x46db   :  { %p6597_p13 = scmp.lt.s32.totalorder %s6595_s26, %s6591_s10 }
0x46dd   :  { %p6598_p0 = por %p6597_p13, %p6596_p12 }
0x46df   :  { %p6599_p1 = pnand %p6598_p0, %p6592_p11 }
0x46fc   :  { %3382 = vadd.xlane.f32.xlu1 %v3381_v40 }
0x4700   :  { %3719 = vadd.xlane.f32.xlu1 %v3718_v38 }
0x4704   :  { %4056 = vadd.xlane.f32.xlu1 %v4055_v51 }
0x4708   :  { %4393 = vadd.xlane.f32.xlu1 %v4392_v1 }
0x4709   :  { %v3045_v15 = vpop.xlane.xlu0 %3044 }
0x470a   :  { %v3046_v31 = vadd.f32 %v3045_v15, %v2705_v26 }
0x474a   :  { %v4727_v21 = vpop.permute.xlu1 %4726 }
0x474b   :  { %v4729_v33 = vsel %vm3042_vm4, %v4727_v21, 0.0 }
0x474c   :  { %4730 = vadd.xlane.f32.xlu1 %v4729_v33 }
0x475d   :  { %3050 = vperm.xlu1 %6096, %v3046_v31  }
0x4785   :  { %v3383_v32 = vpop.xlane.xlu1 %3382 }
0x4786   :  { %v3384_v55 = vadd.f32 %v3383_v32, %v2705_v26 }
0x4788   :  { %3388 = vperm.xlu0 %6095, %v3384_v55  }
0x4789   :  { %v3720_v9 = vpop.xlane.xlu1 %3719 }
0x478a   :  { %v3721_v36 = vadd.f32 %v3720_v9, %v2705_v26 }
0x478c   :  { %3725 = vperm.xlu0 %6095, %v3721_v36  }
0x478d   :  { %v4057_v30 = vpop.xlane.xlu1 %4056 }
0x478e   :  { %v4058_v37 = vadd.f32 %v4057_v30, %v2705_v26 }
0x4790   :  { %4062 = vperm.xlu1 %6096, %v4058_v37  }
0x4791   :  { %v4394_v48 = vpop.xlane.xlu1 %4393 }
0x4792   :  { %v4395_v13 = vadd.f32 %v4394_v48, %v2705_v26 }
0x4794   :  { %4399 = vperm.xlu0 %6095, %v4395_v13  }
0x47d5   :  { %v4731_v60 = vpop.xlane.xlu1 %4730 }
0x47d6   :  { %v4732_v59 = vadd.f32 %v4731_v60, %v2705_v26 }
0x47d8   :  { %4736 = vperm.xlu0 %6095, %v4732_v59  }
0x47d9   :  { %v3051_v28 = vpop.permute.xlu1 %3050 }
0x47da   :  { %v3053_v63 = vsel %vm3047_vm5, %v3051_v28, 0.0 }
0x4803   :  { %v3389_v43 = vpop.permute.xlu0 %3388 }
0x4804   :  { %v3391_v11 = vsel %vm3385_vm6, %v3389_v43, %v3053_v63 }
0x4807   :  { %v3726_v0 = vpop.permute.xlu0 %3725 }
0x4808   :  { %v3728_v35 = vsel %vm3722_vm7, %v3726_v0, %v3391_v11 }
0x480b   :  { %v4063_v2 = vpop.permute.xlu1 %4062 }
0x480c   :  { %v4065_v49 = vsel %vm4059_vm8, %v4063_v2, %v3728_v35 }
0x480f   :  { %v4400_v24 = vpop.permute.xlu0 %4399 }
0x4810   :  { %v4402_v39 = vsel %vm4396_vm9, %v4400_v24, %v4065_v49 }
0x4853   :  { %v4737_v7 = vpop.permute.xlu0 %4736 }
0x4854   :  { %v4739_v10 = vsel %vm4733_vm10, %v4737_v7, %v4402_v39 }
0x4855   :  { %4741 = vst.msk [vmem:[#allocation12] sm:$0x1] %vm4740_vm11, %v4739_v10 }
0x4856   :  { %6602 = shalt.err (!%p6599_p1)
}
0x4857   :  { %4751 = dma.vmem_to_hbm [thread:$0]  %s4749_s3, 16, %s8336_s11, [#allocation5]  }
0x4858   :  { %6617 = dma.done.wait [#allocation5], 16  }
0x4859   :  { %6618 = vsyncadd [#allocation5], 4294967280 }
0x485a   :  { %4755 = vsyncpa [#allocation4], 1 }
0x485b   :  { %4756 = vsyncpa [#allocation7], 1 }
0x485c   :  { %4757 = vsyncpa [#allocation10], 1 }
0x485d   :  { %4758 = vsyncpa [#allocation5], 1 }

</bundles_post_ra>
